<compile_context>
chip_gen: v7x
topology: tpu7x:2x2x1
jax: 0.10.0
libtpu: 0.0.40
codegen_flags: <defaults>
</compile_context>

<pallas_src>
import jax
import jax.numpy as jnp
from jax.experimental import pallas as pl
from jax.experimental.pallas import tpu as pltpu


def _round_up(x, m):
    return ((x + m - 1) // m) * m


# ---- exact-erf GELU built only from VPU/EUP-friendly ops -------------------
_ERF_P = 0.3275911
_ERF_A1 = 0.254829592
_ERF_A2 = -0.284496736
_ERF_A3 = 1.421413741
_ERF_A4 = -1.453152027
_ERF_A5 = 1.061405429
_INV_SQRT2 = 0.7071067811865476


def _erf_approx(x):
    # Abramowitz & Stegun 7.1.26, |error| <= 1.5e-7 (f32-level accuracy).
    ax = jnp.abs(x)
    t = 1.0 / (1.0 + _ERF_P * ax)
    poly = ((((_ERF_A5 * t + _ERF_A4) * t + _ERF_A3) * t + _ERF_A2) * t
            + _ERF_A1) * t
    y = 1.0 - poly * jnp.exp(-(ax * ax))
    return jnp.where(x >= 0.0, y, -y)


def _gelu_exact(x):
    # Matches nn.GELU() (erf form) to ~1e-7.
    return 0.5 * x * (1.0 + _erf_approx(x * _INV_SQRT2))


def _lfpe_kernel(x_ref, wr_ref, w1_ref, b1_ref, w2_ref, b2_ref, o_ref):
    # x_ref : (TM, 1)     positions
    # wr_ref: (1, F/2)    Wr^T (Linear(1, F/2, bias=False))
    # w1_ref: (F, H)      (scale * W1)^T, rows ordered [cos half ; sin half]
    # b1_ref: (1, H)
    # w2_ref: (H, D)      W2^T
    # b2_ref: (1, D)
    # o_ref : (TM, D)
    x = x_ref[...]                                    # (TM, 1)
    # Linear(1 -> F/2, no bias): outer product via broadcast (VPU).
    t = x * wr_ref[...]                               # (TM, F/2)
    # scale already folded into w1_ref; single fused K=F matmul.
    ff = jnp.concatenate([jnp.cos(t), jnp.sin(t)], axis=-1)       # (TM, F)
    ff = ff.astype(w1_ref.dtype)
    h1 = jnp.dot(ff, w1_ref[...],
                 preferred_element_type=jnp.float32,
                 precision=jax.lax.Precision.HIGHEST) + b1_ref[...]   # (TM, H) f32
    h1 = _gelu_exact(h1)
    h1 = h1.astype(w2_ref.dtype)
    y = jnp.dot(h1, w2_ref[...],
                preferred_element_type=jnp.float32,
                precision=jax.lax.Precision.HIGHEST) + b2_ref[...]
    o_ref[...] = y.astype(o_ref.dtype)                # (TM, D)


def learnable_fourier_pos_encoding(x, params, *, f, tile_m=512,
                                   matmul_dtype=jnp.float32,
                                   out_dtype=jnp.float32):
    """x: (B, N) float positions -> (B, N, D) in `out_dtype`."""
    wr, w1, b1, w2, b2 = (params["wr"], params["w1"], params["b1"],
                          params["w2"], params["b2"])
    B, N = x.shape
    f2 = f // 2
    h = w1.shape[0]
    d = w2.shape[0]
    scale = float(f) ** (-0.5)

    bn = B * N
    # Large tiles amortize per-grid-step overhead; clamp (8-row aligned) so tiny
    # inputs don't pad out massively, then pad bn up to a tile multiple.
    tile_m = max(8, min(tile_m, _round_up(bn, 8)))
    padded_bn = pl.cdiv(bn, tile_m) * tile_m

    x_flat = x.reshape(bn, 1).astype(jnp.float32)
    if padded_bn != bn:
        x_flat = jnp.pad(x_flat, ((0, padded_bn - bn), (0, 0)))

    # Weight prep (plain JAX glue). Fold scale into W1^T; the stacked (F, H)
    # weight multiplies [cos | sin] directly (same row order as torch.cat).
    wr_t = wr.T.astype(jnp.float32)                      # (1, F/2)
    w1_scaled = (w1.T * scale).astype(matmul_dtype)      # (F, H)
    w2_t = w2.T.astype(matmul_dtype)                     # (H, D)
    b1_r = b1.reshape(1, h).astype(jnp.float32)
    b2_r = b2.reshape(1, d).astype(jnp.float32)

    grid = padded_bn // tile_m

    y_flat = pl.pallas_call(
        _lfpe_kernel,
        out_shape=jax.ShapeDtypeStruct((padded_bn, d), out_dtype),
        grid_spec=pltpu.PrefetchScalarGridSpec(
            num_scalar_prefetch=0,
            grid=(grid,),
            in_specs=[
                pl.BlockSpec((tile_m, 1), lambda i: (i, 0)),   # x rows
                pl.BlockSpec((1, f2),     lambda i: (0, 0)),   # Wr^T
                pl.BlockSpec((f, h),      lambda i: (0, 0)),   # scaled W1^T (stacked)
                pl.BlockSpec((1, h),      lambda i: (0, 0)),   # b1
                pl.BlockSpec((h, d),      lambda i: (0, 0)),   # W2^T
                pl.BlockSpec((1, d),      lambda i: (0, 0)),   # b2
            ],
            out_specs=pl.BlockSpec((tile_m, d), lambda i: (i, 0)),
        ),
        compiler_params=pltpu.CompilerParams(
            dimension_semantics=("parallel",)),
    )(x_flat, wr_t, w1_scaled, b1_r, w2_t, b2_r)

    return y_flat[:bn].reshape(B, N, d)


def _reference(x, params, *, f):
    """Pure-JAX reference mirroring the PyTorch forward (f32 numerics)."""
    wr, w1, b1, w2, b2 = (params["wr"], params["w1"], params["b1"],
                          params["w2"], params["b2"])
    scale = float(f) ** (-0.5)
    t = x[..., None] * wr.reshape(-1)                         # (B, N, F/2); K=1 matmul
    ff = scale * jnp.concatenate([jnp.cos(t), jnp.sin(t)], axis=-1)
    h1 = jax.nn.gelu(
        jnp.dot(ff, w1.T, precision=jax.lax.Precision.HIGHEST) + b1,
        approximate=False)
    return jnp.dot(h1, w2.T, precision=jax.lax.Precision.HIGHEST) + b2


def init_params(key, *, m=1, f=64, h=32, d=128):
    assert f % 2 == 0
    k_wr, k_w1, k_b1, k_w2, k_b2 = jax.random.split(key, 5)
    return {
        "wr": jax.random.normal(k_wr, (f // 2, m), jnp.float32) * 0.2,
        "w1": jax.random.normal(k_w1, (h, f), jnp.float32) * 0.1,
        "b1": jax.random.normal(k_b1, (h,), jnp.float32) * 0.01,
        "w2": jax.random.normal(k_w2, (d, h), jnp.float32) * 0.1,
        "b2": jax.random.normal(k_b2, (d,), jnp.float32) * 0.01,
    }


if __name__ == "__main__":
    # Small shapes consistent with the module (m=1 position coord per token):
    # F=64 fourier features, H=32 hidden, D=128 output dim.
    M, F, H, D = 1, 64, 32, 128

    key = jax.random.PRNGKey(0)
    k_params, k_x1, k_x2 = jax.random.split(key, 3)
    params = init_params(k_params, m=M, f=F, h=H, d=D)

    # Case 1: small shape (B=2, N=64). Exercises the tile-clamp path (grid=1).
    x_small = jax.random.uniform(k_x1, (2, 64), jnp.float32) * 10.0
    y = jax.block_until_ready(
        learnable_fourier_pos_encoding(x_small, params, f=F))
    y_ref = _reference(x_small, params, f=F)
    assert y.shape == (2, 64, D)
    assert jnp.allclose(y, y_ref, atol=5e-4, rtol=5e-4), (
        float(jnp.max(jnp.abs(y - y_ref))))

    # Case 2: ragged shape (B=3, N=333 -> bn=999). Exercises padding + grid>1.
    x_big = jax.random.uniform(k_x2, (3, 333), jnp.float32) * 10.0
    y2 = jax.block_until_ready(
        learnable_fourier_pos_encoding(x_big, params, f=F))
    y2_ref = _reference(x_big, params, f=F)
    assert y2.shape == (3, 333, D)
    assert jnp.allclose(y2, y2_ref, atol=5e-4, rtol=5e-4), (
        float(jnp.max(jnp.abs(y2 - y2_ref))))

    print("KERNEL_OK")
</pallas_src>

<mosaic_0001>
module attributes {stable_mosaic.version = 11 : i64} {
  func.func @_lfpe_kernel(%arg0: i32, %arg1: memref<128x1xf32, #tpu.memory_space<vmem>>, %arg2: memref<1x32xf32, #tpu.memory_space<vmem>>, %arg3: memref<64x32xf32, #tpu.memory_space<vmem>>, %arg4: memref<1x32xf32, #tpu.memory_space<vmem>>, %arg5: memref<32x128xf32, #tpu.memory_space<vmem>>, %arg6: memref<1x128xf32, #tpu.memory_space<vmem>>, %arg7: memref<128x128xf32, #tpu.memory_space<vmem>>) attributes {dimension_semantics = [#tpu.dimension_semantics<parallel>], iteration_bounds = array<i64: 1>, scalar_prefetch = 0 : i64, scratch_operands = 0 : i64, tpu.core_type = #tpu.core_type<tc>, window_params = [{transform_indices = @transform_0, window_bounds = array<i64: 128, 1>}, {pipeline_mode = #tpu.pipeline_mode<synchronous>, transform_indices = @transform_1, window_bounds = array<i64: 1, 32>}, {pipeline_mode = #tpu.pipeline_mode<synchronous>, transform_indices = @transform_2, window_bounds = array<i64: 64, 32>}, {pipeline_mode = #tpu.pipeline_mode<synchronous>, transform_indices = @transform_3, window_bounds = array<i64: 1, 32>}, {pipeline_mode = #tpu.pipeline_mode<synchronous>, transform_indices = @transform_4, window_bounds = array<i64: 32, 128>}, {pipeline_mode = #tpu.pipeline_mode<synchronous>, transform_indices = @transform_5, window_bounds = array<i64: 1, 128>}, {transform_indices = @transform_6, window_bounds = array<i64: 128, 128>}]} {
    %c0 = arith.constant 0 : index
    %c0_0 = arith.constant 0 : index
    %0 = vector.load %arg1[%c0, %c0_0] : memref<128x1xf32, #tpu.memory_space<vmem>>, vector<128x1xf32>
    %c0_1 = arith.constant 0 : index
    %c0_2 = arith.constant 0 : index
    %1 = vector.load %arg2[%c0_1, %c0_2] : memref<1x32xf32, #tpu.memory_space<vmem>>, vector<1x32xf32>
    %2 = vector.broadcast %0 : vector<128x1xf32> to vector<128x32xf32>
    %3 = vector.broadcast %1 : vector<1x32xf32> to vector<128x32xf32>
    %4 = arith.mulf %2, %3 : vector<128x32xf32>
    %5 = math.cos %4 : vector<128x32xf32>
    %6 = math.sin %4 : vector<128x32xf32>
    %7 = tpu.concatenate %5, %6 in 1 : vector<128x32xf32>, vector<128x32xf32> -> vector<128x64xf32>
    %c0_3 = arith.constant 0 : index
    %c0_4 = arith.constant 0 : index
    %8 = vector.load %arg3[%c0_3, %c0_4] : memref<64x32xf32, #tpu.memory_space<vmem>>, vector<64x32xf32>
    %cst = arith.constant dense<0.000000e+00> : vector<128x32xf32>
    %9 = tpu.matmul %7, %8, %cst {dimension_numbers = #tpu.dot_dimension_numbers<[1], [0], [0], [1], [0, 0, 1, 1], [], []>, precision = #tpu.contract_precision<fp32>} : vector<128x64xf32>, vector<64x32xf32>, vector<128x32xf32> -> vector<128x32xf32>
    %c0_5 = arith.constant 0 : index
    %c0_6 = arith.constant 0 : index
    %10 = vector.load %arg4[%c0_5, %c0_6] : memref<1x32xf32, #tpu.memory_space<vmem>>, vector<1x32xf32>
    %11 = vector.broadcast %10 : vector<1x32xf32> to vector<128x32xf32>
    %12 = arith.addf %9, %11 : vector<128x32xf32>
    %cst_7 = arith.constant 5.000000e-01 : f32
    %13 = vector.broadcast %cst_7 : f32 to vector<128x32xf32>
    %14 = arith.mulf %13, %12 : vector<128x32xf32>
    %cst_8 = arith.constant 0.707106769 : f32
    %15 = vector.broadcast %cst_8 : f32 to vector<128x32xf32>
    %16 = arith.mulf %12, %15 : vector<128x32xf32>
    %17 = math.absf %16 : vector<128x32xf32>
    %cst_9 = arith.constant 0.327591091 : f32
    %18 = vector.broadcast %cst_9 : f32 to vector<128x32xf32>
    %19 = arith.mulf %18, %17 : vector<128x32xf32>
    %cst_10 = arith.constant 1.000000e+00 : f32
    %20 = vector.broadcast %cst_10 : f32 to vector<128x32xf32>
    %21 = arith.addf %20, %19 : vector<128x32xf32>
    %cst_11 = arith.constant 1.000000e+00 : f32
    %22 = vector.broadcast %cst_11 : f32 to vector<128x32xf32>
    %23 = arith.divf %22, %21 : vector<128x32xf32>
    %cst_12 = arith.constant 1.06140542 : f32
    %24 = vector.broadcast %cst_12 : f32 to vector<128x32xf32>
    %25 = arith.mulf %24, %23 : vector<128x32xf32>
    %cst_13 = arith.constant -1.45315206 : f32
    %26 = vector.broadcast %cst_13 : f32 to vector<128x32xf32>
    %27 = arith.addf %25, %26 : vector<128x32xf32>
    %28 = arith.mulf %27, %23 : vector<128x32xf32>
    %cst_14 = arith.constant 1.42141378 : f32
    %29 = vector.broadcast %cst_14 : f32 to vector<128x32xf32>
    %30 = arith.addf %28, %29 : vector<128x32xf32>
    %31 = arith.mulf %30, %23 : vector<128x32xf32>
    %cst_15 = arith.constant -0.284496725 : f32
    %32 = vector.broadcast %cst_15 : f32 to vector<128x32xf32>
    %33 = arith.addf %31, %32 : vector<128x32xf32>
    %34 = arith.mulf %33, %23 : vector<128x32xf32>
    %cst_16 = arith.constant 0.254829586 : f32
    %35 = vector.broadcast %cst_16 : f32 to vector<128x32xf32>
    %36 = arith.addf %34, %35 : vector<128x32xf32>
    %37 = arith.mulf %36, %23 : vector<128x32xf32>
    %38 = arith.mulf %17, %17 : vector<128x32xf32>
    %cst_17 = arith.constant 0.000000e+00 : f32
    %39 = vector.broadcast %cst_17 : f32 to vector<128x32xf32>
    %40 = arith.subf %39, %38 : vector<128x32xf32>
    %41 = math.exp %40 : vector<128x32xf32>
    %42 = arith.mulf %37, %41 : vector<128x32xf32>
    %cst_18 = arith.constant 1.000000e+00 : f32
    %43 = vector.broadcast %cst_18 : f32 to vector<128x32xf32>
    %44 = arith.subf %43, %42 : vector<128x32xf32>
    %cst_19 = arith.constant 0.000000e+00 : f32
    %45 = vector.broadcast %cst_19 : f32 to vector<128x32xf32>
    %46 = arith.cmpf oge, %16, %45 : vector<128x32xf32>
    %cst_20 = arith.constant 0.000000e+00 : f32
    %47 = vector.broadcast %cst_20 : f32 to vector<128x32xf32>
    %48 = arith.subf %47, %44 : vector<128x32xf32>
    %49 = arith.select %46, %44, %48 : vector<128x32xi1>, vector<128x32xf32>
    %cst_21 = arith.constant 1.000000e+00 : f32
    %50 = vector.broadcast %cst_21 : f32 to vector<128x32xf32>
    %51 = arith.addf %50, %49 : vector<128x32xf32>
    %52 = arith.mulf %14, %51 : vector<128x32xf32>
    %c0_22 = arith.constant 0 : index
    %c0_23 = arith.constant 0 : index
    %53 = vector.load %arg5[%c0_22, %c0_23] : memref<32x128xf32, #tpu.memory_space<vmem>>, vector<32x128xf32>
    %cst_24 = arith.constant dense<0.000000e+00> : vector<128x128xf32>
    %54 = tpu.matmul %52, %53, %cst_24 {dimension_numbers = #tpu.dot_dimension_numbers<[1], [0], [0], [1], [0, 0, 1, 1], [], []>, precision = #tpu.contract_precision<fp32>} : vector<128x32xf32>, vector<32x128xf32>, vector<128x128xf32> -> vector<128x128xf32>
    %c0_25 = arith.constant 0 : index
    %c0_26 = arith.constant 0 : index
    %55 = vector.load %arg6[%c0_25, %c0_26] : memref<1x128xf32, #tpu.memory_space<vmem>>, vector<1x128xf32>
    %56 = vector.broadcast %55 : vector<1x128xf32> to vector<128x128xf32>
    %57 = arith.addf %54, %56 : vector<128x128xf32>
    %c0_27 = arith.constant 0 : index
    %c0_28 = arith.constant 0 : index
    %58 = vector.load %arg7[%c0_27, %c0_28] : memref<128x128xf32, #tpu.memory_space<vmem>>, vector<128x128xf32>
    tpu.vector_store %arg7[%c0_27, %c0_28], %57 {strides = array<i32>} : memref<128x128xf32, #tpu.memory_space<vmem>>, vector<128x128xf32>,
    return
  }
  func.func @transform_0(%arg0: i32) -> (i32, i32) {
    %c0_i32 = arith.constant 0 : i32
    %c0_i32_0 = arith.constant 0 : i32
    return %arg0, %c0_i32 : i32, i32
  }
  func.func @transform_1(%arg0: i32) -> (i32, i32) {
    %c0_i32 = arith.constant 0 : i32
    %c0_i32_0 = arith.constant 0 : i32
    %c0_i32_1 = arith.constant 0 : i32
    return %c0_i32, %c0_i32_0 : i32, i32
  }
  func.func @transform_2(%arg0: i32) -> (i32, i32) {
    %c0_i32 = arith.constant 0 : i32
    %c0_i32_0 = arith.constant 0 : i32
    %c0_i32_1 = arith.constant 0 : i32
    return %c0_i32, %c0_i32_0 : i32, i32
  }
  func.func @transform_3(%arg0: i32) -> (i32, i32) {
    %c0_i32 = arith.constant 0 : i32
    %c0_i32_0 = arith.constant 0 : i32
    %c0_i32_1 = arith.constant 0 : i32
    return %c0_i32, %c0_i32_0 : i32, i32
  }
  func.func @transform_4(%arg0: i32) -> (i32, i32) {
    %c0_i32 = arith.constant 0 : i32
    %c0_i32_0 = arith.constant 0 : i32
    %c0_i32_1 = arith.constant 0 : i32
    return %c0_i32, %c0_i32_0 : i32, i32
  }
  func.func @transform_5(%arg0: i32) -> (i32, i32) {
    %c0_i32 = arith.constant 0 : i32
    %c0_i32_0 = arith.constant 0 : i32
    %c0_i32_1 = arith.constant 0 : i32
    return %c0_i32, %c0_i32_0 : i32, i32
  }
  func.func @transform_6(%arg0: i32) -> (i32, i32) {
    %c0_i32 = arith.constant 0 : i32
    %c0_i32_0 = arith.constant 0 : i32
    return %arg0, %c0_i32 : i32, i32
  }
}

</mosaic_0001>

<bundles_post_ra>
// kernel: tpu_custom_call.1
= control target key start
LH: loop header
LB: loop body
LE: loop exit
PB: predicated region body
PF: predicated region fallthrough
CT: control target
= control target key end

     0   :  { %v7831_v2 = vmov 0   ;;  %s10603_s0 = inlined_call_operand.vmem [shape: f32[128,1], index: 0, kind: input, shape index: {}]   ;;  %s10604_s1 = inlined_call_operand.vmem [shape: f32[1,32], index: 1, kind: input, shape index: {}]   ;;  %s10605_s2 = inlined_call_operand.vmem [shape: f32[64,32], index: 2, kind: input, shape index: {}]   ;;  %s10606_s3 = inlined_call_operand.vmem [shape: f32[1,32], index: 3, kind: input, shape index: {}]   ;;  %s10607_s4 = inlined_call_operand.vmem [shape: f32[32,128], index: 4, kind: input, shape index: {}]   ;;  %s10608_s5 = inlined_call_operand.vmem [shape: f32[1,128], index: 5, kind: input, shape index: {}]   ;;  %s10609_s6 = inlined_call_operand.hbm [shape: f32[128,128], index: 6, kind: output, shape index: {}]  }
   0x1   :  { %v26_v0 = vld [vmem:[%s10603_s0 + $0x10] sm:$0xff]  ;;  %v24_v1 = vld [vmem:[%s10603_s0] sm:$0xff]  ;;  %7674 = vset.pattern.permute.xlu1 %v7831_v2  ;;  %7673 = vset.pattern.permute.xlu0 %v7831_v2  ;;  %v27_v3 = vld [vmem:[%s10603_s0 + $0x18] sm:$0xff] }
   0x2   :  { %53 = vperm.xlu1 %7674, %v26_v0   ;;  %43 = vperm.xlu0 %7673, %v24_v1   ;;  %v25_v4 = vld [vmem:[%s10603_s0 + $0x8] sm:$0xff] }
   0x6   :  { %58 = vperm.xlu1 %7674, %v27_v3   ;;  %48 = vperm.xlu0 %7673, %v25_v4  }
   0x7   :  { %11 = vsyncpa [#allocation3], 0  ;;  %v29_v5 = vld [vmem:[%s10603_s0 + $0x28] sm:$0xff]  ;;  %v28_v6 = vld [vmem:[%s10603_s0 + $0x20] sm:$0xff]  ;;  %v10630_v55 = vmov 683565275  }
   0x8   :  { %v31_v7 = vld [vmem:[%s10603_s0 + $0x38] sm:$0xff]  ;;  %v30_v8 = vld [vmem:[%s10603_s0 + $0x30] sm:$0xff]  ;;  %v33_v9 = vld [vmem:[%s10603_s0 + $0x48] sm:$0xff]  ;;  %v10621_v57 = vmov 2475754826  }
   0x9   :  { %v32_v10 = vld [vmem:[%s10603_s0 + $0x40] sm:$0xff]  ;;  %v35_v11 = vld [vmem:[%s10603_s0 + $0x58] sm:$0xff]  ;;  %v34_v12 = vld [vmem:[%s10603_s0 + $0x50] sm:$0xff]  ;;  %v10623_v59 = vmov 2131351028  }
   0xa   :  { %68 = vperm.xlu1 %7674, %v29_v5   ;;  %63 = vperm.xlu0 %7673, %v28_v6   ;;  %v37_v13 = vld [vmem:[%s10603_s0 + $0x68] sm:$0xff]  ;;  %v36_v14 = vld [vmem:[%s10603_s0 + $0x60] sm:$0xff]  ;;  %v39_v15 = vld [vmem:[%s10603_s0 + $0x78] sm:$0xff]  ;;  %v10625_v61 = vmov 2102212464  }
   0xb   :  { %v38_v16 = vld [vmem:[%s10603_s0 + $0x70] sm:$0xff]  ;;  %v7928_v17 = vld [vmem:[%s10604_s1] ss:$0 sm:$0xff]  ;;  %v10628_v63 = vmov 920167782  }
   0xe   :  { %78 = vperm.xlu1 %7674, %v31_v7   ;;  %73 = vperm.xlu0 %7673, %v30_v8   ;;  %v10618_v7 = vmov 1326507024  }
  0x12   :  { %88 = vperm.xlu1 %7674, %v33_v9   ;;  %83 = vperm.xlu0 %7673, %v32_v10  }
  0x16   :  { %98 = vperm.xlu1 %7674, %v35_v11   ;;  %93 = vperm.xlu0 %7673, %v34_v12  }
  0x1a   :  { %108 = vperm.xlu1 %7674, %v37_v13   ;;  %103 = vperm.xlu0 %7673, %v36_v14  }
  0x1e   :  { %118 = vperm.xlu1 %7674, %v39_v15   ;;  %113 = vperm.xlu0 %7673, %v38_v16  }
  0x81   :  { %v54_v18 = vpop.permute.xlu1 %53  ;;  %v44_v19 = vpop.permute.xlu0 %43 }
  0x82   :  { %v7931_v20 = vmul.f32 %v7928_v17, %v54_v18  ;;  %v7934_v21 = vmul.f32 %v7928_v17, %v44_v19 }
  0x84   :  { %v10616_v22 = vand.u32 2147483647, %v7931_v20  ;;  %v352_v23 = vand.u32 2139095040, %v7931_v20  ;;  %v10617_v24 = vand.u32 2147483647, %v7934_v21  ;;  %v146_v25 = vand.u32 2139095040, %v7934_v21 }
  0x85   :  { %v59_v26 = vpop.permute.xlu1 %58  ;;  %v49_v33 = vpop.permute.xlu0 %48 }
  0x86   :  { %v353_v27 = vshrl.u32 %v352_v23, 23  ;;  %v356_v28 = vand.u32 8388607, %v10616_v22  ;;  %v150_v29 = vand.u32 8388607, %v10617_v24  ;;  %v7945_v30 = vmul.f32 %v7928_v17, %v59_v26 }
  0x87   :  { %v147_v31 = vshrl.u32 %v146_v25, 23  ;;  %v7950_v42 = vmul.f32 %v7928_v17, %v49_v33 }
  0x88   :  { %v6444_v32 = vadd.s32 4294967169, %v353_v27  ;;  %v357_v34 = vor.u32 8388608, %v356_v28  ;;  %v455_v36 = vand.u32 2139095040, %v7945_v30  ;;  %v151_v38 = vor.u32 8388608, %v150_v29 }
  0x89   :  { %v6436_v35 = vadd.s32 4294967169, %v147_v31  ;;  %v10614_v40 = vand.u32 2147483647, %v7945_v30  ;;  %v249_v53 = vand.u32 2139095040, %v7950_v42 }
  0x8a   :  { %v359_v37 = vadd.s32 1, %v6444_v32  ;;  %v456_v41 = vshrl.u32 %v455_v36, 23  ;;  %v7952_v44 = vshll.u32 %v357_v34, 8  ;;  %v7954_v49 = vshll.u32 %v151_v38, 8 }
  0x8b   :  { %v153_v39 = vadd.s32 1, %v6436_v35  ;;  %v7960_v52 = vand.u32 8388607, %v10614_v40 }
  0x8c   :  { %vm360_vm0 = vcmp.gt.s32.totalorder %v359_v37, 0  ;;  %v6448_v45 = vadd.s32 4294967169, %v456_v41 }
  0x8d   :  { %v361_v43 = vsel %vm360_vm0, %v359_v37, 0  ;;  %vm154_vm1 = vcmp.gt.s32.totalorder %v153_v39, 0 }
  0x8e   :  { %v362_v46 = vshrl.u32 %v361_v43, 5  ;;  %v363_v47 = vand.u32 31, %v361_v43  ;;  %v155_v48 = vsel %vm154_vm1, %v153_v39, 0  ;;  %v7968_v1 = vadd.s32 1, %v6448_v45 }
  0x8f   :  { %v7956_v50 = vshrl.u32 %v155_v48, 5  ;;  %v157_v51 = vand.u32 31, %v155_v48 }
  0x90   :  { %v364_v54 = vsub.s32 32, %v363_v47  ;;  %v366_v56 = vshll.u32 %v10630_v55, %v363_v47  ;;  %v369_v58 = vshll.u32 %v10621_v57, %v363_v47  ;;  %v372_v60 = vshll.u32 %v10623_v59, %v363_v47 }
  0x91   :  { %v375_v62 = vshll.u32 %v10625_v61, %v363_v47  ;;  %v378_v0 = vshll.u32 %v10628_v63, %v363_v47  ;;  %vm381_vm2 = vcmp.lt.s32.totalorder %v362_v46, 1  ;;  %vm382_vm3 = vcmp.lt.s32.totalorder %v362_v46, 2 }
  0x92   :  { %v365_v2 = vshrl.u32 %v10630_v55, %v364_v54  ;;  %v367_v3 = vshrl.u32 %v10621_v57, %v364_v54  ;;  %v370_v4 = vshrl.u32 %v10623_v59, %v364_v54  ;;  %v373_v5 = vshrl.u32 %v10625_v61, %v364_v54 }
  0x93   :  { %v376_v6 = vshrl.u32 %v10628_v63, %v364_v54  ;;  %v379_v8 = vshrl.u32 %v10618_v7, %v364_v54  ;;  %vm383_vm4 = vcmp.lt.s32.totalorder %v362_v46, 3  ;;  %v158_v12 = vsub.s32 32, %v157_v51 }
  0x94   :  { %v368_v9 = vor.u32 %v367_v3, %v366_v56  ;;  %v371_v10 = vor.u32 %v370_v4, %v369_v58  ;;  %v374_v11 = vor.u32 %v373_v5, %v372_v60  ;;  %vm384_vm5 = vcmp.lt.s32.totalorder %v362_v46, 4 }
  0x95   :  { %v377_v13 = vor.u32 %v376_v6, %v375_v62  ;;  %v380_v14 = vor.u32 %v379_v8, %v378_v0  ;;  %v160_v15 = vshll.u32 %v10630_v55, %v157_v51  ;;  %v163_v28 = vshll.u32 %v10621_v57, %v157_v51 }
  0x96   :  { %v385_v16 = vsel %vm381_vm2, %v365_v2, %v368_v9  ;;  %v386_v18 = vsel %vm384_vm5, %v374_v11, 2102212464  ;;  %v389_v19 = vsel %vm381_vm2, %v368_v9, %v371_v10  ;;  %v393_v23 = vsel %vm381_vm2, %v371_v10, %v374_v11 }
  0x97   :  { %v387_v25 = vsel %vm383_vm4, %v371_v10, %v386_v18  ;;  %v390_v26 = vsel %vm384_vm5, %v377_v13, 920167782  ;;  %v394_v27 = vsel %vm384_vm5, %v380_v14, 1326507024  ;;  %v159_v32 = vshrl.u32 %v10630_v55, %v158_v12 }
  0x98   :  { %v391_v29 = vsel %vm383_vm4, %v374_v11, %v390_v26  ;;  %v395_v31 = vsel %vm383_vm4, %v377_v13, %v394_v27  ;;  %v161_v33 = vshrl.u32 %v10621_v57, %v158_v12  ;;  %v388_v34 = vsel %vm382_vm3, %v385_v16, %v387_v25 }
  0x99   :  { %v392_v35 = vsel %vm382_vm3, %v389_v19, %v391_v29  ;;  %v396_v36 = vsel %vm382_vm3, %v393_v23, %v395_v31  ;;  %v164_v37 = vshrl.u32 %v10623_v59, %v158_v12  ;;  %v166_v48 = vshll.u32 %v10623_v59, %v157_v51 }
  0x9a   :  { %v7991_v38 = vmul.u32.u64.low %v7952_v44, %v396_v36  ;;  %v7992_v39 = vmul.u32.u64.high %v7952_v44, %v396_v36, %v7991_v38  ;;  %v7995_v41 = vmul.u32.u64.low %v7952_v44, %v392_v35  ;;  %v7996_v43 = vmul.u32.u64.high %v7952_v44, %v392_v35, %v7995_v41 }
  0x9b   :  { %v162_v45 = vor.u32 %v161_v33, %v160_v15  ;;  %v165_v47 = vor.u32 %v164_v37, %v163_v28  ;;  %v167_v54 = vshrl.u32 %v10625_v61, %v158_v12  ;;  %v404_v46 = vmul.u32 %v7952_v44, %v388_v34 }
  0x9c   :  { %v169_v56 = vshll.u32 %v10625_v61, %v157_v51  ;;  %v170_v58 = vshrl.u32 %v10628_v63, %v158_v12  ;;  %v173_v60 = vshrl.u32 %v10618_v7, %v158_v12  ;;  %v172_v0 = vshll.u32 %v10628_v63, %v157_v51 }
  0x9d   :  { %v168_v62 = vor.u32 %v167_v54, %v166_v48  ;;  %vm175_vm6 = vcmp.lt.s32.totalorder %v7956_v50, 1  ;;  %vm176_vm7 = vcmp.lt.s32.totalorder %v7956_v50, 2  ;;  %vm406_vm8 = vc.u32 %v7992_v39, %v7995_v41 }
  0x9e   :  { %v407_v2 = vadd.s32 1, %v7996_v43  ;;  %v171_v3 = vor.u32 %v170_v58, %v169_v56  ;;  %vm177_vm9 = vcmp.lt.s32.totalorder %v7956_v50, 3  ;;  %v174_v44 = vor.u32 %v173_v60, %v172_v0 }
  0x9f   :  { %vm178_vm10 = vcmp.lt.s32.totalorder %v7956_v50, 4  ;;  %v179_v4 = vsel %vm175_vm6, %v159_v32, %v162_v45  ;;  %v183_v5 = vsel %vm175_vm6, %v162_v45, %v165_v47  ;;  %v187_v9 = vsel %vm175_vm6, %v165_v47, %v168_v62 }
  0xa0   :  { %v408_v6 = vsel %vm406_vm8, %v407_v2, %v7996_v43  ;;  %v180_v51 = vsel %vm178_vm10, %v168_v62, 2102212464  ;;  %v184_v8 = vsel %vm178_vm10, %v171_v3, 920167782  ;;  %v188_v13 = vsel %vm178_vm10, %v174_v44, 1326507024 }
  0xa1   :  { %v409_v10 = vadd.s32 %v408_v6, %v404_v46  ;;  %v181_v11 = vsel %vm177_vm9, %v165_v47, %v180_v51  ;;  %v185_v12 = vsel %vm177_vm9, %v168_v62, %v184_v8  ;;  %v189_v15 = vsel %vm177_vm9, %v171_v3, %v188_v13 }
  0xa2   :  { %v186_v14 = vsel %vm176_vm7, %v183_v5, %v185_v12  ;;  %vm463_vm11 = vcmp.gt.s32.totalorder %v7968_v1, 0  ;;  %v250_v16 = vshrl.u32 %v249_v53, 23  ;;  %v190_v19 = vsel %vm176_vm7, %v187_v9, %v189_v15 }
  0xa3   :  { %v410_v18 = vadd.s32 536870912, %v409_v10  ;;  %v8022_v23 = vmul.u32.u64.low %v7954_v49, %v186_v14  ;;  %v8023_v25 = vmul.u32.u64.high %v7954_v49, %v186_v14, %v8022_v23  ;;  %v182_v26 = vsel %vm176_vm7, %v179_v4, %v181_v11 }
  0xa4   :  { %v8029_v27 = vmul.u32.u64.low %v7954_v49, %v190_v19  ;;  %v8030_v28 = vmul.u32.u64.high %v7954_v49, %v190_v19, %v8029_v27  ;;  %v464_v29 = vsel %vm463_vm11, %v7968_v1, 0  ;;  %v460_v32 = vor.u32 8388608, %v7960_v52 }
  0xa5   :  { %v8033_v31 = vshrl.u32 %v410_v18, 30  ;;  %v466_v53 = vand.u32 31, %v464_v29  ;;  %v10615_v33 = vand.u32 2147483647, %v7950_v42  ;;  %v6440_v34 = vadd.s32 4294967169, %v250_v16 }
  0xa6   :  { %v198_v36 = vmul.u32 %v7954_v49, %v182_v26  ;;  %v201_v50 = vadd.s32 1, %v8023_v25  ;;  %vm200_vm12 = vc.u32 %v8030_v28, %v8022_v23  ;;  %v465_v38 = vshrl.u32 %v464_v29, 5 }
  0xa7   :  { %v412_v35 = vshll.u32 %v8033_v31, 30  ;;  %v467_v37 = vsub.s32 32, %v466_v53  ;;  %v469_v1 = vshll.u32 %v10630_v55, %v466_v53  ;;  %v472_v43 = vshll.u32 %v10621_v57, %v466_v53 }
  0xa8   :  { %v202_v52 = vsel %vm200_vm12, %v201_v50, %v8023_v25  ;;  %v475_v48 = vshll.u32 %v10623_v59, %v466_v53  ;;  %v478_v56 = vshll.u32 %v10625_v61, %v466_v53  ;;  %v481_v0 = vshll.u32 %v10628_v63, %v466_v53 }
  0xa9   :  { %v8044_v45 = vsub.s32 %v409_v10, %v412_v35  ;;  %v470_v47 = vshrl.u32 %v10621_v57, %v467_v37  ;;  %v203_v49 = vadd.s32 %v202_v52, %v198_v36  ;;  %v473_v54 = vshrl.u32 %v10623_v59, %v467_v37 }
  0xaa   :  { %v476_v46 = vshrl.u32 %v10625_v61, %v467_v37  ;;  %v479_v62 = vshrl.u32 %v10628_v63, %v467_v37  ;;  %v482_v4 = vshrl.u32 %v10618_v7, %v467_v37  ;;  %v500_v51 = vshll.u32 %v460_v32, 8 }
  0xab   :  { %v415_v58 = vsub.s32 0, %v8044_v45  ;;  %v471_v60 = vor.u32 %v470_v47, %v469_v1  ;;  %v204_v2 = vadd.s32 536870912, %v203_v49  ;;  %v474_v3 = vor.u32 %v473_v54, %v472_v43 }
  0xac   :  { %v477_v44 = vor.u32 %v476_v46, %v475_v48  ;;  %v480_v6 = vor.u32 %v479_v62, %v478_v56  ;;  %v256_v8 = vadd.s32 1, %v6440_v34  ;;  %v483_v10 = vor.u32 %v482_v4, %v481_v0 }
  0xad   :  { %v6445_v5 = vmin.u32 %v415_v58, %v8044_v45  ;;  %v8057_v9 = vshrl.u32 %v204_v2, 30  ;;  %vm484_vm13 = vcmp.lt.s32.totalorder %v465_v38, 1  ;;  %vm487_vm14 = vcmp.lt.s32.totalorder %v465_v38, 4 }
  0xae   :  { %v468_v12 = vshrl.u32 %v10630_v55, %v467_v37  ;;  %v489_v13 = vsel %vm487_vm14, %v477_v44, 2102212464  ;;  %v492_v14 = vsel %vm484_vm13, %v471_v60, %v474_v3  ;;  %vm486_vm15 = vcmp.lt.s32.totalorder %v465_v38, 3 }
  0xaf   :  { %v417_v11 = vclz %v6445_v5  ;;  %v206_v15 = vshll.u32 %v8057_v9, 30  ;;  %v493_v16 = vsel %vm487_vm14, %v480_v6, 920167782  ;;  %v496_v18 = vsel %vm484_vm13, %v474_v3, %v477_v44 }
  0xb0   :  { %vm485_vm0 = vcmp.lt.s32.totalorder %v465_v38, 2  ;;  %v488_v19 = vsel %vm484_vm13, %v468_v12, %v471_v60  ;;  %v494_v25 = vsel %vm486_vm15, %v477_v44, %v493_v16  ;;  %v497_v26 = vsel %vm487_vm14, %v483_v10, 1326507024  ;;  %v69_v38 = vpop.permute.xlu1 %68 }
  0xb1   :  { %v8061_v27 = vsub.s32 %v203_v49, %v206_v15  ;;  %v490_v29 = vsel %vm486_vm15, %v474_v3, %v489_v13  ;;  %v495_v53 = vsel %vm485_vm0, %v492_v14, %v494_v25  ;;  %v498_v32 = vsel %vm486_vm15, %v480_v6, %v497_v26 }
  0xb2   :  { %v6446_v34 = vadd.s32 4294967294, %v417_v11  ;;  %v499_v35 = vsel %vm485_vm0, %v496_v18, %v498_v32  ;;  %v8063_v36 = vmul.u32.u64.low %v500_v51, %v495_v53  ;;  %v8064_v50 = vmul.u32.u64.high %v500_v51, %v495_v53, %v8063_v36 }
  0xb3   :  { %v209_v37 = vsub.s32 0, %v8061_v27  ;;  %v8068_v1 = vmul.u32.u64.low %v500_v51, %v499_v35  ;;  %v8069_v43 = vmul.u32.u64.high %v500_v51, %v499_v35, %v8068_v1  ;;  %v491_v52 = vsel %vm485_vm0, %v488_v19, %v490_v29 }
  0xb4   :  { %vm257_vm1 = vcmp.gt.s32.totalorder %v256_v8, 0  ;;  %vm6447_vm2 = vcmp.lt.s32.totalorder %v6446_v34, 0  ;;  %v510_v49 = vadd.s32 1, %v8064_v50  ;;  %v253_v54 = vand.u32 8388607, %v10615_v33 }
  0xb5   :  { %v6437_v47 = vmin.u32 %v209_v37, %v8061_v27  ;;  %v258_v48 = vsel %vm257_vm1, %v256_v8, 0  ;;  %v8076_v46 = vmul.f32 %v7928_v17, %v69_v38  ;;  %v507_v58 = vmul.u32 %v500_v51, %v491_v52 }
  0xb6   :  { %vm509_vm3 = vc.u32 %v8069_v43, %v8063_v36  ;;  %v260_v60 = vand.u32 31, %v258_v48  ;;  %v8081_v0 = vsel %vm6447_vm2, 0, %v6446_v34  ;;  %v405_v44 = vadd.s32 %v7995_v41, %v7992_v39 }
  0xb7   :  { %10701 = vst [vmem:[#allocation5_spill] sm:$0xff] %v8076_v46  ;;  %v211_v56 = vclz %v6437_v47  ;;  %v511_v62 = vsel %vm509_vm3, %v510_v49, %v8064_v50  ;;  %v254_v6 = vor.u32 8388608, %v253_v54  ;;  %v10611_v51 = vand.u32 2147483647, %v8076_v46 }
  0xb8   :  { %v512_v2 = vadd.s32 %v511_v62, %v507_v58  ;;  %v261_v3 = vsub.s32 32, %v260_v60  ;;  %v421_v10 = vsub.s32 32, %v8081_v0  ;;  %v661_v13 = vand.u32 2139095040, %v8076_v46 }
  0xb9   :  { %v6438_v4 = vadd.s32 4294967294, %v211_v56  ;;  %v263_v15 = vshll.u32 %v10630_v55, %v260_v60  ;;  %v266_v39 = vshll.u32 %v10621_v57, %v260_v60  ;;  %v269_v41 = vshll.u32 %v10623_v59, %v260_v60 }
  0xba   :  { %v513_v5 = vadd.s32 536870912, %v512_v2  ;;  %v264_v8 = vshrl.u32 %v10621_v57, %v261_v3  ;;  %v267_v11 = vshrl.u32 %v10623_v59, %v261_v3  ;;  %v270_v12 = vshrl.u32 %v10625_v61, %v261_v3 }
  0xbb   :  { %v422_v16 = vshll.u32 %v8044_v45, %v8081_v0  ;;  %v425_v18 = vsub.s32 4294967266, %v8081_v0  ;;  %vm6439_vm4 = vcmp.lt.s32.totalorder %v6438_v4, 0  ;;  %v259_v19 = vshrl.u32 %v258_v48, 5 }
  0xbc   :  { %v8091_v14 = vshrl.u32 %v513_v5, 30  ;;  %v265_v26 = vor.u32 %v264_v8, %v263_v15  ;;  %v268_v29 = vor.u32 %v267_v11, %v266_v39  ;;  %v271_v53 = vor.u32 %v270_v12, %v269_v41 }
  0xbd   :  { %v272_v32 = vshll.u32 %v10625_v61, %v260_v60  ;;  %v273_v34 = vshrl.u32 %v10628_v63, %v261_v3  ;;  %v275_v35 = vshll.u32 %v10628_v63, %v260_v60  ;;  %v276_v50 = vshrl.u32 %v10618_v7, %v261_v3 }
  0xbe   :  { %v515_v25 = vshll.u32 %v8091_v14, 30  ;;  %v423_v37 = vshrl.u32 %v405_v44, %v421_v10  ;;  %v294_v45 = vshll.u32 %v254_v6, 8  ;;  %v662_v38 = vshrl.u32 %v661_v13, 23 }
  0xbf   :  { %v426_v52 = vadd.s32 127, %v425_v18  ;;  %v8106_v47 = vsel %vm6439_vm4, 0, %v6438_v4  ;;  %v274_v48 = vor.u32 %v273_v34, %v272_v32  ;;  %v277_v49 = vor.u32 %v276_v50, %v275_v35  ;;  %v64_v50 = vpop.permute.xlu0 %63 }
  0xc0   :  { %v8104_v1 = vsub.s32 %v512_v2, %v515_v25  ;;  %v262_v56 = vshrl.u32 %v10630_v55, %v261_v3  ;;  %vm278_vm5 = vcmp.lt.s32.totalorder %v259_v19, 1  ;;  %vm281_vm6 = vcmp.lt.s32.totalorder %v259_v19, 4 }
  0xc1   :  { %vm280_vm7 = vcmp.lt.s32.totalorder %v259_v19, 3  ;;  %v283_v58 = vsel %vm281_vm6, %v271_v53, 2102212464  ;;  %v286_v60 = vsel %vm278_vm5, %v265_v26, %v268_v29  ;;  %v287_v62 = vsel %vm281_vm6, %v274_v48, 920167782 }
  0xc2   :  { %v518_v54 = vsub.s32 0, %v8104_v1  ;;  %v219_v0 = vsub.s32 4294967266, %v8106_v47  ;;  %vm279_vm8 = vcmp.lt.s32.totalorder %v259_v19, 2  ;;  %v288_v44 = vsel %vm280_vm7, %v271_v53, %v287_v62 }
  0xc3   :  { %v427_v4 = vshll.u32 %v426_v52, 23  ;;  %v289_v5 = vsel %vm279_vm8, %v286_v60, %v288_v44  ;;  %v290_v6 = vsel %vm278_vm5, %v268_v29, %v271_v53  ;;  %v291_v8 = vsel %vm281_vm6, %v277_v49, 1326507024 }
  0xc4   :  { %v6449_v2 = vmin.u32 %v518_v54, %v8104_v1  ;;  %v282_v11 = vsel %vm278_vm5, %v262_v56, %v265_v26  ;;  %v284_v3 = vsel %vm280_vm7, %v268_v29, %v283_v58  ;;  %v292_v12 = vsel %vm280_vm7, %v274_v48, %v291_v8 }
  0xc5   :  { %v293_v13 = vsel %vm279_vm8, %v290_v6, %v292_v12  ;;  %v8114_v15 = vmul.u32.u64.low %v294_v45, %v289_v5  ;;  %v8115_v39 = vmul.u32.u64.high %v294_v45, %v289_v5, %v8114_v15  ;;  %v6456_v41 = vadd.s32 4294967169, %v662_v38 }
  0xc6   :  { %v520_v10 = vclz %v6449_v2  ;;  %v220_v18 = vadd.s32 127, %v219_v0  ;;  %v8118_v32 = vmul.u32.u64.low %v294_v45, %v293_v13  ;;  %v8119_v34 = vmul.u32.u64.high %v294_v45, %v293_v13, %v8118_v32 }
  0xc7   :  { %v285_v35 = vsel %vm279_vm8, %v282_v11, %v284_v3  ;;  %v665_v53 = vand.u32 8388607, %v10611_v51  ;;  %v668_v26 = vadd.s32 1, %v6456_v41  ;;  %v8124_v29 = vor.u32 %v423_v37, %v422_v16  ;;  %v79_v37 = vpop.permute.xlu1 %78 }
  0xc8   :  { %v6450_v25 = vadd.s32 4294967294, %v520_v10  ;;  %v8126_v52 = vor.u32 4788187, %v427_v4  ;;  %v304_v38 = vadd.s32 1, %v8115_v39  ;;  %v215_v49 = vsub.s32 32, %v8106_v47 }
  0xc9   :  { %vm669_vm10 = vcmp.gt.s32.totalorder %v668_v26, 0  ;;  %v221_v54 = vshll.u32 %v220_v18, 23  ;;  %v301_v19 = vmul.u32 %v294_v45, %v285_v35  ;;  %vm303_vm11 = vc.u32 %v8119_v34, %v8114_v15 }
  0xca   :  { %vm6451_vm9 = vcmp.lt.s32.totalorder %v6450_v25, 0  ;;  %v666_v56 = vor.u32 8388608, %v665_v53  ;;  %v670_v58 = vsel %vm669_vm10, %v668_v26, 0  ;;  %v8135_v16 = vmul.f32 %v7928_v17, %v64_v50 }
  0xcb   :  { %v8128_v48 = vsel %vm6451_vm9, 0, %v6450_v25  ;;  %v431_v60 = vcvt.s32.f32 %v8124_v29  ;;  %v199_v62 = vadd.s32 %v8022_v23, %v8030_v28  ;;  %v305_v2 = vsel %vm303_vm11, %v304_v38, %v8115_v39 }
  0xcc   :  { %v528_v0 = vsub.s32 4294967266, %v8128_v48  ;;  %v429_v45 = vand.u32 2147483647, %v8126_v52  ;;  %v216_v44 = vshll.u32 %v8061_v27, %v8106_v47  ;;  %v306_v4 = vadd.s32 %v305_v2, %v301_v19 }
  0xcd   :  { %v672_v5 = vand.u32 31, %v670_v58  ;;  %v217_v6 = vshrl.u32 %v199_v62, %v215_v49  ;;  %v8145_v8 = vor.u32 4788187, %v221_v54  ;;  %v524_v10 = vsub.s32 32, %v8128_v48 }
  0xce   :  { %v8149_v11 = vmul.f32 %v7928_v17, %v79_v37  ;;  %v307_v23 = vadd.s32 536870912, %v306_v4  ;;  %v8151_v3 = vshll.u32 %v666_v56, 8  ;;  %v10612_v12 = vand.u32 2147483647, %v8135_v16 }
  0xcf   :  { %v673_v28 = vsub.s32 32, %v672_v5  ;;  %v8154_v13 = vadd.s32 127, %v528_v0  ;;  %v671_v39 = vshrl.u32 %v670_v58, 5  ;;  %v675_v27 = vshll.u32 %v10630_v55, %v672_v5 }
  0xd0   :  { %10702 = vst [vmem:[#allocation6_spill] sm:$0xff] %v8149_v11  ;;  %v678_v47 = vshll.u32 %v10621_v57, %v672_v5  ;;  %v8158_v41 = vshrl.u32 %v307_v23, 30  ;;  %v681_v32 = vshll.u32 %v10623_v59, %v672_v5  ;;  %v684_v53 = vshll.u32 %v10625_v61, %v672_v5 }
  0xd1   :  { %v676_v18 = vshrl.u32 %v10621_v57, %v673_v28  ;;  %v679_v25 = vshrl.u32 %v10623_v59, %v673_v28  ;;  %v682_v35 = vshrl.u32 %v10625_v61, %v673_v28  ;;  %v685_v26 = vshrl.u32 %v10628_v63, %v673_v28 }
  0xd2   :  { %v687_v29 = vshll.u32 %v10628_v63, %v672_v5  ;;  %v309_v50 = vshll.u32 %v8158_v41, 30  ;;  %v688_v49 = vshrl.u32 %v10618_v7, %v673_v28  ;;  %vm690_vm12 = vcmp.lt.s32.totalorder %v671_v39, 1 }
  0xd3   :  { %v677_v52 = vor.u32 %v676_v18, %v675_v27  ;;  %v680_v38 = vor.u32 %v679_v25, %v678_v47  ;;  %v683_v54 = vor.u32 %v682_v35, %v681_v32  ;;  %v686_v19 = vor.u32 %v685_v26, %v684_v53 }
  0xd4   :  { %v558_v56 = vand.u32 2139095040, %v8135_v16  ;;  %v8170_v58 = vsub.s32 %v306_v4, %v309_v50  ;;  %v674_v37 = vshrl.u32 %v10630_v55, %v673_v28  ;;  %v689_v62 = vor.u32 %v688_v49, %v687_v29 }
  0xd5   :  { %vm693_vm13 = vcmp.lt.s32.totalorder %v671_v39, 4  ;;  %vm692_vm14 = vcmp.lt.s32.totalorder %v671_v39, 3  ;;  %v698_v2 = vsel %vm690_vm12, %v677_v52, %v680_v38  ;;  %vm691_vm15 = vcmp.lt.s32.totalorder %v671_v39, 2 }
  0xd6   :  { %v695_v0 = vsel %vm693_vm13, %v683_v54, 2102212464  ;;  %v699_v5 = vsel %vm693_vm13, %v686_v19, 920167782  ;;  %v312_v23 = vsub.s32 0, %v8170_v58  ;;  %v702_v47 = vsel %vm690_vm12, %v680_v38, %v683_v54 }
  0xd7   :  { %v700_v27 = vsel %vm692_vm14, %v683_v54, %v699_v5  ;;  %v694_v18 = vsel %vm690_vm12, %v674_v37, %v677_v52  ;;  %v696_v25 = vsel %vm692_vm14, %v680_v38, %v695_v0  ;;  %v703_v35 = vsel %vm693_vm13, %v689_v62, 1326507024 }
  0xd8   :  { %v701_v32 = vsel %vm691_vm15, %v698_v2, %v700_v27  ;;  %v6441_v4 = vmin.u32 %v312_v23, %v8170_v58  ;;  %v704_v53 = vsel %vm692_vm14, %v686_v19, %v703_v35  ;;  %v218_v29 = vor.u32 %v217_v6, %v216_v44  ;;  %v74_v35 = vpop.permute.xlu0 %73 }
  0xd9   :  { %v8177_v28 = vmul.u32.u64.low %v8151_v3, %v701_v32  ;;  %v8178_v26 = vmul.u32.u64.high %v8151_v3, %v701_v32, %v8177_v28  ;;  %v508_v50 = vadd.s32 %v8063_v36, %v8069_v43  ;;  %v705_v49 = vsel %vm691_vm15, %v702_v47, %v704_v53 }
  0xda   :  { %v559_v54 = vshrl.u32 %v558_v56, 23  ;;  %v8184_v52 = vmul.f32 %v431_v60, %v429_v45  ;;  %v314_v38 = vclz %v6441_v4  ;;  %v223_v19 = vand.u32 2147483647, %v8145_v8 }
  0xdb   :  { %v8187_v37 = vmul.u32.u64.low %v8151_v3, %v705_v49  ;;  %v8188_v62 = vmul.u32.u64.high %v8151_v3, %v705_v49, %v8187_v37  ;;  %v697_v0 = vsel %vm691_vm15, %v694_v18, %v696_v25  ;;  %v867_v44 = vand.u32 2139095040, %v8149_v11 }
  0xdc   :  { %v6452_v2 = vadd.s32 4294967169, %v559_v54  ;;  %v526_v6 = vshrl.u32 %v508_v50, %v524_v10  ;;  %v530_v36 = vshll.u32 %v8154_v13, 23  ;;  %v716_v43 = vadd.s32 1, %v8178_v26 }
  0xdd   :  { %v562_v60 = vand.u32 8388607, %v10612_v12  ;;  %v225_v45 = vcvt.s32.f32 %v218_v29  ;;  %v10610_v5 = vand.u32 2147483647, %v8149_v11  ;;  %v868_v23 = vshrl.u32 %v867_v44, 23 }
  0xde   :  { %v565_v56 = vadd.s32 1, %v6452_v2  ;;  %v525_v8 = vshll.u32 %v8104_v1, %v8128_v48  ;;  %v6442_v39 = vadd.s32 4294967294, %v314_v38  ;;  %v713_v27 = vmul.u32 %v8151_v3, %v697_v0 }
  0xdf   :  { %vm715_vm0 = vc.u32 %v8188_v62, %v8177_v28  ;;  %v8203_v10 = vmul.f32 %v225_v45, %v223_v19  ;;  %v8208_v18 = vor.u32 4788187, %v530_v36  ;;  %v563_v32 = vor.u32 8388608, %v562_v60 }
  0xe0   :  { %v717_v13 = vsel %vm715_vm0, %v716_v43, %v8178_v26  ;;  %vm566_vm1 = vcmp.gt.s32.totalorder %v565_v56, 0  ;;  %v8206_v47 = vor.u32 %v526_v6, %v525_v8  ;;  %v6464_v1 = vadd.s32 4294967169, %v868_v23 }
  0xe1   :  { %v718_v25 = vadd.s32 %v717_v13, %v713_v27  ;;  %v567_v4 = vsel %vm566_vm1, %v565_v56, 0  ;;  %v8212_v48 = vand.u32 8388607, %v10610_v5  ;;  %v433_v3 = vxor.u32 2147483648, %v8184_v52 }
  0xe2   :  { %vm6443_vm2 = vcmp.lt.s32.totalorder %v6442_v39, 0  ;;  %v227_v26 = vxor.u32 2147483648, %v8203_v10  ;;  %v8218_v29 = vadd.s32 %v8114_v15, %v8119_v34  ;;  %v569_v50 = vand.u32 31, %v567_v4 }
  0xe3   :  { %v719_v53 = vadd.s32 536870912, %v718_v25  ;;  %v8221_v49 = vmul.f32 %v7928_v17, %v74_v35  ;;  %v532_v54 = vand.u32 2147483647, %v8208_v18  ;;  %v534_v38 = vcvt.s32.f32 %v8206_v47 }
  0xe4   :  { %v8227_v19 = vshll.u32 %v563_v32, 8  ;;  %v8229_v0 = vsel %vm6443_vm2, 0, %v6442_v39  ;;  %v570_v2 = vsub.s32 32, %v569_v50  ;;  %v872_v44 = vor.u32 8388608, %v8212_v48 }
  0xe5   :  { %v8225_v37 = vshrl.u32 %v719_v53, 30  ;;  %v874_v6 = vadd.s32 1, %v6464_v1  ;;  %v568_v34 = vshrl.u32 %v567_v4, 5  ;;  %v572_v17 = vshll.u32 %v10630_v55, %v569_v50 }
  0xe6   :  { %v575_v36 = vshll.u32 %v10621_v57, %v569_v50  ;;  %v573_v43 = vshrl.u32 %v10621_v57, %v570_v2  ;;  %v576_v60 = vshrl.u32 %v10623_v59, %v570_v2  ;;  %v578_v45 = vshll.u32 %v10623_v59, %v569_v50 }
  0xe7   :  { %10703 = vst [vmem:[#allocation7_spill] sm:$0xff] %v8225_v37  ;;  %v721_v15 = vshll.u32 %v8225_v37, 30  ;;  %v579_v56 = vshrl.u32 %v10625_v61, %v570_v2  ;;  %v581_v8 = vshll.u32 %v10625_v61, %v569_v50  ;;  %v582_v39 = vshrl.u32 %v10628_v63, %v570_v2 }
  0xe8   :  { %v584_v27 = vshll.u32 %v10628_v63, %v569_v50  ;;  %vm351_vm3 = vcmp.lt.s32.totalorder %v7931_v20, 0  ;;  %vm145_vm4 = vcmp.lt.s32.totalorder %v7934_v21, 0  ;;  %v574_v13 = vor.u32 %v573_v43, %v572_v17 }
  0xe9   :  { %v8239_v23 = vsub.s32 %v718_v25, %v721_v15  ;;  %v577_v47 = vor.u32 %v576_v60, %v575_v36  ;;  %v580_v18 = vor.u32 %v579_v56, %v578_v45  ;;  %v585_v32 = vshrl.u32 %v10618_v7, %v570_v2 }
  0xea   :  { %v318_v35 = vsub.s32 32, %v8229_v0  ;;  %v322_v25 = vsub.s32 4294967266, %v8229_v0  ;;  %v583_v1 = vor.u32 %v582_v39, %v581_v8  ;;  %vm587_vm5 = vcmp.lt.s32.totalorder %v568_v34, 1 }
  0xeb   :  { %v724_v4 = vsub.s32 0, %v8239_v23  ;;  %v586_v48 = vor.u32 %v585_v32, %v584_v27  ;;  %vm590_vm6 = vcmp.lt.s32.totalorder %v568_v34, 4  ;;  %vm875_vm7 = vcmp.gt.s32.totalorder %v874_v6, 0 }
  0xec   :  { %v571_v50 = vshrl.u32 %v10630_v55, %v570_v2  ;;  %v592_v15 = vsel %vm590_vm6, %v580_v18, 2102212464  ;;  %v595_v17 = vsel %vm587_vm5, %v574_v13, %v577_v47  ;;  %vm589_vm8 = vcmp.lt.s32.totalorder %v568_v34, 3 }
  0xed   :  { %v6457_v53 = vmin.u32 %v724_v4, %v8239_v23  ;;  %v596_v36 = vsel %vm590_vm6, %v583_v1, 920167782  ;;  %v599_v43 = vsel %vm587_vm5, %v577_v47, %v580_v18  ;;  %v600_v60 = vsel %vm590_vm6, %v586_v48, 1326507024 }
  0xee   :  { %vm588_vm9 = vcmp.lt.s32.totalorder %v568_v34, 2  ;;  %v591_v45 = vsel %vm587_vm5, %v571_v50, %v574_v13  ;;  %v597_v56 = vsel %vm589_vm8, %v580_v18, %v596_v36  ;;  %v764_v5 = vand.u32 2139095040, %v8221_v49 }
  0xef   :  { %v593_v8 = vsel %vm589_vm8, %v577_v47, %v592_v15  ;;  %v598_v39 = vsel %vm588_vm9, %v595_v17, %v597_v56  ;;  %v601_v27 = vsel %vm589_vm8, %v583_v1, %v600_v60  ;;  %v876_v32 = vsel %vm875_vm7, %v874_v6, 0 }
  0xf0   :  { %v726_v4 = vclz %v6457_v53  ;;  %v602_v2 = vsel %vm588_vm9, %v599_v43, %v601_v27  ;;  %v8257_v51 = vmul.u32.u64.low %v8227_v19, %v598_v39  ;;  %v8258_v12 = vmul.u32.u64.high %v8227_v19, %v598_v39, %v8257_v51 }
  0xf1   :  { %v323_v48 = vadd.s32 127, %v322_v25  ;;  %v8262_v13 = vmul.u32.u64.low %v8227_v19, %v602_v2  ;;  %v8263_v18 = vmul.u32.u64.high %v8227_v19, %v602_v2, %v8262_v13  ;;  %v878_v50 = vand.u32 31, %v876_v32 }
  0xf2   :  { %v8270_v6 = vsel %vm351_vm3, %v433_v3, %v8184_v52  ;;  %v8275_v47 = vsel %vm145_vm4, %v227_v26, %v8203_v10  ;;  %v8277_v1 = vmul.f32 %v534_v38, %v532_v54  ;;  %v594_v25 = vsel %vm588_vm9, %v591_v45, %v593_v8 }
  0xf3   :  { %v319_v53 = vshll.u32 %v8170_v58, %v8229_v0  ;;  %v320_v15 = vshrl.u32 %v8218_v29, %v318_v35  ;;  %v879_v17 = vsub.s32 32, %v878_v50  ;;  %v10613_v36 = vand.u32 2147483647, %v8221_v49 }
  0xf4   :  { %v6458_v43 = vadd.s32 4294967294, %v726_v4  ;;  %v613_v52 = vadd.s32 1, %v8258_v12  ;;  %v8285_v3 = vshll.u32 %v872_v44, 8  ;;  %v765_v60 = vshrl.u32 %v764_v5, 23 }
  0xf5   :  { %v324_v10 = vshll.u32 %v323_v48, 23  ;;  %v610_v26 = vmul.u32 %v8227_v19, %v594_v25  ;;  %vm612_vm10 = vc.u32 %v8263_v18, %v8257_v51  ;;  %v882_v54 = vshrl.u32 %v10621_v57, %v879_v17 }
  0xf6   :  { %v614_v58 = vsel %vm612_vm10, %v613_v52, %v8258_v12  ;;  %v881_v29 = vshll.u32 %v10630_v55, %v878_v50  ;;  %v884_v38 = vshll.u32 %v10621_v57, %v878_v50  ;;  %v885_v0 = vshrl.u32 %v10623_v59, %v879_v17 }
  0xf7   :  { %v8295_v34 = vor.u32 %v320_v15, %v319_v53  ;;  %v615_v44 = vadd.s32 %v614_v58, %v610_v26  ;;  %v887_v5 = vshll.u32 %v10623_v59, %v878_v50  ;;  %v888_v19 = vshrl.u32 %v10625_v61, %v879_v17 }
  0xf8   :  { %vm6459_vm11 = vcmp.lt.s32.totalorder %v6458_v43, 0  ;;  %v877_v35 = vshrl.u32 %v876_v32, 5  ;;  %v883_v45 = vor.u32 %v882_v54, %v881_v29  ;;  %v886_v56 = vor.u32 %v885_v0, %v884_v38 }
  0xf9   :  { %v616_v8 = vadd.s32 536870912, %v615_v44  ;;  %v889_v39 = vor.u32 %v888_v19, %v887_v5  ;;  %v890_v12 = vshll.u32 %v10625_v61, %v878_v50  ;;  %v891_v27 = vshrl.u32 %v10628_v63, %v879_v17 }
  0xfa   :  { %v325_v4 = vor.u32 4788187, %v324_v10  ;;  %v893_v2 = vshll.u32 %v10628_v63, %v878_v50  ;;  %v894_v48 = vshrl.u32 %v10618_v7, %v879_v17  ;;  %v6460_v13 = vadd.s32 4294967169, %v765_v60 }
  0xfb   :  { %v8303_v25 = vsel %vm6459_vm11, 0, %v6458_v43  ;;  %v8305_v53 = vshrl.u32 %v616_v8, 30  ;;  %v880_v32 = vshrl.u32 %v10630_v55, %v879_v17  ;;  %v892_v15 = vor.u32 %v891_v27, %v890_v12 }
  0xfc   :  { %vm454_vm12 = vcmp.lt.s32.totalorder %v7945_v30, 0  ;;  %v895_v52 = vor.u32 %v894_v48, %v893_v2  ;;  %vm896_vm13 = vcmp.lt.s32.totalorder %v877_v35, 1  ;;  %vm898_vm14 = vcmp.lt.s32.totalorder %v877_v35, 3 }
  0xfd   :  { %10704 = vst [vmem:[#allocation8_spill] sm:$0xff] %v8305_v53  ;;  %vm899_vm15 = vcmp.lt.s32.totalorder %v877_v35, 4  ;;  %v618_v10 = vshll.u32 %v8305_v53, 30  ;;  %v904_v50 = vsel %vm896_vm13, %v883_v45, %v886_v56  ;;  %v734_v60 = vsub.s32 4294967266, %v8303_v25 }
  0xfe   :  { %v901_v26 = vsel %vm899_vm15, %v889_v39, 2102212464  ;;  %v905_v54 = vsel %vm899_vm15, %v892_v15, 920167782  ;;  %vm897_vm0 = vcmp.lt.s32.totalorder %v877_v35, 2  ;;  %v908_v58 = vsel %vm896_vm13, %v886_v56, %v889_v39 }
  0xff   :  { %v906_v43 = vsel %vm898_vm14, %v889_v39, %v905_v54  ;;  %v8311_v29 = vsub.s32 %v615_v44, %v618_v10  ;;  %v900_v17 = vsel %vm896_vm13, %v880_v32, %v883_v45  ;;  %v909_v0 = vsel %vm899_vm15, %v895_v52, 1326507024 }
 0x100   :  { %v907_v38 = vsel %vm897_vm0, %v904_v50, %v906_v43  ;;  %v902_v5 = vsel %vm898_vm14, %v886_v56, %v901_v26  ;;  %v910_v19 = vsel %vm898_vm14, %v892_v15, %v909_v0  ;;  %v536_v27 = vxor.u32 2147483648, %v8277_v1  ;;  %v89_v15 = vpop.permute.xlu1 %88 }
 0x101   :  { %v8315_v8 = vmul.u32.u64.low %v8285_v3, %v907_v38  ;;  %v8316_v12 = vmul.u32.u64.high %v8285_v3, %v907_v38, %v8315_v8  ;;  %v621_v2 = vsub.s32 0, %v8311_v29  ;;  %v911_v48 = vsel %vm897_vm0, %v908_v58, %v910_v19 }
 0x102   :  { %v771_v39 = vadd.s32 1, %v6460_v13  ;;  %v326_v44 = vand.u32 2147483647, %v325_v4  ;;  %v8323_v45 = vmul.u32.u64.low %v8285_v3, %v911_v48  ;;  %v8324_v32 = vmul.u32.u64.high %v8285_v3, %v911_v48, %v8323_v45 }
 0x103   :  { %v768_v56 = vand.u32 8388607, %v10613_v36  ;;  %v328_v52 = vcvt.s32.f32 %v8295_v34  ;;  %v6453_v10 = vmin.u32 %v621_v2, %v8311_v29  ;;  %v903_v26 = vsel %vm897_vm0, %v900_v17, %v902_v5  ;;  %v8341_v34 = vld [vmem:[%s10604_s1] ss:$0 sm:$0xff] }
 0x104   :  { %vm772_vm1 = vcmp.gt.s32.totalorder %v771_v39, 0  ;;  %v730_v50 = vsub.s32 32, %v8303_v25  ;;  %v735_v54 = vadd.s32 127, %v734_v60  ;;  %v922_v4 = vadd.s32 1, %v8316_v12 }
 0x105   :  { %v773_v13 = vsel %vm772_vm1, %v771_v39, 0  ;;  %v8336_v43 = vsel %vm454_vm12, %v536_v27, %v8277_v1  ;;  %v623_v58 = vclz %v6453_v10  ;;  %v8344_v35 = vmul.f32 %v8341_v34, %v89_v15 }
 0x106   :  { %10705 = vst [vmem:[#allocation9_spill] sm:$0xff] %v8336_v43  ;;  %v775_v38 = vand.u32 31, %v773_v13  ;;  %v8346_v17 = vmul.f32 %v328_v52, %v326_v44  ;;  %v714_v60 = vadd.s32 %v8177_v28, %v8188_v62  ;;  %v919_v0 = vmul.u32 %v8285_v3, %v903_v26 }
 0x107   :  { %10706 = vst [vmem:[#allocation10_spill] sm:$0xff] %v8344_v35  ;;  %vm921_vm2 = vc.u32 %v8324_v32, %v8315_v8  ;;  %v6454_v1 = vadd.s32 4294967294, %v623_v58  ;;  %v769_v19 = vor.u32 8388608, %v768_v56  ;;  %v731_v2 = vshll.u32 %v8239_v23, %v8303_v25 }
 0x108   :  { %v923_v5 = vsel %vm921_vm2, %v922_v4, %v8316_v12  ;;  %v776_v27 = vsub.s32 32, %v775_v38  ;;  %v732_v48 = vshrl.u32 %v714_v60, %v730_v50  ;;  %v736_v39 = vshll.u32 %v735_v54, 23 }
 0x109   :  { %v924_v44 = vadd.s32 %v923_v5, %v919_v0  ;;  %v778_v45 = vshll.u32 %v10630_v55, %v775_v38  ;;  %v781_v62 = vshll.u32 %v10621_v57, %v775_v38  ;;  %v784_v52 = vshll.u32 %v10623_v59, %v775_v38 }
 0x10a   :  { %v779_v28 = vshrl.u32 %v10621_v57, %v776_v27  ;;  %v782_v3 = vshrl.u32 %v10623_v59, %v776_v27  ;;  %v785_v12 = vshrl.u32 %v10625_v61, %v776_v27  ;;  %v788_v56 = vshrl.u32 %v10628_v63, %v776_v27 }
 0x10b   :  { %v925_v15 = vadd.s32 536870912, %v924_v44  ;;  %vm6455_vm5 = vcmp.lt.s32.totalorder %v6454_v1, 0  ;;  %v774_v23 = vshrl.u32 %v773_v13, 5  ;;  %v787_v25 = vshll.u32 %v10625_v61, %v775_v38 }
 0x10c   :  { %v1073_v10 = vand.u32 2139095040, %v8344_v35  ;;  %v780_v50 = vor.u32 %v779_v28, %v778_v45  ;;  %v783_v54 = vor.u32 %v782_v3, %v781_v62  ;;  %v786_v4 = vor.u32 %v785_v12, %v784_v52 }
 0x10d   :  { %v8365_v26 = vshrl.u32 %v925_v15, 30  ;;  %v789_v58 = vor.u32 %v788_v56, %v787_v25  ;;  %v790_v60 = vshll.u32 %v10628_v63, %v775_v38  ;;  %v791_v0 = vshrl.u32 %v10618_v7, %v776_v27 }
 0x10e   :  { %v10620_v5 = vand.u32 2147483647, %v8344_v35  ;;  %v8370_v36 = vor.u32 %v732_v48, %v731_v2  ;;  %v8372_v40 = vor.u32 4788187, %v736_v39  ;;  %v626_v13 = vsel %vm6455_vm5, 0, %v6454_v1 }
 0x10f   :  { %10707 = vst [vmem:[#allocation11_spill] sm:$0xff] %v8365_v26  ;;  %v927_v33 = vshll.u32 %v8365_v26, 30  ;;  %v792_v22 = vor.u32 %v791_v0, %v790_v60  ;;  %vm793_vm6 = vcmp.lt.s32.totalorder %v774_v23, 1  ;;  %vm796_vm7 = vcmp.lt.s32.totalorder %v774_v23, 4 }
 0x110   :  { %v809_v45 = vshll.u32 %v769_v19, 8  ;;  %v798_v62 = vsel %vm796_vm7, %v786_v4, 2102212464  ;;  %v801_v38 = vsel %vm793_vm6, %v780_v50, %v783_v54  ;;  %v1074_v3 = vshrl.u32 %v1073_v10, 23 }
 0x111   :  { %v8375_v28 = vsub.s32 %v924_v44, %v927_v33  ;;  %v631_v15 = vsub.s32 4294967266, %v626_v13  ;;  %v777_v52 = vshrl.u32 %v10630_v55, %v776_v27  ;;  %vm795_vm8 = vcmp.lt.s32.totalorder %v774_v23, 3 }
 0x112   :  { %v802_v2 = vsel %vm796_vm7, %v789_v58, 920167782  ;;  %vm794_vm9 = vcmp.lt.s32.totalorder %v774_v23, 2  ;;  %v805_v39 = vsel %vm793_vm6, %v783_v54, %v786_v4  ;;  %v799_v56 = vsel %vm795_vm8, %v783_v54, %v798_v62 }
 0x113   :  { %v930_v1 = vsub.s32 0, %v8375_v28  ;;  %v803_v48 = vsel %vm795_vm8, %v786_v4, %v802_v2  ;;  %v797_v12 = vsel %vm793_vm6, %v777_v52, %v780_v50  ;;  %v806_v19 = vsel %vm796_vm7, %v792_v22, 1326507024  ;;  %v84_v2 = vpop.permute.xlu0 %83 }
 0x114   :  { %v804_v33 = vsel %vm794_vm9, %v801_v38, %v803_v48  ;;  %v807_v25 = vsel %vm795_vm8, %v789_v58, %v806_v19  ;;  %v627_v27 = vsub.s32 32, %v626_v13  ;;  %v632_v0 = vadd.s32 127, %v631_v15 }
 0x115   :  { %v6465_v44 = vmin.u32 %v930_v1, %v8375_v28  ;;  %v8384_v10 = vmul.u32.u64.low %v809_v45, %v804_v33  ;;  %v8385_v60 = vmul.u32.u64.high %v809_v45, %v804_v33, %v8384_v10  ;;  %v808_v24 = vsel %vm794_vm9, %v805_v39, %v807_v25 }
 0x116   :  { %v6472_v7 = vadd.s32 4294967169, %v1074_v3  ;;  %v8390_v4 = vmul.u32.u64.low %v809_v45, %v808_v24  ;;  %v8391_v62 = vmul.u32.u64.high %v809_v45, %v808_v24, %v8390_v4  ;;  %v740_v22 = vcvt.s32.f32 %v8370_v36 }
 0x117   :  { %v932_v54 = vclz %v6465_v44  ;;  %v611_v58 = vadd.s32 %v8257_v51, %v8263_v18  ;;  %v800_v38 = vsel %vm794_vm9, %v797_v12, %v799_v56  ;;  %v819_v15 = vadd.s32 1, %v8385_v60 }
 0x118   :  { %v1080_v52 = vadd.s32 1, %v6472_v7  ;;  %v1077_v3 = vand.u32 8388607, %v10620_v5  ;;  %v8401_v48 = vmul.f32 %v8341_v34, %v84_v2  ;;  %v738_v24 = vand.u32 2147483647, %v8372_v40 }
 0x119   :  { %v6466_v1 = vadd.s32 4294967294, %v932_v54  ;;  %v629_v39 = vshrl.u32 %v611_v58, %v627_v27  ;;  %v633_v33 = vshll.u32 %v632_v0, 23  ;;  %v816_v19 = vmul.u32 %v809_v45, %v800_v38 }
 0x11a   :  { %vm1081_vm10 = vcmp.gt.s32.totalorder %v1080_v52, 0  ;;  %vm818_vm13 = vc.u32 %v8391_v62, %v8384_v10  ;;  %v628_v51 = vshll.u32 %v8311_v29, %v626_v13  ;;  %v920_v56 = vadd.s32 %v8315_v8, %v8324_v32 }
 0x11b   :  { %vm6467_vm11 = vcmp.lt.s32.totalorder %v6466_v1, 0  ;;  %v1082_v7 = vsel %vm1081_vm10, %v1080_v52, 0  ;;  %v820_v23 = vsel %vm818_vm13, %v819_v15, %v8385_v60  ;;  %v1078_v25 = vor.u32 8388608, %v1077_v3 }
 0x11c   :  { %v8407_v18 = vsel %vm6467_vm11, 0, %v6466_v1  ;;  %v1084_v12 = vand.u32 31, %v1082_v7  ;;  %v821_v44 = vadd.s32 %v820_v23, %v816_v19  ;;  %v10627_v27 = vand.u32 2147483647, %v8401_v48 }
 0x11d   :  { %v8413_v0 = vor.u32 %v629_v39, %v628_v51  ;;  %v8415_v45 = vor.u32 4788187, %v633_v33  ;;  %v970_v54 = vand.u32 2139095040, %v8401_v48  ;;  %v936_v29 = vsub.s32 32, %v8407_v18 }
 0x11e   :  { %v1085_v2 = vsub.s32 32, %v1084_v12  ;;  %v822_v13 = vadd.s32 536870912, %v821_v44  ;;  %v1087_v60 = vshll.u32 %v10630_v55, %v1084_v12  ;;  %v1090_v4 = vshll.u32 %v10621_v57, %v1084_v12 }
 0x11f   :  { %v1093_v58 = vshll.u32 %v10623_v59, %v1084_v12  ;;  %v1083_v1 = vshrl.u32 %v1082_v7, 5  ;;  %v1096_v15 = vshll.u32 %v10625_v61, %v1084_v12  ;;  %v1118_v51 = vshll.u32 %v1078_v25, 8 }
 0x120   :  { %v1088_v8 = vshrl.u32 %v10621_v57, %v1085_v2  ;;  %v1091_v32 = vshrl.u32 %v10623_v59, %v1085_v2  ;;  %v1094_v38 = vshrl.u32 %v10625_v61, %v1085_v2  ;;  %v8425_v52 = vshrl.u32 %v822_v13, 30 }
 0x121   :  { %v1097_v3 = vshrl.u32 %v10628_v63, %v1085_v2  ;;  %v971_v57 = vshrl.u32 %v970_v54, 23  ;;  %v8432_v59 = vand.u32 8388607, %v10627_v27  ;;  %vm248_vm14 = vcmp.lt.s32.totalorder %v7950_v42, 0 }
 0x122   :  { %10708 = vst [vmem:[#allocation12_spill] sm:$0xff] %v8425_v52  ;;  %v1089_v39 = vor.u32 %v1088_v8, %v1087_v60  ;;  %v1092_v33 = vor.u32 %v1091_v32, %v1090_v4  ;;  %v1095_v19 = vor.u32 %v1094_v38, %v1093_v58  ;;  %v824_v23 = vshll.u32 %v8425_v52, 30 }
 0x123   :  { %v1098_v5 = vor.u32 %v1097_v3, %v1096_v15  ;;  %v938_v13 = vshrl.u32 %v920_v56, %v936_v29  ;;  %v940_v7 = vsub.s32 4294967266, %v8407_v18  ;;  %v1099_v61 = vshll.u32 %v10628_v63, %v1084_v12 }
 0x124   :  { %v10709_v50 = vmov 1326507024   ;;  %v8438_v4 = vsub.s32 %v821_v44, %v824_v23  ;;  %vm1102_vm15 = vcmp.lt.s32.totalorder %v1083_v1, 1  ;;  %vm1104_vm0 = vcmp.lt.s32.totalorder %v1083_v1, 3 }
 0x125   :  { %v1100_v60 = vshrl.u32 %v10709_v50, %v1085_v2  ;;  %vm1105_vm1 = vcmp.lt.s32.totalorder %v1083_v1, 4  ;;  %v1110_v8 = vsel %vm1102_vm15, %v1089_v39, %v1092_v33  ;;  %v1086_v56 = vshrl.u32 %v10630_v55, %v1085_v2 }
 0x126   :  { %v1107_v54 = vsel %vm1105_vm1, %v1095_v19, 2102212464  ;;  %v1111_v32 = vsel %vm1105_vm1, %v1098_v5, 920167782  ;;  %v827_v58 = vsub.s32 0, %v8438_v4  ;;  %vm1103_vm2 = vcmp.lt.s32.totalorder %v1083_v1, 2  ;;  %v94_v1 = vpop.permute.xlu0 %93 }
 0x127   :  { %v1101_v25 = vor.u32 %v1100_v60, %v1099_v61  ;;  %v1112_v29 = vsel %vm1104_vm0, %v1095_v19, %v1111_v32  ;;  %v941_v12 = vadd.s32 127, %v940_v7  ;;  %v1114_v44 = vsel %vm1102_vm15, %v1092_v33, %v1095_v19 }
 0x128   :  { %v1113_v38 = vsel %vm1103_vm2, %v1110_v8, %v1112_v29  ;;  %v6461_v3 = vmin.u32 %v827_v58, %v8438_v4  ;;  %v1106_v61 = vsel %vm1102_vm15, %v1086_v56, %v1089_v39  ;;  %v1108_v23 = vsel %vm1104_vm0, %v1092_v33, %v1107_v54 }
 0x129   :  { %v1115_v15 = vsel %vm1105_vm1, %v1101_v25, 1326507024  ;;  %v8451_v2 = vmul.u32.u64.low %v1118_v51, %v1113_v38  ;;  %v8452_v63 = vmul.u32.u64.high %v1118_v51, %v1113_v38, %v8451_v2  ;;  %v6468_v7 = vadd.s32 4294967169, %v971_v57 }
 0x12a   :  { %v1116_v60 = vsel %vm1104_vm0, %v1098_v5, %v1115_v15  ;;  %v8459_v19 = vmul.f32 %v740_v22, %v738_v24  ;;  %v829_v25 = vclz %v6461_v3  ;;  %v635_v33 = vand.u32 2147483647, %v8415_v45 }
 0x12b   :  { %v1117_v27 = vsel %vm1103_vm2, %v1114_v44, %v1116_v60  ;;  %v937_v5 = vshll.u32 %v8375_v28, %v8407_v18  ;;  %v1109_v54 = vsel %vm1103_vm2, %v1106_v61, %v1108_v23  ;;  %v977_v32 = vadd.s32 1, %v6468_v7  ;;  %v99_v18 = vpop.permute.xlu1 %98 }
 0x12c   :  { %v8461_v8 = vmul.u32.u64.low %v1118_v51, %v1117_v27  ;;  %v8462_v39 = vmul.u32.u64.high %v1118_v51, %v1117_v27, %v8461_v8  ;;  %v10710_v57 = vxor.u32 2147483648, %v8346_v17  ;;  %v637_v36 = vcvt.s32.f32 %v8413_v0 }
 0x12d   :  { %v6462_v22 = vadd.s32 4294967294, %v829_v25  ;;  %v975_v24 = vor.u32 8388608, %v8432_v59  ;;  %v8477_v27 = vor.u32 %v938_v13, %v937_v5  ;;  %v942_v45 = vshll.u32 %v941_v12, 23 }
 0x12e   :  { %v8473_v40 = vsel %vm248_vm14, %v10710_v57, %v8346_v17  ;;  %v1128_v28 = vadd.s32 1, %v8452_v63  ;;  %vm978_vm5 = vcmp.gt.s32.totalorder %v977_v32, 0  ;;  %v1125_v56 = vmul.u32 %v1118_v51, %v1109_v54 }
 0x12f   :  { %vm1127_vm6 = vc.u32 %v8462_v39, %v8451_v2  ;;  %v979_v17 = vsel %vm978_vm5, %v977_v32, 0  ;;  %v8483_v29 = vmul.f32 %v637_v36, %v635_v33  ;;  %vm6463_vm7 = vcmp.lt.s32.totalorder %v6462_v22, 0 }
 0x130   :  { %v1129_v59 = vsel %vm1127_vm6, %v1128_v28, %v8452_v63  ;;  %v981_v0 = vand.u32 31, %v979_v17  ;;  %v817_v13 = vadd.s32 %v8384_v10, %v8391_v62  ;;  %v8489_v38 = vmul.f32 %v8341_v34, %v99_v18 }
 0x131   :  { %v1130_v12 = vadd.s32 %v1129_v59, %v1125_v56  ;;  %v8492_v44 = vmul.f32 %v8341_v34, %v94_v1  ;;  %v8494_v51 = vor.u32 4788187, %v942_v45  ;;  %v8497_v61 = vshll.u32 %v975_v24, 8 }
 0x132   :  { %10711 = vst [vmem:[#allocation13_spill] sm:$0xff] %v8489_v38  ;;  %v982_v3 = vsub.s32 32, %v981_v0  ;;  %v8499_v23 = vsel %vm6463_vm7, 0, %v6462_v22  ;;  %v984_v60 = vshll.u32 %v10630_v55, %v981_v0  ;;  %v10713_v10 = vmov 2475754826  }
 0x133   :  { %10712 = vst [vmem:[#allocation14_spill] sm:$0xff] %v8492_v44  ;;  %v1131_v63 = vadd.s32 536870912, %v1130_v12  ;;  %v987_v62 = vshll.u32 %v10713_v10, %v981_v0  ;;  %v10714_v25 = vmov 2131351028   ;;  %v10715_v5 = vmov 2102212464  }
 0x134   :  { %v985_v7 = vshrl.u32 %v10713_v10, %v982_v3  ;;  %v988_v8 = vshrl.u32 %v10714_v25, %v982_v3  ;;  %v990_v33 = vshll.u32 %v10714_v25, %v981_v0  ;;  %v991_v54 = vshrl.u32 %v10715_v5, %v982_v3 }
 0x135   :  { %v8507_v32 = vshrl.u32 %v1131_v63, 30  ;;  %v980_v57 = vshrl.u32 %v979_v17, 5  ;;  %v993_v36 = vshll.u32 %v10715_v5, %v981_v0  ;;  %v10717_v22 = vmov 920167782  }
 0x136   :  { %v994_v24 = vshrl.u32 %v10717_v22, %v982_v3  ;;  %v986_v45 = vor.u32 %v985_v7, %v984_v60  ;;  %v989_v28 = vor.u32 %v988_v8, %v987_v62  ;;  %v992_v18 = vor.u32 %v991_v54, %v990_v33 }
 0x137   :  { %10716 = vst [vmem:[#allocation15_spill] sm:$0xff] %v8507_v32  ;;  %v1133_v56 = vshll.u32 %v8507_v32, 30  ;;  %v1279_v15 = vand.u32 2139095040, %v8489_v38  ;;  %v1176_v58 = vand.u32 2139095040, %v8492_v44  ;;  %v833_v63 = vsub.s32 32, %v8499_v23 }
 0x138   :  { %v995_v59 = vor.u32 %v994_v24, %v993_v36  ;;  %v837_v17 = vsub.s32 4294967266, %v8499_v23  ;;  %v996_v55 = vshll.u32 %v10717_v22, %v981_v0  ;;  %v997_v26 = vshrl.u32 %v10709_v50, %v982_v3 }
 0x139   :  { %v8519_v60 = vsub.s32 %v1130_v12, %v1133_v56  ;;  %vm999_vm8 = vcmp.lt.s32.totalorder %v980_v57, 1  ;;  %vm1001_vm9 = vcmp.lt.s32.totalorder %v980_v57, 3  ;;  %vm1002_vm10 = vcmp.lt.s32.totalorder %v980_v57, 4 }
 0x13a   :  { %v998_v62 = vor.u32 %v997_v26, %v996_v55  ;;  %v1004_v7 = vsel %vm1002_vm10, %v992_v18, 2102212464  ;;  %v1007_v8 = vsel %vm999_vm8, %v986_v45, %v989_v28  ;;  %v1008_v33 = vsel %vm1002_vm10, %v995_v59, 920167782 }
 0x13b   :  { %v1136_v54 = vsub.s32 0, %v8519_v60  ;;  %v10718_v36 = vmov 683565275   ;;  %vm1000_vm11 = vcmp.lt.s32.totalorder %v980_v57, 2  ;;  %v1009_v1 = vsel %vm1001_vm9, %v992_v18, %v1008_v33 }
 0x13c   :  { %v983_v24 = vshrl.u32 %v10718_v36, %v982_v3  ;;  %v838_v0 = vadd.s32 127, %v837_v17  ;;  %v1010_v32 = vsel %vm1000_vm11, %v1007_v8, %v1009_v1  ;;  %v1011_v12 = vsel %vm999_vm8, %v989_v28, %v992_v18 }
 0x13d   :  { %v1012_v56 = vsel %vm1002_vm10, %v998_v62, 1326507024  ;;  %vm10670_vm13 = vcmp.lt.s32.totalorder %v8076_v46, 0  ;;  %v6473_v55 = vmin.u32 %v1136_v54, %v8519_v60  ;;  %v1005_v52 = vsel %vm1001_vm9, %v989_v28, %v1004_v7 }
 0x13e   :  { %v1003_v26 = vsel %vm999_vm8, %v983_v24, %v986_v45  ;;  %v1013_v37 = vsel %vm1001_vm9, %v995_v59, %v1012_v56  ;;  %v8534_v33 = vmul.u32.u64.low %v8497_v61, %v1010_v32  ;;  %v8535_v17 = vmul.u32.u64.high %v8497_v61, %v1010_v32, %v8534_v33 }
 0x13f   :  { %v1014_v3 = vsel %vm1000_vm11, %v1011_v12, %v1013_v37  ;;  %v1280_v1 = vshrl.u32 %v1279_v15, 23  ;;  %v835_v18 = vshrl.u32 %v817_v13, %v833_v63  ;;  %v1138_v62 = vclz %v6473_v55 }
 0x140   :  { %v8539_v8 = vmul.u32.u64.low %v8497_v61, %v1014_v3  ;;  %v8540_v53 = vmul.u32.u64.high %v8497_v61, %v1014_v3, %v8539_v8  ;;  %v839_v54 = vshll.u32 %v838_v0, 23  ;;  %v1006_v45 = vsel %vm1000_vm11, %v1003_v26, %v1005_v52  ;;  %v109_v3 = vpop.permute.xlu1 %108 }
 0x141   :  { %v6480_v28 = vadd.s32 4294967169, %v1280_v1  ;;  %v1177_v7 = vshrl.u32 %v1176_v58, 23  ;;  %v834_v37 = vshll.u32 %v8438_v4, %v8499_v23  ;;  %v6474_v59 = vadd.s32 4294967294, %v1138_v62 }
 0x142   :  { %v10719_v32 = vand.u32 2147483647, %v8489_v38  ;;  %v10642_v15 = vand.u32 2147483647, %v8492_v44  ;;  %v944_v13 = vand.u32 2147483647, %v8494_v51  ;;  %v1022_v52 = vmul.u32 %v8497_v61, %v1006_v45 }
 0x143   :  { %v1025_v63 = vadd.s32 1, %v8535_v17  ;;  %v1286_v12 = vadd.s32 1, %v6480_v28  ;;  %v6476_v56 = vadd.s32 4294967169, %v1177_v7  ;;  %v8550_v0 = vor.u32 %v835_v18, %v834_v37 }
 0x144   :  { %v1283_v24 = vand.u32 8388607, %v10719_v32  ;;  %vm6475_vm15 = vcmp.lt.s32.totalorder %v6474_v59, 0  ;;  %vm1024_vm0 = vc.u32 %v8540_v53, %v8534_v33  ;;  %v8555_v4 = vor.u32 4788187, %v839_v54 }
 0x145   :  { %v1141_v58 = vsel %vm6475_vm15, 0, %v6474_v59  ;;  %v1026_v23 = vsel %vm1024_vm0, %v1025_v63, %v8535_v17  ;;  %vm1287_vm1 = vcmp.gt.s32.totalorder %v1286_v12, 0  ;;  %v8560_v26 = vand.u32 8388607, %v10642_v15 }
 0x146   :  { %v1146_v57 = vsub.s32 4294967266, %v1141_v58  ;;  %v1027_v51 = vadd.s32 %v1026_v23, %v1022_v52  ;;  %v1284_v55 = vor.u32 8388608, %v1283_v24  ;;  %v10720_v61 = vxor.u32 2147483648, %v8459_v19 }
 0x147   :  { %v1288_v62 = vsel %vm1287_vm1, %v1286_v12, 0  ;;  %v1183_v17 = vadd.s32 1, %v6476_v56  ;;  %v10722_v8 = vcvt.s32.f32 %v8477_v27  ;;  %v1126_v45 = vadd.s32 %v8451_v2, %v8462_v39 }
 0x148   :  { %v8567_v1 = vsel %vm10670_vm13, %v10720_v61, %v8459_v19  ;;  %v1147_v28 = vadd.s32 127, %v1146_v57  ;;  %v1028_v7 = vadd.s32 536870912, %v1027_v51  ;;  %v841_v37 = vand.u32 2147483647, %v8555_v4 }
 0x149   :  { %10721 = vst [vmem:[#allocation16_spill] sm:$0xff] %v8567_v1  ;;  %v8572_v54 = vmul.f32 %v10722_v8, %v944_v13  ;;  %v843_v59 = vcvt.s32.f32 %v8550_v0  ;;  %v1290_v32 = vand.u32 31, %v1288_v62  ;;  %v8579_v19 = vmul.f32 %v8341_v34, %v109_v3 }
 0x14a   :  { %v1142_v24 = vsub.s32 32, %v1141_v58  ;;  %v8581_v63 = vshrl.u32 %v1028_v7, 30  ;;  %v8583_v12 = vshll.u32 %v1284_v55, 8  ;;  %v1181_v27 = vor.u32 8388608, %v8560_v26 }
 0x14b   :  { %v1143_v13 = vshll.u32 %v8519_v60, %v1141_v58  ;;  %v1289_v2 = vshrl.u32 %v1288_v62, 5  ;;  %v1291_v39 = vsub.s32 32, %v1290_v32  ;;  %vm1184_vm2 = vcmp.gt.s32.totalorder %v1183_v17, 0 }
 0x14c   :  { %10723 = vst [vmem:[#allocation17_spill] sm:$0xff] %v8581_v63  ;;  %v1148_v56 = vshll.u32 %v1147_v28, 23  ;;  %v1030_v52 = vshll.u32 %v8581_v63, 30  ;;  %v1293_v0 = vshll.u32 %v10718_v36, %v1290_v32  ;;  %v1296_v4 = vshll.u32 %v10713_v10, %v1290_v32 }
 0x14d   :  { %v1294_v23 = vshrl.u32 %v10713_v10, %v1291_v39  ;;  %v1297_v57 = vshrl.u32 %v10714_v25, %v1291_v39  ;;  %v1299_v55 = vshll.u32 %v10714_v25, %v1290_v32  ;;  %v1300_v26 = vshrl.u32 %v10715_v5, %v1291_v39 }
 0x14e   :  { %v8594_v3 = vsub.s32 %v1027_v51, %v1030_v52  ;;  %v1302_v60 = vshll.u32 %v10715_v5, %v1290_v32  ;;  %v1303_v58 = vshrl.u32 %v10717_v22, %v1291_v39  ;;  %v1305_v61 = vshll.u32 %v10717_v22, %v1290_v32 }
 0x14f   :  { %v1295_v62 = vor.u32 %v1294_v23, %v1293_v0  ;;  %v1298_v8 = vor.u32 %v1297_v57, %v1296_v4  ;;  %v1301_v28 = vor.u32 %v1300_v26, %v1299_v55  ;;  %v1306_v7 = vshrl.u32 %v10709_v50, %v1291_v39 }
 0x150   :  { %v1144_v15 = vshrl.u32 %v1126_v45, %v1142_v24  ;;  %v1033_v18 = vsub.s32 0, %v8594_v3  ;;  %v1304_v63 = vor.u32 %v1303_v58, %v1302_v60  ;;  %v1185_v1 = vsel %vm1184_vm2, %v1183_v17, 0 }
 0x151   :  { %v1149_v46 = vor.u32 4788187, %v1148_v56  ;;  %v1307_v51 = vor.u32 %v1306_v7, %v1305_v61  ;;  %vm1308_vm5 = vcmp.lt.s32.totalorder %v1289_v2, 1  ;;  %vm1311_vm6 = vcmp.lt.s32.totalorder %v1289_v2, 4 }
 0x152   :  { %v6469_v52 = vmin.u32 %v1033_v18, %v8594_v3  ;;  %v1292_v44 = vshrl.u32 %v10718_v36, %v1291_v39  ;;  %v1313_v32 = vsel %vm1311_vm6, %v1301_v28, 2102212464  ;;  %v1316_v0 = vsel %vm1308_vm5, %v1295_v62, %v1298_v8 }
 0x153   :  { %vm1310_vm7 = vcmp.lt.s32.totalorder %v1289_v2, 3  ;;  %v1317_v4 = vsel %vm1311_vm6, %v1304_v63, 920167782  ;;  %v1320_v23 = vsel %vm1308_vm5, %v1298_v8, %v1301_v28  ;;  %v1321_v57 = vsel %vm1311_vm6, %v1307_v51, 1326507024 }
 0x154   :  { %v1145_v45 = vor.u32 %v1144_v15, %v1143_v13  ;;  %v1035_v24 = vclz %v6469_v52  ;;  %vm1309_vm8 = vcmp.lt.s32.totalorder %v1289_v2, 2  ;;  %v1318_v55 = vsel %vm1310_vm7, %v1301_v28, %v1317_v4 }
 0x155   :  { %v1312_v26 = vsel %vm1308_vm5, %v1292_v44, %v1295_v62  ;;  %v1314_v17 = vsel %vm1310_vm7, %v1298_v8, %v1313_v32  ;;  %v1319_v56 = vsel %vm1309_vm8, %v1316_v0, %v1318_v55  ;;  %v1322_v60 = vsel %vm1310_vm7, %v1304_v63, %v1321_v57 }
 0x156   :  { %v1150_v58 = vand.u32 2147483647, %v1149_v46  ;;  %v1323_v61 = vsel %vm1309_vm8, %v1320_v23, %v1322_v60  ;;  %v8605_v18 = vmul.u32.u64.low %v8583_v12, %v1319_v56  ;;  %v8606_v7 = vmul.u32.u64.high %v8583_v12, %v1319_v56, %v8605_v18 }
 0x157   :  { %v6470_v39 = vadd.s32 4294967294, %v1035_v24  ;;  %v8610_v38 = vmul.u32.u64.low %v8583_v12, %v1323_v61  ;;  %v8611_v43 = vmul.u32.u64.high %v8583_v12, %v1323_v61, %v8610_v38  ;;  %v1187_v15 = vand.u32 31, %v1185_v1 }
 0x158   :  { %v948_v13 = vxor.u32 2147483648, %v8572_v54  ;;  %v8614_v2 = vmul.f32 %v843_v59, %v841_v37  ;;  %v1152_v44 = vcvt.s32.f32 %v1145_v45  ;;  %v1315_v62 = vsel %vm1309_vm8, %v1312_v26, %v1314_v17 }
 0x159   :  { %v8618_v46 = vadd.s32 %v8534_v33, %v8540_v53  ;;  %v1186_v63 = vshrl.u32 %v1185_v1, 5  ;;  %v1188_v8 = vsub.s32 32, %v1187_v15  ;;  %v8620_v28 = vshll.u32 %v1181_v27, 8 }
 0x15a   :  { %v8622_v51 = vmul.f32 %v1152_v44, %v1150_v58  ;;  %v1334_v52 = vadd.s32 1, %v8606_v7  ;;  %v1485_v32 = vand.u32 2139095040, %v8579_v19  ;;  %vm6471_vm9 = vcmp.lt.s32.totalorder %v6470_v39, 0 }
 0x15b   :  { %v1331_v37 = vmul.u32 %v8583_v12, %v1315_v62  ;;  %vm1333_vm10 = vc.u32 %v8611_v43, %v8605_v18  ;;  %v1191_v53 = vshrl.u32 %v10713_v10, %v1188_v8  ;;  %v1190_v1 = vshll.u32 %v10718_v36, %v1187_v15 }
 0x15c   :  { %v1335_v33 = vsel %vm1333_vm10, %v1334_v52, %v8606_v7  ;;  %v1193_v59 = vshll.u32 %v10713_v10, %v1187_v15  ;;  %v1194_v27 = vshrl.u32 %v10714_v25, %v1188_v8  ;;  %v1196_v4 = vshll.u32 %v10714_v25, %v1187_v15 }
 0x15d   :  { %v1336_v0 = vadd.s32 %v1335_v33, %v1331_v37  ;;  %v1197_v23 = vshrl.u32 %v10715_v5, %v1188_v8  ;;  %vm1205_vm11 = vcmp.lt.s32.totalorder %v1186_v63, 1  ;;  %v8637_v12 = vsel %vm6471_vm9, 0, %v6470_v39 }
 0x15e   :  { %v1192_v57 = vor.u32 %v1191_v53, %v1190_v1  ;;  %v1195_v45 = vor.u32 %v1194_v27, %v1193_v59  ;;  %vm1206_vm15 = vcmp.lt.s32.totalorder %v1186_v63, 2  ;;  %vm557_vm0 = vcmp.lt.s32.totalorder %v8135_v16, 0 }
 0x15f   :  { %vm10668_vm1 = vcmp.lt.s32.totalorder %v8149_v11, 0  ;;  %v1337_v24 = vadd.s32 536870912, %v1336_v0  ;;  %v1198_v55 = vor.u32 %v1197_v23, %v1196_v4  ;;  %v1199_v26 = vshll.u32 %v10715_v5, %v1187_v15 }
 0x160   :  { %v1200_v17 = vshrl.u32 %v10717_v22, %v1188_v8  ;;  %v1202_v56 = vshll.u32 %v10717_v22, %v1187_v15  ;;  %v1203_v60 = vshrl.u32 %v10709_v50, %v1188_v8  ;;  %vm1207_vm2 = vcmp.lt.s32.totalorder %v1186_v63, 3 }
 0x161   :  { %vm1208_vm5 = vcmp.lt.s32.totalorder %v1186_v63, 4  ;;  %v1039_v58 = vsub.s32 32, %v8637_v12  ;;  %v8646_v61 = vshrl.u32 %v1337_v24, 30  ;;  %v1043_v44 = vsub.s32 4294967266, %v8637_v12 }
 0x162   :  { %v1201_v7 = vor.u32 %v1200_v17, %v1199_v26  ;;  %v1210_v39 = vsel %vm1208_vm5, %v1198_v55, 2102212464  ;;  %v1189_v62 = vshrl.u32 %v10718_v36, %v1188_v8  ;;  %v1204_v52 = vor.u32 %v1203_v60, %v1202_v56 }
 0x163   :  { %10724 = vst [vmem:[#allocation18_spill] sm:$0xff] %v8646_v61  ;;  %v1213_v37 = vsel %vm1205_vm11, %v1192_v57, %v1195_v45  ;;  %vm10669_vm6 = vcmp.lt.s32.totalorder %v8221_v49, 0  ;;  %v1339_v15 = vshll.u32 %v8646_v61, 30  ;;  %v1217_v33 = vsel %vm1205_vm11, %v1195_v45, %v1198_v55 }
 0x164   :  { %v1214_v53 = vsel %vm1208_vm5, %v1201_v7, 920167782  ;;  %v1486_v1 = vshrl.u32 %v1485_v32, 23  ;;  %vm10666_vm7 = vcmp.lt.s32.totalorder %v8344_v35, 0  ;;  %v1209_v59 = vsel %vm1205_vm11, %v1189_v62, %v1192_v57  ;;  %v104_v57 = vpop.permute.xlu0 %103 }
 0x165   :  { %v1211_v27 = vsel %vm1207_vm2, %v1195_v45, %v1210_v39  ;;  %v1215_v8 = vsel %vm1207_vm2, %v1198_v55, %v1214_v53  ;;  %v1218_v4 = vsel %vm1208_vm5, %v1204_v52, 1326507024  ;;  %v8661_v23 = vsub.s32 %v1336_v0, %v1339_v15 }
 0x166   :  { %v1216_v24 = vsel %vm1206_vm15, %v1213_v37, %v1215_v8  ;;  %v1219_v26 = vsel %vm1207_vm2, %v1201_v7, %v1218_v4  ;;  %v6488_v17 = vadd.s32 4294967169, %v1486_v1  ;;  %v1044_v56 = vadd.s32 127, %v1043_v44 }
 0x167   :  { %v1220_v32 = vsel %vm1206_vm15, %v1217_v33, %v1219_v26  ;;  %v8667_v60 = vmul.u32.u64.low %v8620_v28, %v1216_v24  ;;  %v8668_v38 = vmul.u32.u64.high %v8620_v28, %v1216_v24, %v8667_v60  ;;  %v1342_v45 = vsub.s32 0, %v8661_v23 }
 0x168   :  { %v1212_v55 = vsel %vm1206_vm15, %v1209_v59, %v1211_v27  ;;  %v8674_v0 = vmul.u32.u64.low %v8620_v28, %v1220_v32  ;;  %v8675_v39 = vmul.u32.u64.high %v8620_v28, %v1220_v32, %v8674_v0  ;;  %v10725_v7 = vxor.u32 2147483648, %v8483_v29 }
 0x169   :  { %v8689_v62 = vsel %vm10668_vm1, %v948_v13, %v8572_v54  ;;  %v845_v63 = vxor.u32 2147483648, %v8614_v2  ;;  %v1492_v52 = vadd.s32 1, %v6488_v17  ;;  %v1154_v37 = vxor.u32 2147483648, %v8622_v51  ;;  %v119_v54 = vpop.permute.xlu1 %118 }
 0x16a   :  { %v8682_v44 = vsel %vm557_vm0, %v10725_v7, %v8483_v29  ;;  %10726 = vst [vmem:[#allocation19_spill] sm:$0xff] %v8689_v62  ;;  %v1041_v15 = vshrl.u32 %v8618_v46, %v1039_v58  ;;  %v6481_v53 = vmin.u32 %v1342_v45, %v8661_v23  ;;  %v8696_v33 = vmul.f32 %v8341_v34, %v104_v57 }
 0x16b   :  { %v1045_v29 = vshll.u32 %v1044_v56, 23  ;;  %v1228_v1 = vmul.u32 %v8620_v28, %v1212_v55  ;;  %v1231_v59 = vadd.s32 1, %v8668_v38  ;;  %vm1493_vm8 = vcmp.gt.s32.totalorder %v1492_v52, 0 }
 0x16c   :  { %v1344_v13 = vclz %v6481_v53  ;;  %vm1230_vm9 = vc.u32 %v8675_v39, %v8667_v60  ;;  %v10727_v27 = vand.u32 2147483647, %v8579_v19  ;;  %v1494_v46 = vsel %vm1493_vm8, %v1492_v52, 0 }
 0x16d   :  { %v8707_v58 = vsel %vm10669_vm6, %v845_v63, %v8614_v2  ;;  %v1040_v28 = vshll.u32 %v8594_v3, %v8637_v12  ;;  %v1232_v4 = vsel %vm1230_vm9, %v1231_v59, %v8668_v38  ;;  %v1496_v24 = vand.u32 31, %v1494_v46 }
 0x16e   :  { %v1489_v8 = vand.u32 8388607, %v10727_v27  ;;  %10728 = vst [vmem:[#allocation20_spill] sm:$0xff] %v8707_v58  ;;  %v8715_v26 = vsel %vm10666_vm7, %v1154_v37, %v8622_v51  ;;  %v6482_v17 = vadd.s32 4294967294, %v1344_v13  ;;  %v1233_v56 = vadd.s32 %v1232_v4, %v1228_v1 }
 0x16f   :  { %10729 = vst [vmem:[#allocation21_spill] sm:$0xff] %v8715_v26  ;;  %v8718_v32 = vmul.f32 %v8341_v34, %v119_v54  ;;  %v1042_v57 = vor.u32 %v1041_v15, %v1040_v28  ;;  %v1046_v45 = vor.u32 4788187, %v1045_v29  ;;  %v1497_v2 = vsub.s32 32, %v1496_v24 }
 0x170   :  { %vm6483_vm10 = vcmp.lt.s32.totalorder %v6482_v17, 0  ;;  %v1234_v3 = vadd.s32 536870912, %v1233_v56  ;;  %v1490_v12 = vor.u32 8388608, %v1489_v8  ;;  %v1382_v38 = vand.u32 2139095040, %v8696_v33 }
 0x171   :  { %10730 = vst [vmem:[#allocation22_spill] sm:$0xff] %v8718_v32  ;;  %v1495_v0 = vshrl.u32 %v1494_v46, 5  ;;  %v1499_v7 = vshll.u32 %v10718_v36, %v1496_v24  ;;  %v1500_v51 = vshrl.u32 %v10713_v10, %v1497_v2  ;;  %v1503_v63 = vshrl.u32 %v10714_v25, %v1497_v2 }
 0x172   :  { %v8725_v52 = vshrl.u32 %v1234_v3, 30  ;;  %v1502_v34 = vshll.u32 %v10713_v10, %v1496_v24  ;;  %v1505_v37 = vshll.u32 %v10714_v25, %v1496_v24  ;;  %v1508_v15 = vshll.u32 %v10715_v5, %v1496_v24 }
 0x173   :  { %v8730_v53 = vsel %vm6483_vm10, 0, %v6482_v17  ;;  %v1506_v29 = vshrl.u32 %v10715_v5, %v1497_v2  ;;  %v1509_v1 = vshrl.u32 %v10717_v22, %v1497_v2  ;;  %v1511_v59 = vshll.u32 %v10717_v22, %v1496_v24 }
 0x174   :  { %10731 = vst [vmem:[#allocation23_spill] sm:$0xff] %v8725_v52  ;;  %v1236_v54 = vshll.u32 %v8725_v52, 30  ;;  %v1501_v13 = vor.u32 %v1500_v51, %v1499_v7  ;;  %v1504_v27 = vor.u32 %v1503_v63, %v1502_v34  ;;  %v1512_v8 = vshrl.u32 %v10709_v50, %v1497_v2 }
 0x175   :  { %v1047_v46 = vand.u32 2147483647, %v1046_v45  ;;  %v1049_v28 = vcvt.s32.f32 %v1042_v57  ;;  %v1507_v4 = vor.u32 %v1506_v29, %v1505_v37  ;;  %v1510_v3 = vor.u32 %v1509_v1, %v1508_v15 }
 0x176   :  { %v8737_v55 = vsub.s32 %v1233_v56, %v1236_v54  ;;  %v1513_v17 = vor.u32 %v1512_v8, %v1511_v59  ;;  %v1530_v61 = vshll.u32 %v1490_v12, 8  ;;  %v10732_v26 = vand.u32 2147483647, %v8696_v33 }
 0x177   :  { %v1352_v62 = vsub.s32 4294967266, %v8730_v53  ;;  %v1498_v24 = vshrl.u32 %v10718_v36, %v1497_v2  ;;  %vm1514_vm11 = vcmp.lt.s32.totalorder %v1495_v0, 1  ;;  %v1383_v7 = vshrl.u32 %v1382_v38, 23 }
 0x178   :  { %v1386_v35 = vand.u32 8388607, %v10732_v26  ;;  %v1239_v51 = vsub.s32 0, %v8737_v55  ;;  %vm1516_vm15 = vcmp.lt.s32.totalorder %v1495_v0, 3  ;;  %vm1517_vm2 = vcmp.lt.s32.totalorder %v1495_v0, 4 }
 0x179   :  { %v1522_v57 = vsel %vm1514_vm11, %v1501_v13, %v1504_v27  ;;  %v1519_v45 = vsel %vm1517_vm2, %v1507_v4, 2102212464  ;;  %v1523_v56 = vsel %vm1517_vm2, %v1510_v3, 920167782  ;;  %v1526_v63 = vsel %vm1514_vm11, %v1504_v27, %v1507_v4 }
 0x17a   :  { %v1527_v12 = vsel %vm1517_vm2, %v1513_v17, 1326507024  ;;  %v1348_v34 = vsub.s32 32, %v8730_v53  ;;  %v6477_v26 = vmin.u32 %v1239_v51, %v8737_v55  ;;  %vm1515_vm5 = vcmp.lt.s32.totalorder %v1495_v0, 2 }
 0x17b   :  { %v1524_v2 = vsel %vm1516_vm15, %v1507_v4, %v1523_v56  ;;  %v1353_v37 = vadd.s32 127, %v1352_v62  ;;  %v1528_v15 = vsel %vm1516_vm15, %v1510_v3, %v1527_v12  ;;  %v6484_v29 = vadd.s32 4294967169, %v1383_v7 }
 0x17c   :  { %v1525_v38 = vsel %vm1515_vm5, %v1522_v57, %v1524_v2  ;;  %v1241_v1 = vclz %v6477_v26  ;;  %v1518_v59 = vsel %vm1514_vm11, %v1498_v24, %v1501_v13  ;;  %v1520_v54 = vsel %vm1516_vm15, %v1504_v27, %v1519_v45 }
 0x17d   :  { %v1529_v8 = vsel %vm1515_vm5, %v1526_v63, %v1528_v15  ;;  %v8757_v51 = vmul.u32.u64.low %v1530_v61, %v1525_v38  ;;  %v8758_v11 = vmul.u32.u64.high %v1530_v61, %v1525_v38, %v8757_v51  ;;  %v8761_v62 = vmul.f32 %v1049_v28, %v1047_v46 }
 0x17e   :  { %v8754_v17 = vmul.u32.u64.low %v1530_v61, %v1529_v8  ;;  %v8755_v52 = vmul.u32.u64.high %v1530_v61, %v1529_v8, %v8754_v17  ;;  %v1332_v4 = vadd.s32 %v8605_v18, %v8611_v43  ;;  %v6478_v3 = vadd.s32 4294967294, %v1241_v1 }
 0x17f   :  { %v1389_v7 = vadd.s32 1, %v6484_v29  ;;  %v1349_v13 = vshll.u32 %v8661_v23, %v8730_v53  ;;  %v1521_v27 = vsel %vm1515_vm5, %v1518_v59, %v1520_v54  ;;  %v1387_v24 = vor.u32 8388608, %v1386_v35 }
 0x180   :  { %v10659_v57 = vand.u32 2147483647, %v8718_v32  ;;  %v1350_v45 = vshrl.u32 %v1332_v4, %v1348_v34  ;;  %v1354_v56 = vshll.u32 %v1353_v37, 23  ;;  %vm6479_vm8 = vcmp.lt.s32.totalorder %v6478_v3, 0 }
 0x181   :  { %vm1390_vm9 = vcmp.gt.s32.totalorder %v1389_v7, 0  ;;  %v1244_v63 = vsel %vm6479_vm8, 0, %v6478_v3  ;;  %vm1539_vm10 = vc.u32 %v8755_v52, %v8757_v51  ;;  %v1540_v43 = vadd.s32 1, %v8758_v11 }
 0x182   :  { %v1691_v18 = vand.u32 2139095040, %v8718_v32  ;;  %v1245_v46 = vsub.s32 32, %v1244_v63  ;;  %v1249_v28 = vsub.s32 4294967266, %v1244_v63  ;;  %v1537_v23 = vmul.u32 %v1530_v61, %v1521_v27 }
 0x183   :  { %v1391_v0 = vsel %vm1390_vm9, %v1389_v7, 0  ;;  %v1229_v53 = vadd.s32 %v8667_v60, %v8675_v39  ;;  %v1541_v12 = vsel %vm1539_vm10, %v1540_v43, %v8758_v11  ;;  %v8777_v26 = vor.u32 %v1350_v45, %v1349_v13 }
 0x184   :  { %v1393_v34 = vand.u32 31, %v1391_v0  ;;  %v8779_v2 = vor.u32 4788187, %v1354_v56  ;;  %v1542_v37 = vadd.s32 %v1541_v12, %v1537_v23  ;;  %v8781_v38 = vshll.u32 %v1387_v24, 8 }
 0x185   :  { %v1247_v15 = vshrl.u32 %v1229_v53, %v1245_v46  ;;  %v1692_v1 = vshrl.u32 %v1691_v18, 23  ;;  %v8785_v61 = vand.u32 8388607, %v10659_v57  ;;  %v1250_v59 = vadd.s32 127, %v1249_v28 }
 0x186   :  { %v1394_v29 = vsub.s32 32, %v1393_v34  ;;  %v1543_v54 = vadd.s32 536870912, %v1542_v37  ;;  %v1396_v60 = vshll.u32 %v10718_v36, %v1393_v34  ;;  %v1399_v11 = vshll.u32 %v10713_v10, %v1393_v34 }
 0x187   :  { %v1402_v17 = vshll.u32 %v10714_v25, %v1393_v34  ;;  %v1392_v7 = vshrl.u32 %v1391_v0, 5  ;;  %v1405_v13 = vshll.u32 %v10715_v5, %v1393_v34  ;;  %v1246_v24 = vshll.u32 %v8737_v55, %v1244_v63 }
 0x188   :  { %v1397_v39 = vshrl.u32 %v10713_v10, %v1394_v29  ;;  %v1400_v8 = vshrl.u32 %v10714_v25, %v1394_v29  ;;  %v1403_v4 = vshrl.u32 %v10715_v5, %v1394_v29  ;;  %v8793_v3 = vshrl.u32 %v1543_v54, 30 }
 0x189   :  { %v1406_v27 = vshrl.u32 %v10717_v22, %v1394_v29  ;;  %v1408_v28 = vshll.u32 %v10717_v22, %v1393_v34  ;;  %v1409_v23 = vshrl.u32 %v10709_v50, %v1394_v29  ;;  %v8801_v53 = vor.u32 %v1247_v15, %v1246_v24 }
 0x18a   :  { %10733 = vst [vmem:[#allocation24_spill] sm:$0xff] %v8793_v3  ;;  %v1398_v45 = vor.u32 %v1397_v39, %v1396_v60  ;;  %v1401_v56 = vor.u32 %v1400_v8, %v1399_v11  ;;  %v1404_v43 = vor.u32 %v1403_v4, %v1402_v17  ;;  %v1545_v18 = vshll.u32 %v8793_v3, 30 }
 0x18b   :  { %v1407_v46 = vor.u32 %v1406_v27, %v1405_v13  ;;  %v1251_v12 = vshll.u32 %v1250_v59, 23  ;;  %v1395_v0 = vshrl.u32 %v10718_v36, %v1394_v29  ;;  %v6496_v54 = vadd.s32 4294967169, %v1692_v1 }
 0x18c   :  { %v8804_v57 = vsub.s32 %v1542_v37, %v1545_v18  ;;  %v1410_v35 = vor.u32 %v1409_v23, %v1408_v28  ;;  %vm1411_vm11 = vcmp.lt.s32.totalorder %v1392_v7, 1  ;;  %vm1414_vm15 = vcmp.lt.s32.totalorder %v1392_v7, 4 }
 0x18d   :  { %vm1413_vm2 = vcmp.lt.s32.totalorder %v1392_v7, 3  ;;  %v1416_v55 = vsel %vm1414_vm15, %v1404_v43, 2102212464  ;;  %v1419_v63 = vsel %vm1411_vm11, %v1398_v45, %v1401_v56  ;;  %v1420_v60 = vsel %vm1414_vm15, %v1407_v46, 920167782 }
 0x18e   :  { %v1548_v11 = vsub.s32 0, %v8804_v57  ;;  %vm1412_vm5 = vcmp.lt.s32.totalorder %v1392_v7, 2  ;;  %v1421_v34 = vsel %vm1413_vm2, %v1404_v43, %v1420_v60  ;;  %v1423_v39 = vsel %vm1411_vm11, %v1401_v56, %v1404_v43  ;;  %v114_v43 = vpop.permute.xlu0 %113 }
 0x18f   :  { %v8807_v15 = vor.u32 4788187, %v1251_v12  ;;  %v1422_v59 = vsel %vm1412_vm5, %v1419_v63, %v1421_v34  ;;  %v1424_v29 = vsel %vm1414_vm15, %v1410_v35, 1326507024  ;;  %v1698_v1 = vadd.s32 1, %v6496_v54 }
 0x190   :  { %v6489_v37 = vmin.u32 %v1548_v11, %v8804_v57  ;;  %v1415_v8 = vsel %vm1411_vm11, %v1395_v0, %v1398_v45  ;;  %v1417_v17 = vsel %vm1413_vm2, %v1401_v56, %v1416_v55  ;;  %v1425_v4 = vsel %vm1413_vm2, %v1407_v46, %v1424_v29  ;;  %v7804_v55 = vld [vmem:[%s10604_s1] ss:$0 sm:$0xff]  ;;  %s7838_s1 = smov 32  }
 0x191   :  { %v1426_v13 = vsel %vm1412_vm5, %v1423_v39, %v1425_v4  ;;  %v8813_v27 = vmul.u32.u64.low %v8781_v38, %v1422_v59  ;;  %v8814_v24 = vmul.u32.u64.high %v8781_v38, %v1422_v59, %v8813_v27  ;;  %vm1699_vm8 = vcmp.gt.s32.totalorder %v1698_v1, 0 }
 0x192   :  { %v1550_v18 = vclz %v6489_v37  ;;  %v8818_v28 = vmul.u32.u64.low %v8781_v38, %v1426_v13  ;;  %v8819_v23 = vmul.u32.u64.high %v8781_v38, %v1426_v13, %v8818_v28  ;;  %v1700_v35 = vsel %vm1699_vm8, %v1698_v1, 0 }
 0x193   :  { %v1418_v56 = vsel %vm1412_vm5, %v1415_v8, %v1417_v17  ;;  %v1702_v46 = vand.u32 31, %v1700_v35  ;;  %v1538_v0 = vadd.s32 %v8757_v51, %v8755_v52  ;;  %v8829_v63 = vmul.f32 %v7804_v55, %v114_v43 }
 0x194   :  { %v6490_v54 = vadd.s32 4294967294, %v1550_v18  ;;  %v1437_v34 = vadd.s32 1, %v8814_v24  ;;  %v1696_v7 = vor.u32 8388608, %v8785_v61  ;;  %v1434_v52 = vmul.u32 %v8781_v38, %v1418_v56 }
 0x195   :  { %v1703_v39 = vsub.s32 32, %v1702_v46  ;;  %vm1436_vm10 = vc.u32 %v8819_v23, %v8813_v27  ;;  %v1701_v1 = vshrl.u32 %v1700_v35, 5  ;;  %v1705_v17 = vshll.u32 %v10718_v36, %v1702_v46 }
 0x196   :  { %vm6491_vm9 = vcmp.lt.s32.totalorder %v6490_v54, 0  ;;  %v1438_v29 = vsel %vm1436_vm10, %v1437_v34, %v8814_v24  ;;  %v1708_v61 = vshll.u32 %v10713_v10, %v1702_v46  ;;  %v1711_v4 = vshll.u32 %v10714_v25, %v1702_v46 }
 0x197   :  { %v1553_v51 = vsel %vm6491_vm9, 0, %v6490_v54  ;;  %v1706_v37 = vshrl.u32 %v10713_v10, %v1703_v39  ;;  %v1439_v8 = vadd.s32 %v1438_v29, %v1434_v52  ;;  %v1709_v38 = vshrl.u32 %v10714_v25, %v1703_v39 }
 0x198   :  { %v1554_v13 = vsub.s32 32, %v1553_v51  ;;  %v1558_v43 = vsub.s32 4294967266, %v1553_v51  ;;  %v1712_v18 = vshrl.u32 %v10715_v5, %v1703_v39  ;;  %v1714_v24 = vshll.u32 %v10715_v5, %v1702_v46 }
 0x199   :  { %v1440_v28 = vadd.s32 536870912, %v1439_v8  ;;  %v1707_v56 = vor.u32 %v1706_v37, %v1705_v17  ;;  %v1715_v35 = vshrl.u32 %v10717_v22, %v1703_v39  ;;  %v1710_v54 = vor.u32 %v1709_v38, %v1708_v61 }
 0x19a   :  { %v1713_v55 = vor.u32 %v1712_v18, %v1711_v4  ;;  %v1717_v34 = vshll.u32 %v10717_v22, %v1702_v46  ;;  %v1718_v52 = vshrl.u32 %v10709_v50, %v1703_v39  ;;  %vm10667_vm11 = vcmp.lt.s32.totalorder %v8401_v48, 0 }
 0x19b   :  { %v8851_v29 = vshrl.u32 %v1440_v28, 30  ;;  %v1716_v60 = vor.u32 %v1715_v35, %v1714_v24  ;;  %v1736_v11 = vshll.u32 %v1696_v7, 8  ;;  %v1556_v45 = vshrl.u32 %v1538_v0, %v1554_v13 }
 0x19c   :  { %v1704_v37 = vshrl.u32 %v10718_v36, %v1703_v39  ;;  %v1719_v17 = vor.u32 %v1718_v52, %v1717_v34  ;;  %v1588_v12 = vand.u32 2139095040, %v8829_v63  ;;  %v1559_v61 = vadd.s32 127, %v1558_v43 }
 0x19d   :  { %10734 = vst [vmem:[#allocation25_spill] sm:$0xff] %v8851_v29  ;;  %v1442_v4 = vshll.u32 %v8851_v29, 30  ;;  %vm1720_vm15 = vcmp.lt.s32.totalorder %v1701_v1, 1  ;;  %vm1723_vm2 = vcmp.lt.s32.totalorder %v1701_v1, 4  ;;  %vm1722_vm5 = vcmp.lt.s32.totalorder %v1701_v1, 3 }
 0x19e   :  { %v1725_v46 = vsel %vm1723_vm2, %v1713_v55, 2102212464  ;;  %v1728_v38 = vsel %vm1720_vm15, %v1707_v56, %v1710_v54  ;;  %v1729_v18 = vsel %vm1723_vm2, %v1716_v60, 920167782  ;;  %vm1721_vm8 = vcmp.lt.s32.totalorder %v1701_v1, 2 }
 0x19f   :  { %v8857_v28 = vsub.s32 %v1439_v8, %v1442_v4  ;;  %v1724_v7 = vsel %vm1720_vm15, %v1704_v37, %v1707_v56  ;;  %v1730_v24 = vsel %vm1722_vm5, %v1713_v55, %v1729_v18  ;;  %v1726_v0 = vsel %vm1722_vm5, %v1710_v54, %v1725_v46 }
 0x1a0   :  { %v1731_v13 = vsel %vm1721_vm8, %v1728_v38, %v1730_v24  ;;  %v1732_v39 = vsel %vm1720_vm15, %v1710_v54, %v1713_v55  ;;  %v1733_v35 = vsel %vm1723_vm2, %v1719_v17, 1326507024  ;;  %v1555_v34 = vshll.u32 %v8804_v57, %v1553_v51 }
 0x1a1   :  { %v1560_v43 = vshll.u32 %v1559_v61, 23  ;;  %v1445_v52 = vsub.s32 0, %v8857_v28  ;;  %v1734_v59 = vsel %vm1722_vm5, %v1716_v60, %v1733_v35  ;;  %v1589_v58 = vshrl.u32 %v1588_v12, 23 }
 0x1a2   :  { %v1735_v3 = vsel %vm1721_vm8, %v1732_v39, %v1734_v59  ;;  %v8861_v29 = vmul.u32.u64.low %v1736_v11, %v1731_v13  ;;  %v8862_v32 = vmul.u32.u64.high %v1736_v11, %v1731_v13, %v8861_v29  ;;  %v1727_v1 = vsel %vm1721_vm8, %v1724_v7, %v1726_v0 }
 0x1a3   :  { %v6485_v8 = vmin.u32 %v1445_v52, %v8857_v28  ;;  %v8865_v56 = vmul.u32.u64.low %v1736_v11, %v1735_v3  ;;  %v8866_v37 = vmul.u32.u64.high %v1736_v11, %v1735_v3, %v8865_v56  ;;  %v10735_v54 = vxor.u32 2147483648, %v8761_v62 }
 0x1a4   :  { %v10736_v60 = vand.u32 2147483647, %v8779_v2  ;;  %v10737_v59 = vcvt.s32.f32 %v8777_v26  ;;  %v8881_v12 = vor.u32 %v1556_v45, %v1555_v34  ;;  %v6492_v55 = vadd.s32 4294967169, %v1589_v58 }
 0x1a5   :  { %v8873_v57 = vsel %vm10667_vm11, %v10735_v54, %v8761_v62  ;;  %v10738_v17 = vand.u32 2147483647, %v8807_v15  ;;  %v10739_v3 = vcvt.s32.f32 %v8801_v53  ;;  %v1447_v4 = vclz %v6485_v8 }
 0x1a6   :  { %v8879_v51 = vmul.f32 %v10737_v59, %v10736_v60  ;;  %v10740_v46 = vand.u32 2147483647, %v7934_v21  ;;  %v10743_v26 = vsub.s32 4, %v8057_v9  ;;  %v8900_v58 = vor.u32 4788187, %v1560_v43 }
 0x1a7   :  { %v8887_v61 = vmul.f32 %v10739_v3, %v10738_v17  ;;  %v1743_v15 = vmul.u32 %v1736_v11, %v1727_v1  ;;  %v1746_v53 = vadd.s32 1, %v8862_v32  ;;  %v1595_v45 = vadd.s32 1, %v6492_v55 }
 0x1a8   :  { %vm8891_vm9 = vcmp.le.f32.partialorder %v10740_v46, 0.7853982  ;;  %v230_v2 = vsel %vm145_vm4, %v10743_v26, %v8057_v9  ;;  %v6486_v38 = vadd.s32 4294967294, %v1447_v4  ;;  %vm1745_vm10 = vc.u32 %v8866_v37, %v8861_v29 }
 0x1a9   :  { %v10744_v18 = vand.u32 2147483647, %v8829_v63  ;;  %v231_v24 = vsel %vm8891_vm9, %v7934_v21, %v8275_v47  ;;  %v1564_v0 = vcvt.s32.f32 %v8881_v12  ;;  %v1435_v9 = vadd.s32 %v8813_v27, %v8819_v23 }
 0x1aa   :  { %v1747_v11 = vsel %vm1745_vm10, %v1746_v53, %v8862_v32  ;;  %vm1596_vm4 = vcmp.gt.s32.totalorder %v1595_v45, 0  ;;  %vm6487_vm15 = vcmp.lt.s32.totalorder %v6486_v38, 0  ;;  %v232_v35 = vsel %vm8891_vm9, 0, %v230_v2 }
 0x1ab   :  { %v1592_v7 = vand.u32 8388607, %v10744_v18  ;;  %v1748_v13 = vadd.s32 %v1747_v11, %v1743_v15  ;;  %v1597_v39 = vsel %vm1596_vm4, %v1595_v45, 0  ;;  %v1562_v34 = vand.u32 2147483647, %v8900_v58 }
 0x1ac   :  { %v8917_v43 = vsel %vm6487_vm15, 0, %v6486_v38  ;;  %v1599_v52 = vand.u32 31, %v1597_v39  ;;  %7675 = vcosq.f32 %v231_v24  ;;  %v8921_v32 = vadd.s32 %v8861_v29, %v8866_v37 }
 0x1ad   :  { %v1455_v47 = vsub.s32 4294967266, %v8917_v43  ;;  %v1749_v8 = vadd.s32 536870912, %v1748_v13  ;;  %v1593_v1 = vor.u32 8388608, %v1592_v7  ;;  %7677 = vsinq.f32 %v231_v24 }
 0x1ae   :  { %v1598_v27 = vshrl.u32 %v1597_v39, 5  ;;  %v1600_v23 = vsub.s32 32, %v1599_v52  ;;  %v8923_v56 = vand.u32 3, %v232_v35  ;;  %v1602_v60 = vshll.u32 %v10718_v36, %v1599_v52 }
 0x1af   :  { %v8925_v54 = vshrl.u32 %v1749_v8, 30  ;;  %v1605_v59 = vshll.u32 %v10713_v10, %v1599_v52  ;;  %v1608_v55 = vshll.u32 %v10714_v25, %v1599_v52  ;;  %v1456_v17 = vadd.s32 127, %v1455_v47 }
 0x1b0   :  { %v1603_v3 = vshrl.u32 %v10713_v10, %v1600_v23  ;;  %v1606_v4 = vshrl.u32 %v10714_v25, %v1600_v23  ;;  %v1609_v29 = vshrl.u32 %v10715_v5, %v1600_v23  ;;  %v1611_v46 = vshll.u32 %v10715_v5, %v1599_v52 }
 0x1b1   :  { %v1751_v37 = vshll.u32 %v8925_v54, 30  ;;  %v1612_v62 = vshrl.u32 %v10717_v22, %v1600_v23  ;;  %v8936_v26 = vshll.u32 %v1593_v1, 8  ;;  %v1884_v45 = vadd.s32 3, %v232_v35 }
 0x1b2   :  { %v1604_v2 = vor.u32 %v1603_v3, %v1602_v60  ;;  %v1607_v15 = vor.u32 %v1606_v4, %v1605_v59  ;;  %v1610_v53 = vor.u32 %v1609_v29, %v1608_v55  ;;  %v1451_v38 = vsub.s32 32, %v8917_v43 }
 0x1b3   :  { %v8939_v18 = vsub.s32 %v1748_v13, %v1751_v37  ;;  %v1601_v10 = vshrl.u32 %v10718_v36, %v1600_v23  ;;  %v1613_v25 = vor.u32 %v1612_v62, %v1611_v46  ;;  %vm238_vm2 = vcmp.eq.s32.totalorder %v8923_v56, 0 }
 0x1b4   :  { %v1457_v7 = vshll.u32 %v1456_v17, 23  ;;  %v1614_v5 = vshll.u32 %v10717_v22, %v1599_v52  ;;  %v1615_v24 = vshrl.u32 %v10709_v50, %v1600_v23  ;;  %vm1617_vm5 = vcmp.lt.s32.totalorder %v1598_v27, 1 }
 0x1b5   :  { %v1754_v11 = vsub.s32 0, %v8939_v18  ;;  %vm1619_vm8 = vcmp.lt.s32.totalorder %v1598_v27, 3  ;;  %vm1620_vm9 = vcmp.lt.s32.totalorder %v1598_v27, 4  ;;  %v1621_v39 = vsel %vm1617_vm5, %v1601_v10, %v1604_v2 }
 0x1b6   :  { %v7676_v35 = vpop.eup %7675  ;;  %v1616_v13 = vor.u32 %v1615_v24, %v1614_v5  ;;  %v1622_v47 = vsel %vm1620_vm9, %v1610_v53, 2102212464  ;;  %v1625_v36 = vsel %vm1617_vm5, %v1604_v2, %v1607_v15  ;;  %v1626_v8 = vsel %vm1620_vm9, %v1613_v25, 920167782 }
 0x1b7   :  { %v7678_v1 = vpop.eup %7677  ;;  %v6497_v60 = vmin.u32 %v1754_v11, %v8939_v18  ;;  %vm1618_vm10 = vcmp.lt.s32.totalorder %v1598_v27, 2  ;;  %v1623_v22 = vsel %vm1619_vm8, %v1607_v15, %v1622_v47  ;;  %v1627_v50 = vsel %vm1619_vm8, %v1610_v53, %v1626_v8 }
 0x1b8   :  { %v1453_v52 = vshrl.u32 %v1435_v9, %v1451_v38  ;;  %v1628_v23 = vsel %vm1618_vm10, %v1625_v36, %v1627_v50  ;;  %v1629_v59 = vsel %vm1617_vm5, %v1607_v15, %v1610_v53  ;;  %v1630_v55 = vsel %vm1620_vm9, %v1616_v13, 1326507024 }
 0x1b9   :  { %v1458_v17 = vor.u32 4788187, %v1457_v7  ;;  %v1756_v3 = vclz %v6497_v60  ;;  %v1624_v4 = vsel %vm1618_vm10, %v1621_v39, %v1623_v22  ;;  %v1631_v29 = vsel %vm1619_vm8, %v1613_v25, %v1630_v55 }
 0x1ba   :  { %v1632_v37 = vsel %vm1618_vm10, %v1629_v59, %v1631_v29  ;;  %v8954_v46 = vmul.u32.u64.low %v8936_v26, %v1628_v23  ;;  %v8955_v62 = vmul.u32.u64.high %v8936_v26, %v1628_v23, %v8954_v46  ;;  %vm235_vm4 = vweird.f32 %v7934_v21 }
 0x1bb   :  { %v239_v2 = vxor.u32 2147483648, %v7678_v1  ;;  %v1452_v9 = vshll.u32 %v8857_v28, %v8917_v43  ;;  %v6498_v38 = vadd.s32 4294967294, %v1756_v3  ;;  %vm237_vm15 = vcmp.lt.s32.totalorder %v8923_v56, 2 }
 0x1bc   :  { %v8962_v15 = vmul.u32.u64.low %v8936_v26, %v1632_v37  ;;  %v8963_v53 = vmul.u32.u64.high %v8936_v26, %v1632_v37, %v8962_v15  ;;  %v242_v27 = vxor.u32 2147483648, %v7676_v35  ;;  %v1885_v10 = vand.u32 3, %v1884_v45 }
 0x1bd   :  { %v240_v25 = vsel %vm238_vm2, %v7676_v35, %v239_v2  ;;  %v1454_v7 = vor.u32 %v1453_v52, %v1452_v9  ;;  %v1459_v5 = vand.u32 2147483647, %v1458_v17  ;;  %vm6499_vm5 = vcmp.lt.s32.totalorder %v6498_v38, 0 }
 0x1be   :  { %v1640_v24 = vmul.u32 %v8936_v26, %v1624_v4  ;;  %v1759_v11 = vsel %vm6499_vm5, 0, %v6498_v38  ;;  %v1643_v28 = vadd.s32 1, %v8955_v62  ;;  %vm241_vm8 = vcmp.eq.s32.totalorder %v8923_v56, 2 }
 0x1bf   :  { %v435_v43 = vsub.s32 4, %v8033_v31  ;;  %v1760_v39 = vsub.s32 32, %v1759_v11  ;;  %v1764_v13 = vsub.s32 4294967266, %v1759_v11  ;;  %vm1887_vm9 = vcmp.eq.s32.totalorder %v1885_v10, 0 }
 0x1c0   :  { %v10745_v45 = vand.u32 2147483647, %v7931_v20  ;;  %vm1642_vm2 = vc.u32 %v8963_v53, %v8954_v46  ;;  %v1889_v26 = vsel %vm1887_vm9, %v7676_v35, %v239_v2  ;;  %vm1890_vm5 = vcmp.eq.s32.totalorder %v1885_v10, 2 }
 0x1c1   :  { %v243_v36 = vsel %vm241_vm8, %v242_v27, %v7678_v1  ;;  %v1765_v8 = vadd.s32 127, %v1764_v13  ;;  %v1644_v60 = vsel %vm1642_vm2, %v1643_v28, %v8955_v62  ;;  %vm1886_vm7 = vcmp.lt.s32.totalorder %v1885_v10, 2 }
 0x1c2   :  { %vm8974_vm10 = vcmp.le.f32.partialorder %v10745_v45, 0.7853982  ;;  %v1892_v22 = vsel %vm1890_vm5, %v242_v27, %v7678_v1  ;;  %v1645_v50 = vadd.s32 %v1644_v60, %v1640_v24  ;;  %v244_v23 = vsel %vm237_vm15, %v240_v25, %v243_v36 }
 0x1c3   :  { %v1893_v52 = vsel %vm1886_vm7, %v1889_v26, %v1892_v22  ;;  %v436_v59 = vsel %vm351_vm3, %v435_v43, %v8033_v31  ;;  %v1762_v55 = vshrl.u32 %v8921_v32, %v1760_v39  ;;  %v1766_v17 = vshll.u32 %v1765_v8, 23  ;;  %v10750_v26 = vld [vmem:[#allocation9_spill] sm:$0xff] }
 0x1c4   :  { %v1894_v35 = vsel %vm235_vm4, nan, %v1893_v52  ;;  %v8991_v3 = vsel %vm235_vm4, nan, %v244_v23  ;;  %v1461_v1 = vcvt.s32.f32 %v1454_v7  ;;  %v1646_v4 = vadd.s32 536870912, %v1645_v50 }
 0x1c5   :  { %3471 = vrot.lane.b32.xlu0 %v1894_v35, %s7838_s1  ;;  %v437_v31 = vsel %vm8974_vm10, %v7931_v20, %v8270_v6  ;;  %v438_v32 = vsel %vm8974_vm10, 0, %v436_v59  ;;  %v9004_v21 = vmul.f32 %v1564_v0, %v1562_v34  ;;  %v1761_v56 = vshll.u32 %v8939_v18, %v1759_v11 }
 0x1c6   :  { %v1767_v29 = vor.u32 4788187, %v1766_v17  ;;  %7679 = vcosq.f32 %v437_v31  ;;  %v9007_v37 = vmul.f32 %v1461_v1, %v1459_v5  ;;  %v9009_v62 = vshrl.u32 %v1646_v4, 30 }
 0x1c7   :  { %7681 = vsinq.f32 %v437_v31  ;;  %v332_v6 = vsub.s32 4, %v8158_v41  ;;  %v1360_v2 = vxor.u32 2147483648, %v8879_v51  ;;  %v1763_v9 = vor.u32 %v1762_v55, %v1761_v56 }
 0x1c8   :  { %v2092_v38 = vadd.s32 3, %v438_v32  ;;  %v10748_v58 = vand.u32 2147483647, %v7950_v42  ;;  %v1648_v12 = vshll.u32 %v9009_v62, 30  ;;  %v442_v0 = vand.u32 3, %v438_v32 }
 0x1c9   :  { %v333_v34 = vsel %vm248_vm14, %v332_v6, %v8158_v41  ;;  %v1257_v15 = vxor.u32 2147483648, %v8887_v61  ;;  %v1768_v27 = vand.u32 2147483647, %v1767_v29  ;;  %v1566_v25 = vxor.u32 2147483648, %v9004_v21 }
 0x1ca   :  { %vm247_vm3 = vcmp.le.f32.partialorder %v10748_v58, 0.7853982  ;;  %v1463_v7 = vxor.u32 2147483648, %v9007_v37  ;;  %v9026_v5 = vadd.s32 %v8954_v46, %v8963_v53  ;;  %v9028_v24 = vsub.s32 %v1645_v50, %v1648_v12 }
 0x1cb   :  { %v334_v18 = vsel %vm247_vm3, %v7950_v42, %v8473_v40  ;;  %v335_v10 = vsel %vm247_vm3, 0, %v333_v34  ;;  %v1770_v11 = vcvt.s32.f32 %v1763_v9  ;;  %v2093_v41 = vand.u32 3, %v2092_v38 }
 0x1cc   :  { %7683 = vcosq.f32 %v334_v18  ;;  %v1988_v28 = vadd.s32 3, %v335_v10  ;;  %v1651_v40 = vsub.s32 0, %v9028_v24  ;;  %vm441_vm14 = vweird.f32 %v7931_v20 }
 0x1cd   :  { %7685 = vsinq.f32 %v334_v18  ;;  %vm443_vm7 = vcmp.lt.s32.totalorder %v442_v0, 2  ;;  %v9032_v43 = vand.u32 3, %v335_v10  ;;  %v538_v39 = vsub.s32 4, %v8091_v14 }
 0x1ce   :  { %v9035_v13 = vmul.f32 %v1770_v11, %v1768_v27  ;;  %vm444_vm4 = vcmp.eq.s32.totalorder %v442_v0, 0  ;;  %vm447_vm15 = vcmp.eq.s32.totalorder %v442_v0, 2  ;;  %v10749_v46 = vand.u32 2147483647, %v7945_v30  ;;  %v10755_v0 = vld [vmem:[#allocation13_spill] sm:$0xff] }
 0x1cf   :  { %v6493_v53 = vmin.u32 %v1651_v40, %v9028_v24  ;;  %v1989_v45 = vand.u32 3, %v1988_v28  ;;  %v539_v47 = vsel %vm454_vm12, %v538_v39, %v8091_v14  ;;  %vm2094_vm9 = vcmp.lt.s32.totalorder %v2093_v41, 2  ;;  %v10751_v14 = vld [vmem:[#allocation8_spill] sm:$0xff] }
 0x1d0   :  { %vm453_vm8 = vcmp.le.f32.partialorder %v10749_v46, 0.7853982  ;;  %v7680_v8 = vpop.eup %7679  ;;  %vm2095_vm10 = vcmp.eq.s32.totalorder %v2093_v41, 0  ;;  %vm2098_vm2 = vcmp.eq.s32.totalorder %v2093_v41, 2  ;;  %vm340_vm5 = vcmp.lt.s32.totalorder %v9032_v43, 2  ;;  %v10756_v41 = vld [vmem:[#allocation14_spill] sm:$0xff] }
 0x1d1   :  { %v540_v36 = vsel %vm453_vm8, %v7945_v30, %v10750_v26  ;;  %v7682_v60 = vpop.eup %7681  ;;  %v1653_v22 = vclz %v6493_v53  ;;  %v448_v50 = vxor.u32 2147483648, %v7680_v8  ;;  %vm341_vm3 = vcmp.eq.s32.totalorder %v9032_v43, 0 }
 0x1d2   :  { %7687 = vcosq.f32 %v540_v36  ;;  %v541_v52 = vsel %vm453_vm8, 0, %v539_v47  ;;  %v445_v23 = vxor.u32 2147483648, %v7682_v60  ;;  %vm338_vm11 = vweird.f32 %v7950_v42 }
 0x1d3   :  { %vm344_vm12 = vcmp.eq.s32.totalorder %v9032_v43, 2  ;;  %7689 = vsinq.f32 %v540_v36  ;;  %v641_v59 = vsub.s32 4, %v10751_v14  ;;  %v6494_v55 = vadd.s32 4294967294, %v1653_v22 }
 0x1d4   :  { %v449_v17 = vsel %vm447_vm15, %v448_v50, %v7682_v60  ;;  %v2100_v35 = vsel %vm2098_vm2, %v448_v50, %v7682_v60  ;;  %vm1990_vm1 = vcmp.lt.s32.totalorder %v1989_v45, 2  ;;  %v10752_v1 = vand.u32 2147483647, %v8135_v16 }
 0x1d5   :  { %v446_v32 = vsel %vm444_vm4, %v7680_v8, %v445_v23  ;;  %v2097_v56 = vsel %vm2095_vm10, %v7680_v8, %v445_v23  ;;  %v545_v29 = vand.u32 3, %v541_v52  ;;  %v2196_v6 = vadd.s32 3, %v541_v52 }
 0x1d6   :  { %vm9053_vm6 = vcmp.le.f32.partialorder %v10752_v1, 0.7853982  ;;  %v7684_v31 = vpop.eup %7683  ;;  %vm6495_vm8 = vcmp.lt.s32.totalorder %v6494_v55, 0  ;;  %v450_v9 = vsel %vm443_vm7, %v446_v32, %v449_v17  ;;  %v2101_v38 = vsel %vm2094_vm9, %v2097_v56, %v2100_v35 }
 0x1d7   :  { %v345_v58 = vxor.u32 2147483648, %v7684_v31  ;;  %v7686_v12 = vpop.eup %7685  ;;  %v1656_v34 = vsel %vm6495_vm8, 0, %v6494_v55  ;;  %v9063_v18 = vsel %vm441_vm14, nan, %v450_v9  ;;  %v2102_v27 = vsel %vm441_vm14, nan, %v2101_v38 }
 0x1d8   :  { %vm1991_vm4 = vcmp.eq.s32.totalorder %v1989_v45, 0  ;;  %v1657_v10 = vsub.s32 32, %v1656_v34  ;;  %v1661_v11 = vsub.s32 4294967266, %v1656_v34  ;;  %3475 = vrot.lane.b32.xlu0 %v2102_v27, %s7838_s1  ;;  %v342_v28 = vxor.u32 2147483648, %v7686_v12 }
 0x1d9   :  { %vm1994_vm15 = vcmp.eq.s32.totalorder %v1989_v45, 2  ;;  %vm10673_vm7 = vcmp.lt.s32.totalorder %v10755_v0, 0  ;;  %vm10674_vm9 = vcmp.lt.s32.totalorder %v10756_v41, 0  ;;  %v346_v39 = vsel %vm344_vm12, %v345_v58, %v7686_v12 }
 0x1da   :  { %v1996_v40 = vsel %vm1994_vm15, %v345_v58, %v7686_v12  ;;  %vm544_vm10 = vweird.f32 %v7945_v30  ;;  %vm547_vm2 = vcmp.eq.s32.totalorder %v545_v29, 0  ;;  %v2197_v20 = vand.u32 3, %v2196_v6 }
 0x1db   :  { %v1662_v46 = vadd.s32 127, %v1661_v11  ;;  %v1993_v53 = vsel %vm1991_vm4, %v7684_v31, %v342_v28  ;;  %v343_v47 = vsel %vm341_vm3, %v7684_v31, %v342_v28  ;;  %vm550_vm14 = vcmp.eq.s32.totalorder %v545_v29, 2 }
 0x1dc   :  { %v7688_v26 = vpop.eup %7687  ;;  %vm10671_vm8 = vcmp.lt.s32.totalorder %v8579_v19, 0  ;;  %vm10672_vm13 = vcmp.lt.s32.totalorder %v8696_v33, 0  ;;  %v1659_v36 = vshrl.u32 %v9026_v5, %v1657_v10  ;;  %v1997_v8 = vsel %vm1990_vm1, %v1993_v53, %v1996_v40  ;;  %v10760_v10 = vld [vmem:[#allocation16_spill] sm:$0xff] }
 0x1dd   :  { %v347_v60 = vsel %vm340_vm5, %v343_v47, %v346_v39  ;;  %v642_v22 = vsel %vm557_vm0, %v641_v59, %v10751_v14  ;;  %v1658_v50 = vshll.u32 %v9028_v24, %v1656_v34  ;;  %v1663_v52 = vshll.u32 %v1662_v46, 23  ;;  %v7690_v5 = vpop.eup %7689  ;;  %v10759_v34 = vld [vmem:[#allocation7_spill] sm:$0xff]  ;;  %v10766_v53 = vld [vmem:[#allocation20_spill] sm:$0xff] }
 0x1de   :  { %v1998_v23 = vsel %vm338_vm11, nan, %v1997_v8  ;;  %v9089_v55 = vsel %vm338_vm11, nan, %v347_v60  ;;  %v551_v45 = vxor.u32 2147483648, %v7688_v26  ;;  %vm2199_vm1 = vcmp.eq.s32.totalorder %v2197_v20, 0 }
 0x1df   :  { %3473 = vrot.lane.b32.xlu1 %v1998_v23, %s7838_s1  ;;  %vm2202_vm5 = vcmp.eq.s32.totalorder %v2197_v20, 2  ;;  %v643_v43 = vsel %vm9053_vm6, %v8135_v16, %v8682_v44  ;;  %v1664_v24 = vor.u32 4788187, %v1663_v52  ;;  %v548_v14 = vxor.u32 2147483648, %v7690_v5 }
 0x1e0   :  { %v644_v59 = vsel %vm9053_vm6, 0, %v642_v22  ;;  %7691 = vcosq.f32 %v643_v43  ;;  %v1660_v42 = vor.u32 %v1659_v36, %v1658_v50  ;;  %v552_v17 = vsel %vm550_vm14, %v551_v45, %v7690_v5 }
 0x1e1   :  { %v2204_v35 = vsel %vm2202_vm5, %v551_v45, %v7690_v5  ;;  %7693 = vsinq.f32 %v643_v43  ;;  %vm546_vm0 = vcmp.lt.s32.totalorder %v545_v29, 2  ;;  %v549_v1 = vsel %vm547_vm2, %v7688_v26, %v548_v14 }
 0x1e2   :  { %vm2198_vm11 = vcmp.lt.s32.totalorder %v2197_v20, 2  ;;  %v2201_v31 = vsel %vm2199_vm1, %v7688_v26, %v548_v14  ;;  %v1665_v32 = vand.u32 2147483647, %v1664_v24  ;;  %v553_v56 = vsel %vm546_vm0, %v549_v1, %v552_v17 }
 0x1e3   :  { %v2205_v6 = vsel %vm2198_vm11, %v2201_v31, %v2204_v35  ;;  %v2300_v44 = vadd.s32 3, %v644_v59  ;;  %v9105_v4 = vsel %vm10673_vm7, %v1360_v2, %v8879_v51  ;;  %v9112_v29 = vsel %vm10674_vm9, %v1257_v15, %v8887_v61  ;;  %v10757_v51 = vld [vmem:[#allocation5_spill] sm:$0xff] }
 0x1e4   :  { %v9116_v9 = vsel %vm544_vm10, nan, %v553_v56  ;;  %v2206_v38 = vsel %vm544_vm10, nan, %v2205_v6  ;;  %v1667_v58 = vcvt.s32.f32 %v1660_v42  ;;  %v648_v12 = vand.u32 3, %v644_v59  ;;  %v10768_v42 = vld [vmem:[#allocation6_spill] sm:$0xff] }
 0x1e5   :  { %3477 = vrot.lane.b32.xlu1 %v2206_v38, %s7838_s1  ;;  %v10758_v2 = vand.u32 2147483647, %v10757_v51  ;;  %v744_v27 = vsub.s32 4, %v10759_v34  ;;  %v9129_v61 = vsel %vm10671_vm8, %v1566_v25, %v9004_v21  ;;  %v9136_v30 = vsel %vm10672_vm13, %v1463_v7, %v9007_v37  ;;  %v10765_v7 = vld [vmem:[#allocation12_spill] sm:$0xff] }
 0x1e6   :  { %v1772_v15 = vxor.u32 2147483648, %v9035_v13  ;;  %v9141_v28 = vmul.f32 %v1667_v58, %v1665_v32  ;;  %vm647_vm3 = vweird.f32 %v8135_v16  ;;  %v2301_v40 = vand.u32 3, %v2300_v44  ;;  %v10772_v44 = vld [vmem:[#allocation11_spill] sm:$0xff]  ;;  %v10774_v16 = vld [vmem:[#allocation17_spill] sm:$0xff] }
 0x1e7   :  { %vm659_vm6 = vcmp.le.f32.partialorder %v10758_v2, 0.7853982  ;;  %vm10761_vm12 = vcmp.lt.s32.totalorder %v10757_v51, 0  ;;  %v10762_v39 = vand.u32 2147483647, %v8221_v49  ;;  %v847_v20 = vsub.s32 4, %v10765_v7 }
 0x1e8   :  { %v746_v11 = vsel %vm659_vm6, %v10757_v51, %v10760_v10  ;;  %v745_v21 = vsel %vm10761_vm12, %v744_v27, %v10759_v34  ;;  %vm649_vm15 = vcmp.lt.s32.totalorder %v648_v12, 2  ;;  %vm650_vm10 = vcmp.eq.s32.totalorder %v648_v12, 0  ;;  %v10773_v58 = vld [vmem:[#allocation19_spill] sm:$0xff] }
 0x1e9   :  { %v747_v25 = vsel %vm659_vm6, 0, %v745_v21  ;;  %7695 = vcosq.f32 %v746_v11  ;;  %vm9149_vm4 = vcmp.le.f32.partialorder %v10762_v39, 0.7853982  ;;  %vm653_vm2 = vcmp.eq.s32.totalorder %v648_v12, 2 }
 0x1ea   :  { %7697 = vsinq.f32 %v746_v11  ;;  %v2404_v46 = vadd.s32 3, %v747_v25  ;;  %v849_v47 = vsel %vm9149_vm4, %v8221_v49, %v10766_v53  ;;  %v7692_v26 = vpop.eup %7691  ;;  %vm10767_vm14 = vcmp.lt.s32.totalorder %v8221_v49, 0 }
 0x1eb   :  { %v848_v36 = vsel %vm10767_vm14, %v847_v20, %v10765_v7  ;;  %7699 = vcosq.f32 %v849_v47  ;;  %v7694_v8 = vpop.eup %7693  ;;  %v654_v60 = vxor.u32 2147483648, %v7692_v26  ;;  %vm2302_vm1 = vcmp.lt.s32.totalorder %v2301_v40, 2 }
 0x1ec   :  { %vm2306_vm5 = vcmp.eq.s32.totalorder %v2301_v40, 2  ;;  %v751_v22 = vand.u32 3, %v747_v25  ;;  %v651_v50 = vxor.u32 2147483648, %v7694_v8  ;;  %v2405_v52 = vand.u32 3, %v2404_v46 }
 0x1ed   :  { %v850_v23 = vsel %vm9149_vm4, 0, %v848_v36  ;;  %7701 = vsinq.f32 %v849_v47  ;;  %vm2303_vm0 = vcmp.eq.s32.totalorder %v2301_v40, 0  ;;  %v2308_v5 = vsel %vm2306_vm5, %v654_v60, %v7694_v8 }
 0x1ee   :  { %v655_v45 = vsel %vm653_vm2, %v654_v60, %v7694_v8  ;;  %v2508_v43 = vadd.s32 3, %v850_v23  ;;  %v2305_v24 = vsel %vm2303_vm0, %v7692_v26, %v651_v50  ;;  %v652_v14 = vsel %vm650_vm10, %v7692_v26, %v651_v50 }
 0x1ef   :  { %v854_v59 = vand.u32 3, %v850_v23  ;;  %v10769_v17 = vand.u32 2147483647, %v10768_v42  ;;  %v2309_v1 = vsel %vm2302_vm1, %v2305_v24, %v2308_v5  ;;  %v656_v31 = vsel %vm649_vm15, %v652_v14, %v655_v45 }
 0x1f0   :  { %vm750_vm6 = vweird.f32 %v10757_v51  ;;  %vm752_vm12 = vcmp.lt.s32.totalorder %v751_v22, 2  ;;  %vm753_vm4 = vcmp.eq.s32.totalorder %v751_v22, 0  ;;  %v2310_v32 = vsel %vm647_vm3, nan, %v2309_v1 }
 0x1f1   :  { %vm9166_vm11 = vcmp.le.f32.partialorder %v10769_v17, 0.7853982  ;;  %v9176_v56 = vsel %vm647_vm3, nan, %v656_v31  ;;  %vm756_vm10 = vcmp.eq.s32.totalorder %v751_v22, 2  ;;  %vm2406_vm2 = vcmp.lt.s32.totalorder %v2405_v52, 2  ;;  %3479 = vrot.lane.b32.xlu0 %v2310_v32, %s7838_s1 }
 0x1f2   :  { %vm2407_vm14 = vcmp.eq.s32.totalorder %v2405_v52, 0  ;;  %v2509_v6 = vand.u32 3, %v2508_v43  ;;  %v950_v38 = vsub.s32 4, %v10772_v44  ;;  %v952_v12 = vsel %vm9166_vm11, %v10768_v42, %v10773_v58 }
 0x1f3   :  { %v7696_v2 = vpop.eup %7695  ;;  %vm2410_vm15 = vcmp.eq.s32.totalorder %v2405_v52, 2  ;;  %vm853_vm1 = vweird.f32 %v8221_v49  ;;  %vm855_vm5 = vcmp.lt.s32.totalorder %v854_v59, 2  ;;  %7703 = vcosq.f32 %v952_v12 }
 0x1f4   :  { %v1053_v34 = vsub.s32 4, %v10774_v16  ;;  %v7698_v27 = vpop.eup %7697  ;;  %v757_v10 = vxor.u32 2147483648, %v7696_v2  ;;  %vm856_vm3 = vcmp.eq.s32.totalorder %v854_v59, 0  ;;  %vm859_vm0 = vcmp.eq.s32.totalorder %v854_v59, 2 }
 0x1f5   :  { %vm2511_vm8 = vcmp.eq.s32.totalorder %v2509_v6, 0  ;;  %v7700_v11 = vpop.eup %7699  ;;  %v754_v40 = vxor.u32 2147483648, %v7698_v27  ;;  %vm2514_vm13 = vcmp.eq.s32.totalorder %v2509_v6, 2  ;;  %vm10775_vm7 = vcmp.lt.s32.totalorder %v10768_v42, 0 }
 0x1f6   :  { %v951_v21 = vsel %vm10775_vm7, %v950_v38, %v10772_v44  ;;  %7705 = vsinq.f32 %v952_v12  ;;  %v758_v25 = vsel %vm756_vm10, %v757_v10, %v7698_v27  ;;  %v2412_v39 = vsel %vm2410_vm15, %v757_v10, %v7698_v27  ;;  %v10778_v38 = vld [vmem:[#allocation10_spill] sm:$0xff] }
 0x1f7   :  { %v860_v37 = vxor.u32 2147483648, %v7700_v11  ;;  %v953_v7 = vsel %vm9166_vm11, 0, %v951_v21  ;;  %v7702_v20 = vpop.eup %7701  ;;  %v755_v46 = vsel %vm753_vm4, %v7696_v2, %v754_v40  ;;  %v2409_v53 = vsel %vm2407_vm14, %v7696_v2, %v754_v40  ;;  %v10782_v2 = vld [vmem:[#allocation15_spill] sm:$0xff] }
 0x1f8   :  { %v2612_v47 = vadd.s32 3, %v953_v7  ;;  %vm10776_vm9 = vcmp.lt.s32.totalorder %v8401_v48, 0  ;;  %v759_v36 = vsel %vm752_vm12, %v755_v46, %v758_v25  ;;  %v2413_v8 = vsel %vm2406_vm2, %v2409_v53, %v2412_v39 }
 0x1f9   :  { %v1054_v26 = vsel %vm10776_vm9, %v1053_v34, %v10774_v16  ;;  %v857_v60 = vxor.u32 2147483648, %v7702_v20  ;;  %v2516_v50 = vsel %vm2514_vm13, %v860_v37, %v7702_v20  ;;  %v9202_v23 = vsel %vm750_vm6, nan, %v759_v36  ;;  %v10783_v34 = vld [vmem:[#allocation21_spill] sm:$0xff] }
 0x1fa   :  { %v2414_v5 = vsel %vm750_vm6, nan, %v2413_v8  ;;  %v861_v45 = vsel %vm859_vm0, %v860_v37, %v7702_v20  ;;  %v957_v43 = vand.u32 3, %v953_v7  ;;  %vm2510_vm7 = vcmp.lt.s32.totalorder %v2509_v6, 2 }
 0x1fb   :  { %3481 = vrot.lane.b32.xlu1 %v2414_v5, %s7838_s1  ;;  %v2513_v22 = vsel %vm2511_vm8, %v7700_v11, %v857_v60  ;;  %v858_v52 = vsel %vm856_vm3, %v7700_v11, %v857_v60  ;;  %v10777_v24 = vand.u32 2147483647, %v8401_v48  ;;  %v2613_v35 = vand.u32 3, %v2612_v47 }
 0x1fc   :  { %v2517_v14 = vsel %vm2510_vm7, %v2513_v22, %v2516_v50  ;;  %v862_v17 = vsel %vm855_vm5, %v858_v52, %v861_v45  ;;  %v1669_v44 = vxor.u32 2147483648, %v9141_v28  ;;  %vm956_vm9 = vweird.f32 %v10768_v42  ;;  %v10788_v50 = vld [vmem:[#allocation23_spill] sm:$0xff] }
 0x1fd   :  { %vm968_vm13 = vcmp.le.f32.partialorder %v10777_v24, 0.7853982  ;;  %v2518_v1 = vsel %vm853_vm1, nan, %v2517_v14  ;;  %v9219_v31 = vsel %vm853_vm1, nan, %v862_v17  ;;  %v7704_v6 = vpop.eup %7703  ;;  %vm958_vm8 = vcmp.lt.s32.totalorder %v957_v43, 2  ;;  %v10789_v24 = vld [vmem:[#allocation18_spill] sm:$0xff] }
 0x1fe   :  { %v1055_v51 = vsel %vm968_vm13, %v8401_v48, %v8873_v57  ;;  %v1056_v32 = vsel %vm968_vm13, 0, %v1054_v26  ;;  %3483 = vrot.lane.b32.xlu0 %v2518_v1, %s7838_s1  ;;  %vm959_vm11 = vcmp.eq.s32.totalorder %v957_v43, 0  ;;  %v963_v57 = vxor.u32 2147483648, %v7704_v6 }
 0x1ff   :  { %7707 = vcosq.f32 %v1055_v51  ;;  %v2716_v59 = vadd.s32 3, %v1056_v32  ;;  %v10779_v58 = vand.u32 2147483647, %v10778_v38  ;;  %vm962_vm12 = vcmp.eq.s32.totalorder %v957_v43, 2 }
 0x200   :  { %7709 = vsinq.f32 %v1055_v51  ;;  %v7706_v12 = vpop.eup %7705  ;;  %vm2618_vm4 = vcmp.eq.s32.totalorder %v2613_v35, 2  ;;  %v1156_v16 = vsub.s32 4, %v10782_v2  ;;  %v1060_v21 = vand.u32 3, %v1056_v32 }
 0x201   :  { %vm9226_vm6 = vcmp.le.f32.partialorder %v10779_v58, 0.7853982  ;;  %v960_v10 = vxor.u32 2147483648, %v7706_v12  ;;  %v964_v11 = vsel %vm962_vm12, %v963_v57, %v7706_v12  ;;  %v2620_v40 = vsel %vm2618_vm4, %v963_v57, %v7706_v12 }
 0x202   :  { %v1158_v27 = vsel %vm9226_vm6, %v10778_v38, %v10783_v34  ;;  %vm2614_vm10 = vcmp.lt.s32.totalorder %v2613_v35, 2  ;;  %vm2615_vm2 = vcmp.eq.s32.totalorder %v2613_v35, 0  ;;  %v2717_v25 = vand.u32 3, %v2716_v59 }
 0x203   :  { %vm10784_vm14 = vcmp.lt.s32.totalorder %v10778_v38, 0  ;;  %v961_v37 = vsel %vm959_vm11, %v7704_v6, %v960_v10  ;;  %v2617_v7 = vsel %vm2615_vm2, %v7704_v6, %v960_v10  ;;  %7711 = vcosq.f32 %v1158_v27 }
 0x204   :  { %v1157_v39 = vsel %vm10784_vm14, %v1156_v16, %v10782_v2  ;;  %v965_v46 = vsel %vm958_vm8, %v961_v37, %v964_v11  ;;  %v2621_v53 = vsel %vm2614_vm10, %v2617_v7, %v2620_v40  ;;  %vm1059_vm15 = vweird.f32 %v8401_v48 }
 0x205   :  { %v1159_v20 = vsel %vm9226_vm6, 0, %v1157_v39  ;;  %v10785_v47 = vand.u32 2147483647, %v10756_v41  ;;  %v9251_v36 = vsel %vm956_vm9, nan, %v965_v46  ;;  %v2622_v8 = vsel %vm956_vm9, nan, %v2621_v53 }
 0x206   :  { %vm1061_vm5 = vcmp.lt.s32.totalorder %v1060_v21, 2  ;;  %7713 = vsinq.f32 %v1158_v27  ;;  %3485 = vrot.lane.b32.xlu1 %v2622_v8, %s7838_s1  ;;  %vm1062_vm3 = vcmp.eq.s32.totalorder %v1060_v21, 0  ;;  %v2820_v60 = vadd.s32 3, %v1159_v20 }
 0x207   :  { %vm9245_vm1 = vcmp.le.f32.partialorder %v10785_v47, 0.7853982  ;;  %v1259_v5 = vsub.s32 4, %v10788_v50  ;;  %vm1065_vm0 = vcmp.eq.s32.totalorder %v1060_v21, 2  ;;  %vm2718_vm7 = vcmp.lt.s32.totalorder %v2717_v25, 2 }
 0x208   :  { %v1261_v45 = vsel %vm9245_vm1, %v10756_v41, %v9112_v29  ;;  %v1163_v22 = vand.u32 3, %v1159_v20  ;;  %vm2719_vm13 = vcmp.eq.s32.totalorder %v2717_v25, 0  ;;  %vm2722_vm9 = vcmp.eq.s32.totalorder %v2717_v25, 2  ;;  %v10799_v29 = vld [vmem:[#allocation25_spill] sm:$0xff] }
 0x209   :  { %v7708_v43 = vpop.eup %7707  ;;  %7715 = vcosq.f32 %v1261_v45  ;;  %v1362_v14 = vsub.s32 4, %v10789_v24  ;;  %vm10790_vm8 = vcmp.lt.s32.totalorder %v10756_v41, 0  ;;  %v10791_v51 = vand.u32 2147483647, %v10755_v0 }
 0x20a   :  { %v7710_v42 = vpop.eup %7709  ;;  %v1066_v52 = vxor.u32 2147483648, %v7708_v43  ;;  %v1260_v35 = vsel %vm10790_vm8, %v1259_v5, %v10788_v50  ;;  %7717 = vsinq.f32 %v1261_v45  ;;  %v2821_v6 = vand.u32 3, %v2820_v60 }
 0x20b   :  { %v1063_v17 = vxor.u32 2147483648, %v7710_v42  ;;  %vm9267_vm11 = vcmp.le.f32.partialorder %v10791_v51, 0.7853982  ;;  %v1262_v57 = vsel %vm9245_vm1, 0, %v1260_v35  ;;  %vm1162_vm6 = vweird.f32 %v10778_v38  ;;  %v10798_v35 = vld [vmem:[#allocation22_spill] sm:$0xff] }
 0x20c   :  { %v2724_v1 = vsel %vm2722_vm9, %v1066_v52, %v7710_v42  ;;  %v1067_v32 = vsel %vm1065_vm0, %v1066_v52, %v7710_v42  ;;  %vm1164_vm12 = vcmp.lt.s32.totalorder %v1163_v22, 2  ;;  %vm1165_vm4 = vcmp.eq.s32.totalorder %v1163_v22, 0 }
 0x20d   :  { %v2721_v59 = vsel %vm2719_vm13, %v7708_v43, %v1063_v17  ;;  %v1064_v58 = vsel %vm1062_vm3, %v7708_v43, %v1063_v17  ;;  %v1266_v2 = vand.u32 3, %v1262_v57  ;;  %vm10794_vm10 = vcmp.lt.s32.totalorder %v10755_v0, 0  ;;  %v7712_v34 = vpop.eup %7711  ;;  %v9453_v17 = vld [vmem:[%s10605_s2 + $0x20] sm:$0xff] }
 0x20e   :  { %v2725_v49 = vsel %vm2718_vm7, %v2721_v59, %v2724_v1  ;;  %v1068_v12 = vsel %vm1061_vm5, %v1064_v58, %v1067_v32  ;;  %v1363_v16 = vsel %vm10794_vm10, %v1362_v14, %v10789_v24  ;;  %v2924_v11 = vadd.s32 3, %v1262_v57 }
 0x20f   :  { %v2726_v27 = vsel %vm1059_vm15, nan, %v2725_v49  ;;  %v9284_v10 = vsel %vm1059_vm15, nan, %v1068_v12  ;;  %v1364_v40 = vsel %vm9267_vm11, %v10755_v0, %v9105_v4  ;;  %vm1587_vm2 = vcmp.lt.s32.totalorder %v8829_v63, 0 }
 0x210   :  { %3487 = vrot.lane.b32.xlu0 %v2726_v27, %s7838_s1  ;;  %vm1168_vm14 = vcmp.eq.s32.totalorder %v1163_v22, 2  ;;  %v1169_v21 = vxor.u32 2147483648, %v7712_v34  ;;  %vm2822_vm1 = vcmp.lt.s32.totalorder %v2821_v6, 2  ;;  %vm2823_vm5 = vcmp.eq.s32.totalorder %v2821_v6, 0  ;;  %v7714_v25 = vpop.eup %7713 }
 0x211   :  { %vm2826_vm3 = vcmp.eq.s32.totalorder %v2821_v6, 2  ;;  %v2925_v39 = vand.u32 3, %v2924_v11  ;;  %v1365_v48 = vsel %vm9267_vm11, 0, %v1363_v16  ;;  %7719 = vcosq.f32 %v1364_v40  ;;  %v10804_v11 = vld [vmem:[#allocation24_spill] sm:$0xff] }
 0x212   :  { %v1166_v37 = vxor.u32 2147483648, %v7714_v25  ;;  %v1170_v7 = vsel %vm1168_vm14, %v1169_v21, %v7714_v25  ;;  %v2828_v20 = vsel %vm2826_vm3, %v1169_v21, %v7714_v25  ;;  %7721 = vsinq.f32 %v1364_v40 }
 0x213   :  { %v7716_v4 = vpop.eup %7715  ;;  %vm1267_vm15 = vcmp.lt.s32.totalorder %v1266_v2, 2  ;;  %vm1268_vm0 = vcmp.eq.s32.totalorder %v1266_v2, 0  ;;  %vm1271_vm7 = vcmp.eq.s32.totalorder %v1266_v2, 2  ;;  %vm2926_vm13 = vcmp.lt.s32.totalorder %v2925_v39, 2 }
 0x214   :  { %v1167_v46 = vsel %vm1165_vm4, %v7712_v34, %v1166_v37  ;;  %v2825_v53 = vsel %vm2823_vm5, %v7712_v34, %v1166_v37  ;;  %v1272_v47 = vxor.u32 2147483648, %v7716_v4  ;;  %v3028_v26 = vadd.s32 3, %v1365_v48  ;;  %v7718_v8 = vpop.eup %7717 }
 0x215   :  { %v1171_v60 = vsel %vm1164_vm12, %v1167_v46, %v1170_v7  ;;  %v2829_v50 = vsel %vm2822_vm1, %v2825_v53, %v2828_v20  ;;  %vm2927_vm9 = vcmp.eq.s32.totalorder %v2925_v39, 0  ;;  %vm2930_vm8 = vcmp.eq.s32.totalorder %v2925_v39, 2 }
 0x216   :  { %v9300_v5 = vsel %vm1162_vm6, nan, %v1171_v60  ;;  %v2830_v45 = vsel %vm1162_vm6, nan, %v2829_v50  ;;  %v1269_v43 = vxor.u32 2147483648, %v7718_v8  ;;  %v2932_v42 = vsel %vm2930_vm8, %v1272_v47, %v7718_v8 }
 0x217   :  { %3489 = vrot.lane.b32.xlu1 %v2830_v45, %s7838_s1  ;;  %v1273_v52 = vsel %vm1271_vm7, %v1272_v47, %v7718_v8  ;;  %v1369_v24 = vand.u32 3, %v1365_v48  ;;  %v3029_v22 = vand.u32 3, %v3028_v26  ;;  %v10795_v14 = vand.u32 2147483647, %v8696_v33 }
 0x218   :  { %vm1690_vm12 = vcmp.lt.s32.totalorder %v10798_v35, 0  ;;  %v2929_v51 = vsel %vm2927_vm9, %v7716_v4, %v1269_v43  ;;  %v1270_v38 = vsel %vm1268_vm0, %v7716_v4, %v1269_v43  ;;  %v1465_v1 = vsub.s32 4, %v10799_v29 }
 0x219   :  { %vm9308_vm11 = vcmp.le.f32.partialorder %v10795_v14, 0.7853982  ;;  %v1670_v6 = vsel %vm1587_vm2, %v1669_v44, %v9141_v28  ;;  %vm1265_vm6 = vweird.f32 %v10756_v41  ;;  %v2933_v57 = vsel %vm2926_vm13, %v2929_v51, %v2932_v42 }
 0x21a   :  { %v1467_v32 = vsel %vm9308_vm11, %v8696_v33, %v9136_v30  ;;  %v1274_v59 = vsel %vm1267_vm15, %v1270_v38, %v1273_v52  ;;  %v2934_v58 = vsel %vm1265_vm6, nan, %v2933_v57  ;;  %vm1368_vm4 = vweird.f32 %v10755_v0 }
 0x21b   :  { %v9327_v49 = vsel %vm1265_vm6, nan, %v1274_v59  ;;  %vm10800_vm10 = vcmp.lt.s32.totalorder %v8696_v33, 0  ;;  %v7720_v12 = vpop.eup %7719  ;;  %3491 = vrot.lane.b32.xlu0 %v2934_v58, %s7838_s1  ;;  %vm1370_vm14 = vcmp.lt.s32.totalorder %v1369_v24, 2  ;;  %vm1374_vm1 = vcmp.eq.s32.totalorder %v1369_v24, 2 }
 0x21c   :  { %v1466_v30 = vsel %vm10800_vm10, %v1465_v1, %v10799_v29  ;;  %7723 = vcosq.f32 %v1467_v32  ;;  %v7722_v28 = vpop.eup %7721  ;;  %v1375_v44 = vxor.u32 2147483648, %v7720_v12  ;;  %vm3034_vm5 = vcmp.eq.s32.totalorder %v3029_v22, 2 }
 0x21d   :  { %v1468_v41 = vsel %vm9308_vm11, 0, %v1466_v30  ;;  %7725 = vsinq.f32 %v1467_v32  ;;  %v10801_v2 = vand.u32 2147483647, %v8579_v19  ;;  %v1372_v34 = vxor.u32 2147483648, %v7722_v28 }
 0x21e   :  { %v3132_v27 = vadd.s32 3, %v1468_v41  ;;  %v1568_v40 = vsub.s32 4, %v10804_v11  ;;  %vm1371_vm15 = vcmp.eq.s32.totalorder %v1369_v24, 0  ;;  %v1376_v25 = vsel %vm1374_vm1, %v1375_v44, %v7722_v28 }
 0x21f   :  { %vm9338_vm3 = vcmp.le.f32.partialorder %v10801_v2, 0.7853982  ;;  %vm3031_vm0 = vcmp.eq.s32.totalorder %v3029_v22, 0  ;;  %v3036_v39 = vsel %vm3034_vm5, %v1375_v44, %v7722_v28  ;;  %v1373_v48 = vsel %vm1371_vm15, %v7720_v12, %v1372_v34 }
 0x220   :  { %v1570_v21 = vsel %vm9338_vm3, %v8579_v19, %v9129_v61  ;;  %vm3030_vm7 = vcmp.lt.s32.totalorder %v3029_v22, 2  ;;  %v3033_v37 = vsel %vm3031_vm0, %v7720_v12, %v1372_v34  ;;  %v1472_v7 = vand.u32 3, %v1468_v41 }
 0x221   :  { %v1377_v20 = vsel %vm1370_vm14, %v1373_v48, %v1376_v25  ;;  %v3037_v4 = vsel %vm3030_vm7, %v3033_v37, %v3036_v39  ;;  %vm10805_vm13 = vcmp.lt.s32.totalorder %v8579_v19, 0  ;;  %7727 = vcosq.f32 %v1570_v21 }
 0x222   :  { %v1569_v46 = vsel %vm10805_vm13, %v1568_v40, %v10804_v11  ;;  %v1773_v61 = vsel %vm1690_vm12, %v1772_v15, %v9035_v13  ;;  %v9358_v53 = vsel %vm1368_vm4, nan, %v1377_v20  ;;  %v3038_v47 = vsel %vm1368_vm4, nan, %v3037_v4  ;;  %v3536_v20 = vld [vmem:[%s10605_s2] sm:$0xff] }
 0x223   :  { %v3133_v26 = vand.u32 3, %v3132_v27  ;;  %3493 = vrot.lane.b32.xlu1 %v3038_v47, %s7838_s1  ;;  %vm1471_vm9 = vweird.f32 %v8696_v33  ;;  %v1571_v8 = vsel %vm9338_vm3, 0, %v1569_v46  ;;  %7729 = vsinq.f32 %v1570_v21  ;;  %v3537_v47 = vld [vmem:[%s10605_s2 + $0x8] sm:$0xff] }
 0x224   :  { %v10806_v60 = vand.u32 2147483647, %v8829_v63  ;;  %v9372_v15 = vand.u32 3, %v1571_v8  ;;  %v3236_v50 = vadd.s32 3, %v1571_v8  ;;  %v1671_v0 = vsub.s32 4, %v9009_v62 }
 0x225   :  { %vm1473_vm11 = vcmp.lt.s32.totalorder %v1472_v7, 2  ;;  %vm1474_vm6 = vcmp.eq.s32.totalorder %v1472_v7, 0  ;;  %v1774_v43 = vsub.s32 4, %v8925_v54  ;;  %vm1477_vm4 = vcmp.eq.s32.totalorder %v1472_v7, 2 }
 0x226   :  { %vm9368_vm8 = vcmp.le.f32.partialorder %v10806_v60, 0.7853982  ;;  %v7724_v42 = vpop.eup %7723  ;;  %vm3134_vm10 = vcmp.lt.s32.totalorder %v3133_v26, 2  ;;  %vm3135_vm14 = vcmp.eq.s32.totalorder %v3133_v26, 0  ;;  %vm3138_vm1 = vcmp.eq.s32.totalorder %v3133_v26, 2 }
 0x227   :  { %v1673_v45 = vsel %vm9368_vm8, %v8829_v63, %v1670_v6  ;;  %v7726_v52 = vpop.eup %7725  ;;  %v1478_v24 = vxor.u32 2147483648, %v7724_v42  ;;  %v1672_v22 = vsel %vm1587_vm2, %v1671_v0, %v9009_v62  ;;  %v10809_v14 = vand.u32 2147483647, %v10798_v35 }
 0x228   :  { %7731 = vcosq.f32 %v1673_v45  ;;  %v1475_v51 = vxor.u32 2147483648, %v7726_v52  ;;  %vm1576_vm3 = vcmp.lt.s32.totalorder %v9372_v15, 2  ;;  %vm1577_vm15 = vcmp.eq.s32.totalorder %v9372_v15, 0 }
 0x229   :  { %7733 = vsinq.f32 %v1673_v45  ;;  %vm9384_vm5 = vcmp.le.f32.partialorder %v10809_v14, 0.7853982  ;;  %v3237_v38 = vand.u32 3, %v3236_v50  ;;  %v1775_v29 = vsel %vm1690_vm12, %v1774_v43, %v8925_v54 }
 0x22a   :  { %v3140_v1 = vsel %vm3138_vm1, %v1478_v24, %v7726_v52  ;;  %v1479_v32 = vsel %vm1477_vm4, %v1478_v24, %v7726_v52  ;;  %vm1574_vm2 = vweird.f32 %v8579_v19  ;;  %v1674_v62 = vsel %vm9368_vm8, 0, %v1672_v22  ;;  %v3538_v19 = vld [vmem:[%s10605_s2 + $0x10] sm:$0xff]  ;;  %v3539_v52 = vld [vmem:[%s10605_s2 + $0x18] sm:$0xff] }
 0x22b   :  { %v1776_v6 = vsel %vm9384_vm5, %v10798_v35, %v1773_v61  ;;  %v3137_v57 = vsel %vm3135_vm14, %v7724_v42, %v1475_v51  ;;  %v1476_v59 = vsel %vm1474_vm6, %v7724_v42, %v1475_v51  ;;  %vm1580_vm0 = vcmp.eq.s32.totalorder %v9372_v15, 2  ;;  %v7728_v30 = vpop.eup %7727 }
 0x22c   :  { %v3340_v58 = vadd.s32 3, %v1674_v62  ;;  %v3141_v54 = vsel %vm3134_vm10, %v3137_v57, %v3140_v1  ;;  %v1480_v12 = vsel %vm1473_vm11, %v1476_v59, %v1479_v32  ;;  %v1678_v41 = vand.u32 3, %v1674_v62  ;;  %v3541_v1 = vld [vmem:[%s10605_s2 + $0x28] sm:$0xff]  ;;  %v9467_v32 = vld [vmem:[%s10605_s2 + $0x30] sm:$0xff] }
 0x22d   :  { %7735 = vcosq.f32 %v1776_v6  ;;  %v3142_v28 = vsel %vm1471_vm9, nan, %v3141_v54  ;;  %v9408_v44 = vsel %vm1471_vm9, nan, %v1480_v12  ;;  %v1581_v2 = vxor.u32 2147483648, %v7728_v30  ;;  %v7730_v34 = vpop.eup %7729  ;;  %v3543_v12 = vld [vmem:[%s10605_s2 + $0x38] sm:$0xff] }
 0x22e   :  { %v1777_v16 = vsel %vm9384_vm5, 0, %v1775_v29  ;;  %3495 = vrot.lane.b32.xlu0 %v3142_v28, %s7838_s1  ;;  %vm3238_vm12 = vcmp.lt.s32.totalorder %v3237_v38, 2  ;;  %vm3242_vm7 = vcmp.eq.s32.totalorder %v3237_v38, 2  ;;  %vm1677_vm13 = vweird.f32 %v8829_v63 }
 0x22f   :  { %v3341_v27 = vand.u32 3, %v3340_v58  ;;  %7737 = vsinq.f32 %v1776_v6  ;;  %v1578_v11 = vxor.u32 2147483648, %v7730_v34  ;;  %v1582_v40 = vsel %vm1580_vm0, %v1581_v2, %v7730_v34 }
 0x230   :  { %vm3239_vm8 = vcmp.eq.s32.totalorder %v3237_v38, 0  ;;  %v3244_v33 = vsel %vm3242_vm7, %v1581_v2, %v7730_v34  ;;  %vm1679_vm9 = vcmp.lt.s32.totalorder %v1678_v41, 2  ;;  %vm1680_vm11 = vcmp.eq.s32.totalorder %v1678_v41, 0 }
 0x231   :  { %vm1683_vm6 = vcmp.eq.s32.totalorder %v1678_v41, 2  ;;  %v9416_v25 = vand.u32 3, %v1777_v16  ;;  %v1579_v39 = vsel %vm1577_vm15, %v7728_v30, %v1578_v11  ;;  %v3241_v48 = vsel %vm3239_vm8, %v7728_v30, %v1578_v11 }
 0x232   :  { %v7732_v21 = vpop.eup %7731  ;;  %v3444_v7 = vadd.s32 3, %v1777_v16  ;;  %v1583_v46 = vsel %vm1576_vm3, %v1579_v39, %v1582_v40  ;;  %v3245_v61 = vsel %vm3238_vm12, %v3241_v48, %v3244_v33  ;;  %vm3342_vm4 = vcmp.lt.s32.totalorder %v3341_v27, 2 }
 0x233   :  { %v1684_v37 = vxor.u32 2147483648, %v7732_v21  ;;  %v7734_v4 = vpop.eup %7733  ;;  %vm3346_vm10 = vcmp.eq.s32.totalorder %v3341_v27, 2  ;;  %v9431_v26 = vsel %vm1574_vm2, nan, %v1583_v46  ;;  %v3246_v8 = vsel %vm1574_vm2, nan, %v3245_v61 }
 0x234   :  { %v1681_v60 = vxor.u32 2147483648, %v7734_v4  ;;  %3497 = vrot.lane.b32.xlu1 %v3246_v8, %s7838_s1  ;;  %vm3343_vm14 = vcmp.eq.s32.totalorder %v3341_v27, 0  ;;  %vm1780_vm1 = vweird.f32 %v10798_v35  ;;  %v3445_v50 = vand.u32 3, %v3444_v7 }
 0x235   :  { %v3348_v13 = vsel %vm3346_vm10, %v1684_v37, %v7734_v4  ;;  %v1685_v15 = vsel %vm1683_vm6, %v1684_v37, %v7734_v4  ;;  %v3601_v0 = vand.u32 4294901760, %v3536_v20  ;;  %vm1782_vm5 = vcmp.lt.s32.totalorder %v9416_v25, 2 }
 0x236   :  { %v3345_v45 = vsel %vm3343_vm14, %v7732_v21, %v1681_v60  ;;  %v1682_v43 = vsel %vm1680_vm11, %v7732_v21, %v1681_v60  ;;  %v3604_v42 = vand.u32 4294901760, %v3537_v47  ;;  %vm1783_vm3 = vcmp.eq.s32.totalorder %v9416_v25, 0 }
 0x237   :  { %v7736_v24 = vpop.eup %7735  ;;  %v3349_v22 = vsel %vm3342_vm4, %v3345_v45, %v3348_v13  ;;  %v1686_v14 = vsel %vm1679_vm9, %v1682_v43, %v1685_v15  ;;  %vm1786_vm15 = vcmp.eq.s32.totalorder %v9416_v25, 2  ;;  %vm3446_vm2 = vcmp.lt.s32.totalorder %v3445_v50, 2  ;;  %v3472_v35 = vpop.permute.xlu0 %3471 }
 0x238   :  { %v3350_v51 = vsel %vm1677_vm13, nan, %v3349_v22  ;;  %v9459_v38 = vsel %vm1677_vm13, nan, %v1686_v14  ;;  %v1787_v29 = vxor.u32 2147483648, %v7736_v24  ;;  %vm3450_vm0 = vcmp.eq.s32.totalorder %v3445_v50, 2 }
 0x239   :  { %v7738_v62 = vpop.eup %7737  ;;  %3499 = vrot.lane.b32.xlu0 %v3350_v51, %s7838_s1  ;;  %v9470_v6 = vpack.c.bf16 %v3604_v42, %v3601_v0  ;;  %v3607_v63 = vand.u32 4294901760, %v3538_v19  ;;  %v3610_v57 = vand.u32 4294901760, %v3539_v52  ;;  %v3613_v54 = vand.u32 4294901760, %v9453_v17 }
 0x23a   :  { %v1784_v59 = vxor.u32 2147483648, %v7738_v62  ;;  %v1788_v58 = vsel %vm1786_vm15, %v1787_v29, %v7738_v62  ;;  %v3452_v30 = vsel %vm3450_vm0, %v1787_v29, %v7738_v62  ;;  %vm3447_vm12 = vcmp.eq.s32.totalorder %v3445_v50, 0 }
 0x23b   :  { %7263 = vmatprep.subr.bf16.mxu0 %v9470_v6  ;;  %v9477_v41 = vpack.c.bf16 %v3610_v57, %v3607_v63  ;;  %v3616_v28 = vand.u32 4294901760, %v3541_v1  ;;  %v3619_v2 = vand.u32 4294901760, %v9467_v32  ;;  %v9483_v27 = vsub.f32 %v3536_v20, %v3601_v0 }
 0x23c   :  { %v1785_v16 = vsel %vm1783_vm3, %v7736_v24, %v1784_v59  ;;  %v3449_v34 = vsel %vm3447_vm12, %v7736_v24, %v1784_v59  ;;  %7265 = vmatpush3.bf16.msra.mxu0 %v9470_v6  ;;  %v9485_v11 = vsub.f32 %v3537_v47, %v3604_v42  ;;  %v3622_v39 = vand.u32 4294901760, %v3543_v12 }
 0x23d   :  { %v1789_v40 = vsel %vm1782_vm5, %v1785_v16, %v1788_v58  ;;  %v3453_v33 = vsel %vm3446_vm2, %v3449_v34, %v3452_v30  ;;  %7267 = vmatprep.subr.bf16.mxu0 %v9477_v41  ;;  %v9491_v21 = vpack.c.bf16 %v3616_v28, %v3613_v54  ;;  %v3836_v7 = vand.u32 4294901760, %v9483_v27 }
 0x23e   :  { %v9495_v48 = vsel %vm1780_vm1, nan, %v1789_v40  ;;  %v3454_v37 = vsel %vm1780_vm1, nan, %v3453_v33  ;;  %v3843_v20 = vand.u32 4294901760, %v9485_v11  ;;  %vm3519_vm7 = vcmask 261120  }
 0x23f   :  { %3501 = vrot.lane.b32.xlu1 %v3454_v37, %s7838_s1  ;;  %vm3551_vm13 = vcmask 523264   ;;  %v3837_v25 = vsub.f32 %v9483_v27, %v3836_v7  ;;  %v9510_v46 = vpack.c.bf16 %v3622_v39, %v3619_v2  ;;  %v3520_v61 = vsel %vm3519_vm7, %v8991_v3, %v3472_v35 }
 0x240   :  { %7269 = vmatpush3.bf16.msra.mxu0 %v9477_v41  ;;  %v3844_v4 = vsub.f32 %v9485_v11, %v3843_v20  ;;  %v3553_v60 = vsel %vm3551_vm13, %v3520_v61, 0  ;;  %v9519_v50 = vsub.f32 %v3538_v19, %v3607_v63  ;;  %v9521_v0 = vsub.f32 %v3539_v52, %v3610_v57 }
 0x241   :  { %7271 = vmatprep.subr.bf16.mxu0 %v9491_v21  ;;  %v3838_v47 = vand.u32 4294901760, %v3837_v25  ;;  %v9515_v13 = vand.u32 4294901760, %v3553_v60  ;;  %v9536_v52 = vsub.f32 %v9453_v17, %v3613_v54  ;;  %v9538_v24 = vsub.f32 %v3541_v1, %v3616_v28 }
 0x242   :  { %v3845_v8 = vand.u32 4294901760, %v3844_v4  ;;  %v9528_v3 = vpack.c.bf16 %v9521_v0, %v9519_v50  ;;  %v9548_v62 = vsub.f32 %v9467_v32, %v3619_v2  ;;  %v9550_v63 = vsub.f32 %v3543_v12, %v3622_v39 }
 0x243   :  { %v9524_v45 = vsub.f32 %v3553_v60, %v9515_v13  ;;  %v9542_v22 = vpack.c.bf16 %v9538_v24, %v9536_v52  ;;  %v3850_v1 = vand.u32 4294901760, %v9519_v50  ;;  %v3857_v57 = vand.u32 4294901760, %v9521_v0 }
 0x244   :  { %7273 = vmatpush3.bf16.msra.mxu0 %v9491_v21  ;;  %v7278_v15 = vpack.c.bf16 %v3845_v8, %v3838_v47  ;;  %v9558_v59 = vpack.c.bf16 %v9550_v63, %v9548_v62  ;;  %v3864_v30 = vand.u32 4294901760, %v9536_v52  ;;  %v3871_v2 = vand.u32 4294901760, %v9538_v24 }
 0x245   :  { %7275 = vmatprep.subr.bf16.mxu0 %v9510_v46  ;;  %v3675_v43 = vand.u32 4294901760, %v9524_v45  ;;  %v3851_v28 = vsub.f32 %v9519_v50, %v3850_v1  ;;  %v3858_v34 = vsub.f32 %v9521_v0, %v3857_v57  ;;  %v10683_v40 = vand.u32 4294901760, %v9548_v62 }
 0x246   :  { %v3865_v25 = vsub.f32 %v9536_v52, %v3864_v30  ;;  %v3872_v4 = vsub.f32 %v9538_v24, %v3871_v2  ;;  %v10681_v8 = vand.u32 4294901760, %v9550_v63  ;;  %v10814_v0 = vand.u32 4294901760, %v9548_v62 }
 0x247   :  { %v3676_v42 = vsub.f32 %v9524_v45, %v3675_v43  ;;  %v3852_v37 = vand.u32 4294901760, %v3851_v28  ;;  %v3859_v47 = vand.u32 4294901760, %v3858_v34 }
 0x248   :  { %7277 = vmatpush3.bf16.msra.mxu0 %v9510_v46  ;;  %v3886_v28 = vsub.f32 %v9550_v63, %v10681_v8 }
 0x249   :  { %7279 = vmatprep.subr.bf16.mxu0 %v7278_v15  ;;  %v3677_v19 = vand.u32 4294901760, %v3676_v42 }
 0x24a   :  { %v3476_v14 = vpop.permute.xlu0 %3475 }
 0x24b   :  { %6846 = vmatprep.mubr.f32.mxu0 %v3677_v19  ;;  %v3522_v51 = vsel %vm3519_vm7, %v9063_v18, %v3476_v14 }
 0x24c   :  { %v3559_v29 = vsel %vm3551_vm13, %v3522_v51, 0  ;;  %v3866_v51 = vand.u32 4294901760, %v3865_v25 }
 0x24d   :  { %v9552_v17 = vand.u32 4294901760, %v3559_v29 }
 0x24f   :  { %v9561_v18 = vsub.f32 %v3559_v29, %v9552_v17  ;;  %v3873_v29 = vand.u32 4294901760, %v3872_v4  ;;  %v3887_v4 = vand.u32 4294901760, %v3886_v28 }
 0x251   :  { %v3474_v58 = vpop.permute.xlu1 %3473  ;;  %v3695_v12 = vand.u32 4294901760, %v9561_v18 }
 0x252   :  { %v3521_v32 = vsel %vm3519_vm7, %v9089_v55, %v3474_v58 }
 0x253   :  { %v3556_v54 = vsel %vm3551_vm13, %v3521_v32, 0  ;;  %v3696_v39 = vsub.f32 %v9561_v18, %v3695_v12 }
 0x254   :  { %v9572_v16 = vand.u32 4294901760, %v3556_v54 }
 0x255   :  { %v3697_v14 = vand.u32 4294901760, %v3696_v39  ;;  %v7286_v39 = vpack.c.bf16 %v3873_v29, %v3866_v51  ;;  %v9623_v51 = vpack.c.bf16 %v9485_v11, %v9483_v27 }
 0x256   :  { %v9578_v55 = vsub.f32 %v3556_v54, %v9572_v16  ;;  %v7282_v54 = vpack.c.bf16 %v3859_v47, %v3852_v37 }
 0x257   :  { %v3478_v33 = vpop.permute.xlu1 %3477 }
 0x258   :  { %v3523_v35 = vsel %vm3519_vm7, %v9116_v9, %v3478_v33  ;;  %v3685_v61 = vand.u32 4294901760, %v9578_v55  ;;  %v3879_v9 = vsub.f32 %v9548_v62, %v10683_v40 }
 0x259   :  { %v3562_v60 = vsel %vm3551_vm13, %v3523_v35, 0 }
 0x25a   :  { %v9595_v42 = vand.u32 4294901760, %v3562_v60  ;;  %v3686_v19 = vsub.f32 %v9578_v55, %v3685_v61  ;;  %v3880_v25 = vand.u32 4294901760, %v3879_v9 }
 0x25c   :  { %v9604_v58 = vsub.f32 %v3562_v60, %v9595_v42  ;;  %v3687_v32 = vand.u32 4294901760, %v3686_v19  ;;  %v7290_v47 = vpack.c.bf16 %v3887_v4, %v3880_v25 }
 0x25e   :  { %6847 = vmatmul.mubr.f32.vlgmr.msra.gmra.mrb[0].mxu0 %v3687_v32  ;;  %v10687_v34 = vand.u32 4294901760, %v9604_v58 }
 0x25f   :  { %7281 = vmatpush3.bf16.msra.mxu0 %v7278_v15  ;;  %6849 = vmatprep.mubr.f32.mxu0 %v3697_v14 }
 0x260   :  { %v3706_v33 = vsub.f32 %v9604_v58, %v10687_v34  ;;  %7283 = vmatprep.subr.bf16.mxu0 %v7282_v54 }
 0x262   :  { %v3707_v35 = vand.u32 4294901760, %v3706_v33 }
 0x263   :  { %v3480_v60 = vpop.permute.xlu0 %3479  ;;  %7285 = vmatpush3.bf16.msra.mxu0 %v7282_v54 }
 0x264   :  { %v3524_v37 = vsel %vm3519_vm7, %v9176_v56, %v3480_v60  ;;  %6850 = vmatmul.mubr.f32.gmra.mrb[2].mxu0 %v3707_v35  ;;  %7287 = vmatprep.subr.bf16.mxu0 %v7286_v39 }
 0x265   :  { %v3565_v15 = vsel %vm3551_vm13, %v3524_v37, 0 }
 0x266   :  { %v9616_v19 = vand.u32 4294901760, %v3565_v15 }
 0x267   :  { %7289 = vmatpush3.bf16.msra.mxu0 %v7286_v39 }
 0x268   :  { %v9619_v14 = vsub.f32 %v3565_v15, %v9616_v19  ;;  %7291 = vmatprep.subr.bf16.mxu0 %v7290_v47 }
 0x26a   :  { %v10685_v29 = vand.u32 4294901760, %v9619_v14  ;;  %v10813_v50 = vand.u32 4294901760, %v9619_v14 }
 0x26b   :  { %7293 = vmatpush3.bf16.msra.mxu0 %v7290_v47 }
 0x26c   :  { %v3716_v32 = vsub.f32 %v9619_v14, %v10685_v29  ;;  %7295 = vmatprep.subr.bf16.mxu0 %v9623_v51 }
 0x26d   :  { %v3482_v9 = vpop.permute.xlu1 %3481 }
 0x26e   :  { %v3525_v56 = vsel %vm3519_vm7, %v9202_v23, %v3482_v9  ;;  %v3717_v39 = vand.u32 4294901760, %v3716_v32 }
 0x26f   :  { %v3568_v54 = vsel %vm3551_vm13, %v3525_v56, 0 }
 0x270   :  { %v9633_v28 = vand.u32 4294901760, %v3568_v54  ;;  %v3484_v33 = vpop.permute.xlu0 %3483  ;;  %6852 = vmatprep.mubr.f32.mxu0 %v3717_v39 }
 0x271   :  { %v3526_v25 = vsel %vm3519_vm7, %v9219_v31, %v3484_v33  ;;  %v9661_v33 = vpack.c.bf16 %v3843_v20, %v3836_v7 }
 0x272   :  { %v9638_v4 = vsub.f32 %v3568_v54, %v9633_v28  ;;  %v3571_v23 = vsel %vm3551_vm13, %v3526_v25, 0 }
 0x273   :  { %v9641_v35 = vand.u32 4294901760, %v3571_v23 }
 0x274   :  { %v10678_v60 = vand.u32 4294901760, %v9638_v4 }
 0x275   :  { %v9645_v37 = vsub.f32 %v3571_v23, %v9641_v35 }
 0x276   :  { %v3726_v47 = vsub.f32 %v9638_v4, %v10678_v60 }
 0x277   :  { %v10677_v15 = vand.u32 4294901760, %v9645_v37  ;;  %v10817_v52 = vand.u32 4294901760, %v9645_v37 }
 0x278   :  { %v3486_v31 = vpop.permute.xlu1 %3485  ;;  %v3727_v9 = vand.u32 4294901760, %v3726_v47 }
 0x279   :  { %v3527_v56 = vsel %vm3519_vm7, %v9251_v36, %v3486_v31  ;;  %v3736_v32 = vsub.f32 %v9645_v37, %v10677_v15 }
 0x27a   :  { %v3574_v54 = vsel %vm3551_vm13, %v3527_v56, 0  ;;  %6853 = vmatmul.mubr.f32.gmra.mrb[4].mxu0 %v3727_v9 }
 0x27b   :  { %v9663_v39 = vand.u32 4294901760, %v3574_v54  ;;  %v3737_v25 = vand.u32 4294901760, %v3736_v32 }
 0x27d   :  { %v9666_v23 = vsub.f32 %v3574_v54, %v9663_v39  ;;  %6855 = vmatprep.mubr.f32.mxu0 %v3737_v25 }
 0x27f   :  { %v10675_v36 = vand.u32 4294901760, %v9666_v23  ;;  %v10818_v24 = vand.u32 4294901760, %v9666_v23 }
 0x281   :  { %v3746_v27 = vsub.f32 %v9666_v23, %v10675_v36 }
 0x282   :  { %v3488_v47 = vpop.permute.xlu0 %3487 }
 0x283   :  { %v3528_v31 = vsel %vm3519_vm7, %v9284_v10, %v3488_v47  ;;  %v3747_v20 = vand.u32 4294901760, %v3746_v27 }
 0x284   :  { %v3577_v11 = vsel %vm3551_vm13, %v3528_v31, 0 }
 0x285   :  { %v9675_v7 = vand.u32 4294901760, %v3577_v11  ;;  %6856 = vmatmul.mubr.f32.gmra.mrb[6].mxu0 %v3747_v20 }
 0x287   :  { %v9678_v9 = vsub.f32 %v3577_v11, %v9675_v7 }
 0x289   :  { %v3490_v56 = vpop.permute.xlu1 %3489  ;;  %v10676_v32 = vand.u32 4294901760, %v9678_v9 }
 0x28a   :  { %v3529_v54 = vsel %vm3519_vm7, %v9300_v5, %v3490_v56 }
 0x28b   :  { %v3580_v10 = vsel %vm3551_vm13, %v3529_v54, 0  ;;  %v3756_v25 = vsub.f32 %v9678_v9, %v10676_v32 }
 0x28c   :  { %v9687_v47 = vand.u32 4294901760, %v3580_v10 }
 0x28d   :  { %v3492_v31 = vpop.permute.xlu0 %3491  ;;  %v3757_v27 = vand.u32 4294901760, %v3756_v25 }
 0x28e   :  { %v9690_v11 = vsub.f32 %v3580_v10, %v9687_v47  ;;  %v3530_v20 = vsel %vm3519_vm7, %v9327_v49, %v3492_v31 }
 0x28f   :  { %v3583_v36 = vsel %vm3551_vm13, %v3530_v20, 0  ;;  %6858 = vmatprep.mubr.f32.mxu0 %v3757_v27 }
 0x290   :  { %v9695_v5 = vand.u32 4294901760, %v3583_v36  ;;  %v10680_v56 = vand.u32 4294901760, %v9690_v11  ;;  %v10820_v62 = vand.u32 4294901760, %v9690_v11 }
 0x292   :  { %v9699_v54 = vsub.f32 %v3583_v36, %v9695_v5  ;;  %v3766_v25 = vsub.f32 %v9690_v11, %v10680_v56 }
 0x294   :  { %v3767_v10 = vand.u32 4294901760, %v3766_v25  ;;  %v10679_v15 = vand.u32 4294901760, %v9699_v54 }
 0x295   :  { %v3494_v32 = vpop.permute.xlu1 %3493 }
 0x296   :  { %v3531_v49 = vsel %vm3519_vm7, %v9358_v53, %v3494_v32  ;;  %6859 = vmatmul.mubr.f32.gmra.mrb[8].mxu0 %v3767_v10  ;;  %v3776_v27 = vsub.f32 %v9699_v54, %v10679_v15 }
 0x297   :  { %v3586_v31 = vsel %vm3551_vm13, %v3531_v49, 0 }
 0x298   :  { %v9711_v36 = vand.u32 4294901760, %v3586_v31  ;;  %v3777_v20 = vand.u32 4294901760, %v3776_v27 }
 0x29a   :  { %v9714_v60 = vsub.f32 %v3586_v31, %v9711_v36  ;;  %6861 = vmatprep.mubr.f32.mxu0 %v3777_v20 }
 0x29c   :  { %v10682_v25 = vand.u32 4294901760, %v9714_v60 }
 0x29e   :  { %v3786_v53 = vsub.f32 %v9714_v60, %v10682_v25 }
 0x2a0   :  { %v3496_v32 = vpop.permute.xlu0 %3495  ;;  %v3787_v49 = vand.u32 4294901760, %v3786_v53 }
 0x2a1   :  { %v3532_v10 = vsel %vm3519_vm7, %v9408_v44, %v3496_v32 }
 0x2a2   :  { %v3589_v15 = vsel %vm3551_vm13, %v3532_v10, 0  ;;  %6862 = vmatmul.mubr.f32.gmra.mrb[10].mxu0 %v3787_v49 }
 0x2a3   :  { %v9723_v56 = vand.u32 4294901760, %v3589_v15 }
 0x2a5   :  { %v9726_v31 = vsub.f32 %v3589_v15, %v9723_v56 }
 0x2a6   :  { %v3498_v27 = vpop.permute.xlu1 %3497 }
 0x2a7   :  { %v3533_v20 = vsel %vm3519_vm7, %v9431_v26, %v3498_v27  ;;  %v10684_v8 = vand.u32 4294901760, %v9726_v31 }
 0x2a8   :  { %v3592_v25 = vsel %vm3551_vm13, %v3533_v20, 0 }
 0x2a9   :  { %v9732_v40 = vand.u32 4294901760, %v3592_v25  ;;  %v3796_v44 = vsub.f32 %v9726_v31, %v10684_v8 }
 0x2ab   :  { %v3500_v53 = vpop.permute.xlu0 %3499  ;;  %v9738_v32 = vsub.f32 %v3592_v25, %v9732_v40  ;;  %v3797_v10 = vand.u32 4294901760, %v3796_v44 }
 0x2ac   :  { %v3534_v15 = vsel %vm3519_vm7, %v9459_v38, %v3500_v53 }
 0x2ad   :  { %v3595_v26 = vsel %vm3551_vm13, %v3534_v15, 0  ;;  %6864 = vmatprep.mubr.f32.mxu0 %v3797_v10  ;;  %v10686_v27 = vand.u32 4294901760, %v9738_v32 }
 0x2ae   :  { %v9743_v49 = vand.u32 4294901760, %v3595_v26 }
 0x2af   :  { %v3806_v8 = vsub.f32 %v9738_v32, %v10686_v27 }
 0x2b0   :  { %v9747_v20 = vsub.f32 %v3595_v26, %v9743_v49 }
 0x2b1   :  { %v3502_v25 = vpop.permute.xlu1 %3501  ;;  %v3807_v38 = vand.u32 4294901760, %v3806_v8 }
 0x2b2   :  { %v3535_v29 = vsel %vm3519_vm7, %v9495_v48, %v3502_v25  ;;  %v3815_v44 = vand.u32 4294901760, %v9747_v20 }
 0x2b3   :  { %v3598_v53 = vsel %vm3551_vm13, %v3535_v29, 0  ;;  %6865 = vmatmul.mubr.f32.gmra.mrb[12].mxu0 %v3807_v38 }
 0x2b4   :  { %v9756_v15 = vand.u32 4294901760, %v3598_v53  ;;  %v3816_v10 = vsub.f32 %v9747_v20, %v3815_v44 }
 0x2b6   :  { %v9762_v26 = vsub.f32 %v3598_v53, %v9756_v15  ;;  %v3817_v27 = vand.u32 4294901760, %v3816_v10 }
 0x2b8   :  { %6867 = vmatprep.mubr.f32.mxu0 %v3817_v27  ;;  %v3825_v34 = vand.u32 4294901760, %v9762_v26 }
 0x2ba   :  { %v3826_v48 = vsub.f32 %v9762_v26, %v3825_v34 }
 0x2bc   :  { %v3827_v8 = vand.u32 4294901760, %v3826_v48 }
 0x2be   :  { %6868 = vmatmul.mubr.f32.gmra.mrb[14].mxu0 %v3827_v8 }
 0x2bf   :  { %6886 = vmatprep.mubr.f32.mxu0 %v9515_v13 }
 0x2c2   :  { %6887 = vmatmul.mubr.f32.vlgmr.msra.gmra.mrb[0].mxu0 %v9572_v16 }
 0x2c3   :  { %7297 = vmatpush3.bf16.msra.mxu0 %v9623_v51  ;;  %6889 = vmatprep.mubr.f32.mxu0 %v9552_v17 }
 0x2c4   :  { %7299 = vmatprep.subr.bf16.mxu0 %v9528_v3 }
 0x2c6   :  { %6890 = vmatmul.mubr.f32.gmra.mrb[2].mxu0 %v9595_v42 }
 0x2c7   :  { %6892 = vmatprep.mubr.f32.mxu0 %v9616_v19  ;;  %7301 = vmatpush3.bf16.msra.mxu0 %v9528_v3  ;;  %v7330_v3 = vpack.c.bf16 %v3857_v57, %v3850_v1  ;;  %v10816_v57 = vand.u32 4294901760, %v9638_v4 }
 0x2c8   :  { %7303 = vmatprep.subr.bf16.mxu0 %v9542_v22 }
 0x2ca   :  { %6893 = vmatmul.mubr.f32.gmra.mrb[4].mxu0 %v9633_v28 }
 0x2cb   :  { %6895 = vmatprep.mubr.f32.mxu0 %v9641_v35  ;;  %7305 = vmatpush3.bf16.msra.mxu0 %v9542_v22  ;;  %v10815_v22 = vand.u32 4294901760, %v9550_v63  ;;  %v10821_v63 = vand.u32 4294901760, %v9699_v54 }
 0x2cc   :  { %7307 = vmatprep.subr.bf16.mxu0 %v9558_v59 }
 0x2cd   :  { %v7338_v1 = vpack.c.bf16 %v10815_v22, %v10814_v0 }
 0x2ce   :  { %6896 = vmatmul.mubr.f32.gmra.mrb[6].mxu0 %v9663_v39 }
 0x2cf   :  { %6898 = vmatprep.mubr.f32.mxu0 %v9675_v7  ;;  %7309 = vmatpush3.bf16.msra.mxu0 %v9558_v59  ;;  %v10819_v59 = vand.u32 4294901760, %v9678_v9 }
 0x2d0   :  { %7311 = vmatprep.subr.bf16.mxu0 %v9470_v6 }
 0x2d2   :  { %6899 = vmatmul.mubr.f32.gmra.mrb[8].mxu0 %v9687_v47 }
 0x2d3   :  { %6901 = vmatprep.mubr.f32.mxu0 %v9695_v5 }
 0x2d6   :  { %6902 = vmatmul.mubr.f32.gmra.mrb[10].mxu0 %v9711_v36 }
 0x2d7   :  { %6904 = vmatprep.mubr.f32.mxu0 %v9723_v56 }
 0x2da   :  { %6905 = vmatmul.mubr.f32.gmra.mrb[12].mxu0 %v9732_v40 }
 0x2db   :  { %6907 = vmatprep.mubr.f32.mxu0 %v9743_v49 }
 0x2de   :  { %6908 = vmatmul.mubr.f32.gmra.mrb[14].mxu0 %v9756_v15 }
 0x2df   :  { %6926 = vmatprep.mubr.f32.mxu0 %v9524_v45  ;;  %v7334_v45 = vpack.c.bf16 %v3871_v2, %v3864_v30  ;;  %v10823_v30 = vand.u32 4294901760, %v9726_v31  ;;  %v9927_v2 = vld [vmem:[%s10607_s4 + $0x18] sm:$0xff] }
 0x2e2   :  { %6927 = vmatmul.mubr.f32.vlgmr.msra.gmra.mrb[0].mxu0 %v9578_v55  ;;  %v10688_v55 = vand.u32 4294901760, %v9927_v2 }
 0x2e3   :  { %7313 = vmatpush3.bf16.msra.mxu0 %v9470_v6  ;;  %6929 = vmatprep.mubr.f32.mxu0 %v9561_v18  ;;  %v10822_v18 = vand.u32 4294901760, %v9714_v60 }
 0x2e4   :  { %7315 = vmatprep.subr.bf16.mxu0 %v9477_v41 }
 0x2e6   :  { %6930 = vmatmul.mubr.f32.gmra.mrb[2].mxu0 %v9604_v58 }
 0x2e7   :  { %6932 = vmatprep.mubr.f32.mxu0 %v9619_v14  ;;  %7317 = vmatpush3.bf16.msra.mxu0 %v9477_v41 }
 0x2e8   :  { %7319 = vmatprep.subr.bf16.mxu0 %v9491_v21 }
 0x2ea   :  { %6933 = vmatmul.mubr.f32.gmra.mrb[4].mxu0 %v9638_v4 }
 0x2eb   :  { %6935 = vmatprep.mubr.f32.mxu0 %v9645_v37  ;;  %7321 = vmatpush3.bf16.msra.mxu0 %v9491_v21 }
 0x2ec   :  { %7323 = vmatprep.subr.bf16.mxu0 %v9510_v46 }
 0x2ee   :  { %6936 = vmatmul.mubr.f32.gmra.mrb[6].mxu0 %v9666_v23 }
 0x2ef   :  { %6938 = vmatprep.mubr.f32.mxu0 %v9678_v9  ;;  %7325 = vmatpush3.bf16.msra.mxu0 %v9510_v46 }
 0x2f0   :  { %7327 = vmatprep.subr.bf16.mxu0 %v9661_v33 }
 0x2f2   :  { %6939 = vmatmul.mubr.f32.gmra.mrb[8].mxu0 %v9690_v11 }
 0x2f3   :  { %6941 = vmatprep.mubr.f32.mxu0 %v9699_v54 }
 0x2f6   :  { %6942 = vmatmul.mubr.f32.gmra.mrb[10].mxu0 %v9714_v60 }
 0x2f7   :  { %6944 = vmatprep.mubr.f32.mxu0 %v9726_v31 }
 0x2fa   :  { %6945 = vmatmul.mubr.f32.gmra.mrb[12].mxu0 %v9738_v32 }
 0x2fb   :  { %6947 = vmatprep.mubr.f32.mxu0 %v9747_v20 }
 0x2fe   :  { %6948 = vmatmul.mubr.f32.gmra.mrb[14].mxu0 %v9762_v26 }
 0x2ff   :  { %6966 = vmatprep.mubr.f32.mxu0 %v3675_v43  ;;  %v10812_v43 = vand.u32 4294901760, %v9604_v58 }
 0x302   :  { %6967 = vmatmul.mubr.f32.vlgmr.msra.gmra.mrb[0].mxu0 %v3685_v61 }
 0x303   :  { %7329 = vmatpush3.bf16.msra.mxu0 %v9661_v33  ;;  %6969 = vmatprep.mubr.f32.mxu0 %v3695_v12  ;;  %v10824_v12 = vand.u32 4294901760, %v9738_v32 }
 0x304   :  { %7331 = vmatprep.subr.bf16.mxu0 %v7330_v3 }
 0x306   :  { %6970 = vmatmul.mubr.f32.gmra.mrb[2].mxu0 %v10812_v43 }
 0x307   :  { %6972 = vmatprep.mubr.f32.mxu0 %v10813_v50  ;;  %7333 = vmatpush3.bf16.msra.mxu0 %v7330_v3 }
 0x308   :  { %7335 = vmatprep.subr.bf16.mxu0 %v7334_v45 }
 0x30a   :  { %6973 = vmatmul.mubr.f32.gmra.mrb[4].mxu0 %v10816_v57 }
 0x30b   :  { %6975 = vmatprep.mubr.f32.mxu0 %v10817_v52  ;;  %7337 = vmatpush3.bf16.msra.mxu0 %v7334_v45 }
 0x30c   :  { %7339 = vmatprep.subr.bf16.mxu0 %v7338_v1 }
 0x30e   :  { %6976 = vmatmul.mubr.f32.gmra.mrb[6].mxu0 %v10818_v24 }
 0x30f   :  { %6978 = vmatprep.mubr.f32.mxu0 %v10819_v59  ;;  %7341 = vmatpush3.bf16.msra.mxu0 %v7338_v1 }
 0x310   :  { %7343 = vmatprep.subr.bf16.mxu0 %v9470_v6 }
 0x312   :  { %6979 = vmatmul.mubr.f32.gmra.mrb[8].mxu0 %v10820_v62 }
 0x313   :  { %6981 = vmatprep.mubr.f32.mxu0 %v10821_v63 }
 0x316   :  { %6982 = vmatmul.mubr.f32.gmra.mrb[10].mxu0 %v10822_v18 }
 0x317   :  { %6984 = vmatprep.mubr.f32.mxu0 %v10823_v30 }
 0x31a   :  { %6985 = vmatmul.mubr.f32.gmra.mrb[12].mxu0 %v10824_v12 }
 0x31b   :  { %6987 = vmatprep.mubr.f32.mxu0 %v3815_v44 }
 0x31e   :  { %6988 = vmatmul.mubr.f32.gmra.mrb[14].mxu0 %v3825_v34 }
 0x31f   :  { %7006 = vmatprep.mubr.f32.mxu0 %v9515_v13 }
 0x322   :  { %7007 = vmatmul.mubr.f32.vlgmr.msra.gmra.mrb[0].mxu0 %v9572_v16 }
 0x323   :  { %7345 = vmatpush3.bf16.msra.mxu0 %v9470_v6  ;;  %7009 = vmatprep.mubr.f32.mxu0 %v9552_v17  ;;  %v9904_v6 = vld [vmem:[%s10607_s4] sm:$0xff] }
 0x324   :  { %7347 = vmatprep.subr.bf16.mxu0 %v9477_v41 }
 0x326   :  { %7010 = vmatmul.mubr.f32.gmra.mrb[2].mxu0 %v9595_v42 }
 0x327   :  { %7012 = vmatprep.mubr.f32.mxu0 %v9616_v19  ;;  %7349 = vmatpush3.bf16.msra.mxu0 %v9477_v41  ;;  %v9909_v41 = vld [vmem:[%s10607_s4 + $0x8] sm:$0xff] }
 0x328   :  { %7351 = vmatprep.subr.bf16.mxu0 %v9491_v21 }
 0x32a   :  { %7013 = vmatmul.mubr.f32.gmra.mrb[4].mxu0 %v9633_v28 }
 0x32b   :  { %7015 = vmatprep.mubr.f32.mxu0 %v9641_v35  ;;  %7353 = vmatpush3.bf16.msra.mxu0 %v9491_v21  ;;  %v10691_v21 = vand.u32 4294901760, %v9904_v6 }
 0x32c   :  { %7355 = vmatprep.subr.bf16.mxu0 %v9510_v46 }
 0x32e   :  { %7016 = vmatmul.mubr.f32.gmra.mrb[6].mxu0 %v9663_v39 }
 0x32f   :  { %7018 = vmatprep.mubr.f32.mxu0 %v9675_v7  ;;  %7357 = vmatpush3.bf16.msra.mxu0 %v9510_v46  ;;  %v10690_v46 = vand.u32 4294901760, %v9909_v41 }
 0x332   :  { %7019 = vmatmul.mubr.f32.gmra.mrb[8].mxu0 %v9687_v47 }
 0x333   :  { %7021 = vmatprep.mubr.f32.mxu0 %v9695_v5 }
 0x336   :  { %7022 = vmatmul.mubr.f32.gmra.mrb[10].mxu0 %v9711_v36 }
 0x337   :  { %7024 = vmatprep.mubr.f32.mxu0 %v9723_v56 }
 0x33a   :  { %7025 = vmatmul.mubr.f32.gmra.mrb[12].mxu0 %v9732_v40 }
 0x33b   :  { %7027 = vmatprep.mubr.f32.mxu0 %v9743_v49 }
 0x33e   :  { %7028 = vmatmul.mubr.f32.gmra.mrb[14].mxu0 %v9756_v15 }
 0x33f   :  { %7046 = vmatprep.mubr.f32.mxu0 %v9515_v13  ;;  %v9917_v13 = vpack.c.bf16 %v10690_v46, %v10691_v21 }
 0x341   :  { %7359 = vmatprep.subr.bf16.mxu1 %v9917_v13 }
 0x342   :  { %7047 = vmatmul.mubr.f32.vlgmr.msra.gmra.mrb[0].mxu0 %v9572_v16  ;;  %7361 = vmatpush3.bf16.msra.mxu1 %v9917_v13 }
 0x343   :  { %7049 = vmatprep.mubr.f32.mxu0 %v9552_v17  ;;  %v9922_v17 = vld [vmem:[%s10607_s4 + $0x10] sm:$0xff] }
 0x344   :  { %v10689_v16 = vand.u32 4294901760, %v9922_v17 }
 0x346   :  { %7050 = vmatmul.mubr.f32.gmra.mrb[2].mxu0 %v9595_v42  ;;  %v9942_v61 = vpack.c.bf16 %v10688_v55, %v10689_v16 }
 0x347   :  { %7052 = vmatprep.mubr.f32.mxu0 %v9616_v19 }
 0x348   :  { %10825 = vst [vmem:[#allocation9_spill] sm:$0xff] %v9942_v61  ;;  %7363 = vmatprep.subr.bf16.mxu1 %v9942_v61 }
 0x349   :  { %7365 = vmatpush3.bf16.msra.mxu1 %v9942_v61 }
 0x34a   :  { %7053 = vmatmul.mubr.f32.gmra.mrb[4].mxu0 %v9633_v28 }
 0x34b   :  { %7055 = vmatprep.mubr.f32.mxu0 %v9641_v35 }
 0x34e   :  { %7056 = vmatmul.mubr.f32.gmra.mrb[6].mxu0 %v9663_v39 }
 0x34f   :  { %7058 = vmatprep.mubr.f32.mxu0 %v9675_v7 }
 0x352   :  { %7059 = vmatmul.mubr.f32.gmra.mrb[8].mxu0 %v9687_v47 }
 0x353   :  { %7061 = vmatprep.mubr.f32.mxu0 %v9695_v5 }
 0x356   :  { %7062 = vmatmul.mubr.f32.gmra.mrb[10].mxu0 %v9711_v36 }
 0x357   :  { %7064 = vmatprep.mubr.f32.mxu0 %v9723_v56 }
 0x35a   :  { %7065 = vmatmul.mubr.f32.gmra.mrb[12].mxu0 %v9732_v40  ;;  %v9935_v40 = vld [vmem:[%s10606_s3] ss:$0 sm:$0xff] }
 0x35b   :  { %7067 = vmatprep.mubr.f32.mxu0 %v9743_v49 }
 0x35e   :  { %7068 = vmatmul.mubr.f32.gmra.mrb[14].mxu0 %v9756_v15 }
 0x415   :  { %v7048_v42 = vpop.f32.mrb[0].mxu0 }
 0x416   :  { %v7406_v58 = vadd.f32 %v7048_v42, %v9935_v40  ;;  %v4688_v34 = vpop.f32.mrb[1].mxu0 }
 0x417   :  { %v7407_v19 = vadd.f32 %v9935_v40, %v4688_v34 }
 0x418   :  { %v9948_v14 = vmul.f32 0.70710677, %v7406_v58  ;;  %v9966_v3 = vmul.f32 0.5, %v7406_v58 }
 0x419   :  { %v9950_v51 = vmul.f32 0.70710677, %v7407_v19  ;;  %v7051_v29 = vpop.f32.mrb[2].mxu0  ;;  %v9976_v24 = vmul.f32 0.5, %v7407_v19 }
 0x41a   :  { %v4815_v28 = vand.u32 2147483647, %v9948_v14  ;;  %v7408_v4 = vadd.f32 %v7051_v29, %v9935_v40  ;;  %v4700_v35 = vpop.f32.mrb[3].mxu0  ;;  %vm5135_vm8 = vcmp.ge.f32.partialorder %v9948_v14, 0.0 }
 0x41b   :  { %v4814_v60 = vand.u32 2147483647, %v9950_v51  ;;  %v7409_v37 = vadd.f32 %v9935_v40, %v4700_v35  ;;  %vm5134_vm6 = vcmp.ge.f32.partialorder %v9950_v51, 0.0 }
 0x41c   :  { %v4831_v33 = vmul.f32 0.3275911, %v4815_v28  ;;  %v5039_v39 = vmul.f32 %v4815_v28, %v4815_v28  ;;  %v9956_v23 = vmul.f32 0.70710677, %v7408_v4  ;;  %v9978_v59 = vmul.f32 0.5, %v7408_v4 }
 0x41d   :  { %v4830_v7 = vmul.f32 0.3275911, %v4814_v60  ;;  %v9958_v9 = vmul.f32 0.70710677, %v7409_v37  ;;  %v7054_v47 = vpop.f32.mrb[4].mxu0  ;;  %v5038_v5 = vmul.f32 %v4814_v60, %v4814_v60  ;;  %v9984_v18 = vmul.f32 0.5, %v7409_v37 }
 0x41e   :  { %v4847_v11 = vadd.f32 1.0, %v4831_v33  ;;  %v4817_v56 = vand.u32 2147483647, %v9956_v23  ;;  %v4712_v54 = vpop.f32.mrb[5].mxu0  ;;  %v5055_v32 = vsub.f32 0.0, %v5039_v39  ;;  %v7410_v53 = vadd.f32 %v7054_v47, %v9935_v40 }
 0x41f   :  { %v4846_v36 = vadd.f32 1.0, %v4830_v7  ;;  %v4816_v31 = vand.u32 2147483647, %v9958_v9  ;;  %v5054_v25 = vsub.f32 0.0, %v5038_v5  ;;  %v7411_v26 = vadd.f32 %v9935_v40, %v4712_v54 }
 0x420   :  { %7739 = vrcp.f32 %v4847_v11  ;;  %v4833_v49 = vmul.f32 0.3275911, %v4817_v56  ;;  %v5041_v44 = vmul.f32 %v4817_v56, %v4817_v56  ;;  %v5072_v48 = vmul.f32 1.442695, %v5055_v32 }
 0x421   :  { %7741 = vrcp.f32 %v4846_v36  ;;  %v4832_v27 = vmul.f32 0.3275911, %v4816_v31  ;;  %v7057_v20 = vpop.f32.mrb[6].mxu0  ;;  %v9964_v8 = vmul.f32 0.70710677, %v7410_v53  ;;  %v5040_v45 = vmul.f32 %v4816_v31, %v4816_v31 }
 0x422   :  { %v4849_v38 = vadd.f32 1.0, %v4833_v49  ;;  %v4724_v15 = vpop.f32.mrb[7].mxu0  ;;  %v9968_v43 = vmul.f32 0.70710677, %v7411_v26  ;;  %v5070_v0 = vmul.f32 1.442695, %v5054_v25  ;;  %v7412_v57 = vadd.f32 %v7057_v20, %v9935_v40 }
 0x423   :  { %v4848_v10 = vadd.f32 1.0, %v4832_v27  ;;  %v5057_v22 = vsub.f32 0.0, %v5041_v44  ;;  %v4819_v1 = vand.u32 2147483647, %v9964_v8  ;;  %v9982_v63 = vadd.f32 %v9935_v40, %v4724_v15 }
 0x424   :  { %7743 = vrcp.f32 %v4849_v38  ;;  %v4818_v62 = vand.u32 2147483647, %v9968_v43  ;;  %v9986_v12 = vmul.f32 0.70710677, %v7412_v57  ;;  %v5056_v42 = vsub.f32 0.0, %v5040_v45 }
 0x425   :  { %7745 = vrcp.f32 %v4848_v10  ;;  %v9970_v50 = vpop.f32.mrb[8].mxu0  ;;  %v4835_v30 = vmul.f32 0.3275911, %v4819_v1  ;;  %v5043_v58 = vmul.f32 %v4819_v1, %v4819_v1  ;;  %v9989_v29 = vmul.f32 0.70710677, %v9982_v63 }
 0x426   :  { %v9974_v52 = vpop.f32.mrb[9].mxu0  ;;  %7747 = vpow2.f32 %v5072_v48  ;;  %v4834_v34 = vmul.f32 0.3275911, %v4818_v62  ;;  %v5076_v4 = vmul.f32 1.442695, %v5057_v22  ;;  %v5042_v47 = vmul.f32 %v4818_v62, %v4818_v62 }
 0x427   :  { %7749 = vpow2.f32 %v5070_v0  ;;  %v4851_v35 = vadd.f32 1.0, %v4835_v30  ;;  %v4821_v60 = vand.u32 2147483647, %v9986_v12  ;;  %v4820_v11 = vand.u32 2147483647, %v9989_v29 }
 0x428   :  { %v4850_v7 = vadd.f32 1.0, %v4834_v34  ;;  %v10003_v56 = vmul.f32 0.5, %v7410_v53  ;;  %v5074_v31 = vmul.f32 1.442695, %v5056_v42  ;;  %v5059_v32 = vsub.f32 0.0, %v5043_v58 }
 0x429   :  { %v9991_v19 = vpop.f32.mrb[10].mxu0  ;;  %7751 = vrcp.f32 %v4851_v35  ;;  %v4837_v54 = vmul.f32 0.3275911, %v4821_v60  ;;  %v5045_v38 = vmul.f32 %v4821_v60, %v4821_v60  ;;  %v4836_v44 = vmul.f32 0.3275911, %v4820_v11 }
 0x42a   :  { %v9993_v28 = vpop.eup %7739  ;;  %v9996_v37 = vpop.f32.mrb[11].mxu0  ;;  %7753 = vrcp.f32 %v4850_v7  ;;  %v10015_v45 = vmul.f32 0.5, %v7411_v26  ;;  %v5058_v0 = vsub.f32 0.0, %v5042_v47  ;;  %v5080_v58 = vmul.f32 1.442695, %v5059_v32 }
 0x42b   :  { %v9998_v33 = vpop.eup %7741  ;;  %v4895_v39 = vmul.f32 1.0614054, %v9993_v28  ;;  %v4853_v25 = vadd.f32 1.0, %v4837_v54  ;;  %v4852_v62 = vadd.f32 1.0, %v4836_v44  ;;  %v5044_v34 = vmul.f32 %v4820_v11, %v4820_v11 }
 0x42c   :  { %v4894_v5 = vmul.f32 1.0614054, %v9998_v33  ;;  %v5061_v7 = vsub.f32 0.0, %v5045_v38  ;;  %v10023_v54 = vmul.f32 0.5, %v7412_v57  ;;  %vm5137_vm9 = vcmp.ge.f32.partialorder %v9956_v23, 0.0 }
 0x42d   :  { %v4911_v36 = vadd.f32 -1.4531521, %v4895_v39  ;;  %v10005_v49 = vpop.f32.mrb[12].mxu0  ;;  %7755 = vrcp.f32 %v4853_v25  ;;  %v10030_v25 = vmul.f32 0.5, %v9982_v63  ;;  %v5060_v38 = vsub.f32 0.0, %v5044_v34 }
 0x42e   :  { %v10007_v27 = vpop.eup %7743  ;;  %v4910_v20 = vadd.f32 -1.4531521, %v4894_v5  ;;  %v10009_v15 = vpop.f32.mrb[13].mxu0  ;;  %7757 = vrcp.f32 %v4852_v62  ;;  %v10041_v34 = vadd.f32 %v9970_v50, %v9935_v40  ;;  %vm5136_vm11 = vcmp.ge.f32.partialorder %v9958_v9, 0.0 }
 0x42f   :  { %v10011_v10 = vpop.eup %7745  ;;  %v4927_v53 = vmul.f32 %v9993_v28, %v4911_v36  ;;  %v4897_v48 = vmul.f32 1.0614054, %v10007_v27  ;;  %7759 = vpow2.f32 %v5076_v4  ;;  %vm5139_vm4 = vcmp.ge.f32.partialorder %v9964_v8, 0.0 }
 0x430   :  { %v4926_v22 = vmul.f32 %v9998_v33, %v4910_v20  ;;  %v4896_v1 = vmul.f32 1.0614054, %v10011_v10  ;;  %v7748_v35 = vpop.eup %7747  ;;  %7761 = vpow2.f32 %v5074_v31  ;;  %vm5138_vm10 = vcmp.ge.f32.partialorder %v9968_v43, 0.0 }
 0x431   :  { %v4943_v30 = vadd.f32 1.4214138, %v4927_v53  ;;  %v4913_v42 = vadd.f32 -1.4531521, %v4897_v48  ;;  %v10019_v5 = vpop.f32.mrb[14].mxu0  ;;  %v7750_v20 = vpop.eup %7749  ;;  %7763 = vpow2.f32 %v5080_v58  ;;  %vm5141_vm14 = vcmp.ge.f32.partialorder %v9986_v12, 0.0 }
 0x432   :  { %v4942_v60 = vadd.f32 1.4214138, %v4926_v22  ;;  %v4912_v39 = vadd.f32 -1.4531521, %v4896_v1  ;;  %v10025_v36 = vpop.f32.mrb[15].mxu0  ;;  %vm5140_vm1 = vcmp.ge.f32.partialorder %v9989_v29, 0.0  ;;  %v7417_v43 = vadd.f32 %v9935_v40, %v9996_v37 }
 0x433   :  { %v4959_v26 = vmul.f32 %v9993_v28, %v4943_v30  ;;  %v4929_v47 = vmul.f32 %v10007_v27, %v4913_v42  ;;  %v5078_v48 = vmul.f32 1.442695, %v5058_v0  ;;  %v10032_v22 = vpop.eup %7751  ;;  %v5084_v1 = vmul.f32 1.442695, %v5061_v7 }
 0x434   :  { %v4958_v32 = vmul.f32 %v9998_v33, %v4942_v60  ;;  %v4928_v11 = vmul.f32 %v10011_v10, %v4912_v39  ;;  %v10034_v62 = vpop.eup %7753  ;;  %v4899_v63 = vmul.f32 1.0614054, %v10032_v22  ;;  %v10046_v58 = vmul.f32 1.442695, %v5060_v38 }
 0x435   :  { %v4975_v44 = vadd.f32 -0.28449672, %v4959_v26  ;;  %v4945_v53 = vadd.f32 1.4214138, %v4929_v47  ;;  %v4898_v60 = vmul.f32 1.0614054, %v10034_v62  ;;  %7765 = vpow2.f32 %v5078_v48 }
 0x436   :  { %v4974_v4 = vadd.f32 -0.28449672, %v4958_v32  ;;  %v4944_v57 = vadd.f32 1.4214138, %v4928_v11  ;;  %v4915_v26 = vadd.f32 -1.4531521, %v4899_v63  ;;  %7767 = vpow2.f32 %v5084_v1 }
 0x437   :  { %v4991_v30 = vmul.f32 %v9993_v28, %v4975_v44  ;;  %v4961_v42 = vmul.f32 %v10007_v27, %v4945_v53  ;;  %v10048_v47 = vpop.eup %7755  ;;  %v4914_v50 = vadd.f32 -1.4531521, %v4898_v60  ;;  %v10061_v63 = vmul.f32 0.70710677, %v10041_v34 }
 0x438   :  { %v4990_v31 = vmul.f32 %v9998_v33, %v4974_v4  ;;  %v4960_v0 = vmul.f32 %v10011_v10, %v4944_v57  ;;  %v4931_v4 = vmul.f32 %v10032_v22, %v4915_v26  ;;  %v4901_v38 = vmul.f32 1.0614054, %v10048_v47  ;;  %v10055_v57 = vpop.eup %7757 }
 0x439   :  { %v5007_v39 = vadd.f32 0.2548296, %v4991_v30  ;;  %v4977_v7 = vadd.f32 -0.28449672, %v4961_v42  ;;  %v4930_v42 = vmul.f32 %v10034_v62, %v4914_v50  ;;  %v7760_v1 = vpop.eup %7759  ;;  %v4900_v26 = vmul.f32 1.0614054, %v10055_v57 }
 0x43a   :  { %v5006_v32 = vadd.f32 0.2548296, %v4990_v31  ;;  %v4976_v11 = vadd.f32 -0.28449672, %v4960_v0  ;;  %v4947_v0 = vadd.f32 1.4214138, %v4931_v4  ;;  %7769 = vpow2.f32 %v10046_v58 }
 0x43b   :  { %v5023_v44 = vmul.f32 %v9993_v28, %v5007_v39  ;;  %v4993_v53 = vmul.f32 %v10007_v27, %v4977_v7  ;;  %v4917_v60 = vadd.f32 -1.4531521, %v4901_v38  ;;  %v4946_v7 = vadd.f32 1.4214138, %v4930_v42 }
 0x43c   :  { %v5022_v48 = vmul.f32 %v9998_v33, %v5006_v32  ;;  %v4992_v30 = vmul.f32 %v10011_v10, %v4976_v11  ;;  %v10067_v33 = vadd.f32 %v9935_v40, %v9974_v52  ;;  %v7762_v32 = vpop.eup %7761  ;;  %v4916_v42 = vadd.f32 -1.4531521, %v4900_v26 }
 0x43d   :  { %v5103_v31 = vmul.f32 %v7748_v35, %v5023_v44  ;;  %v5009_v28 = vadd.f32 0.2548296, %v4993_v53  ;;  %v4963_v35 = vmul.f32 %v10032_v22, %v4947_v0  ;;  %v4933_v44 = vmul.f32 %v10048_v47, %v4917_v60  ;;  %v7764_v53 = vpop.eup %7763 }
 0x43e   :  { %v5008_v39 = vadd.f32 0.2548296, %v4992_v30  ;;  %v5102_v4 = vmul.f32 %v7750_v20, %v5022_v48  ;;  %v4962_v30 = vmul.f32 %v10034_v62, %v4946_v7  ;;  %vm5143_vm5 = vcmp.ge.f32.partialorder %v10061_v63, 0.0 }
 0x43f   :  { %v5119_v11 = vsub.f32 1.0, %v5103_v31  ;;  %v5025_v50 = vmul.f32 %v10007_v27, %v5009_v28  ;;  %v4979_v16 = vadd.f32 -0.28449672, %v4963_v35  ;;  %v4949_v46 = vadd.f32 1.4214138, %v4933_v44  ;;  %v7766_v0 = vpop.eup %7765 }
 0x440   :  { %v5024_v38 = vmul.f32 %v10011_v10, %v5008_v39  ;;  %v4978_v21 = vadd.f32 -0.28449672, %v4962_v30  ;;  %v4932_v27 = vmul.f32 %v10055_v57, %v4916_v42  ;;  %v10078_v28 = vadd.f32 %v9991_v19, %v9935_v40  ;;  %v7768_v60 = vpop.eup %7767 }
 0x441   :  { %v5151_v55 = vsub.f32 0.0, %v5119_v11  ;;  %v5105_v52 = vmul.f32 %v7760_v1, %v5025_v50  ;;  %v4995_v48 = vmul.f32 %v10032_v22, %v4979_v16  ;;  %v4965_v1 = vmul.f32 %v10048_v47, %v4949_v46 }
 0x442   :  { %v5104_v31 = vmul.f32 %v7762_v32, %v5024_v38  ;;  %v5118_v39 = vsub.f32 1.0, %v5102_v4  ;;  %v4994_v26 = vmul.f32 %v10034_v62, %v4978_v21  ;;  %v4823_v32 = vand.u32 2147483647, %v10061_v63 }
 0x443   :  { %v5167_v20 = vsel %vm5135_vm8, %v5119_v11, %v5151_v55  ;;  %v5121_v10 = vsub.f32 1.0, %v5105_v52  ;;  %v5011_v35 = vadd.f32 0.2548296, %v4995_v48  ;;  %v4981_v44 = vadd.f32 -0.28449672, %v4965_v1 }
 0x444   :  { %v5120_v7 = vsub.f32 1.0, %v5104_v31  ;;  %v5183_v19 = vadd.f32 1.0, %v5167_v20  ;;  %v5010_v55 = vadd.f32 0.2548296, %v4994_v26  ;;  %v4948_v11 = vadd.f32 1.4214138, %v4932_v27 }
 0x445   :  { %v5153_v50 = vsub.f32 0.0, %v5121_v10  ;;  %v10089_v16 = vmul.f32 0.5, %v10041_v34  ;;  %v5027_v4 = vmul.f32 %v10032_v22, %v5011_v35  ;;  %v4997_v21 = vmul.f32 %v10048_v47, %v4981_v44 }
 0x446   :  { %v5152_v14 = vsub.f32 0.0, %v5120_v7  ;;  %v5150_v38 = vsub.f32 0.0, %v5118_v39  ;;  %v5026_v52 = vmul.f32 %v10034_v62, %v5010_v55  ;;  %v5199_v34 = vmul.f32 %v5183_v19, %v9966_v3 }
 0x447   :  { %v5169_v46 = vsel %vm5137_vm9, %v5121_v10, %v5153_v50  ;;  %v5107_v23 = vmul.f32 %v7764_v53, %v5027_v4  ;;  %v5013_v27 = vadd.f32 0.2548296, %v4997_v21  ;;  %v4964_v10 = vmul.f32 %v10055_v57, %v4948_v11 }
 0x448   :  { %v5185_v30 = vadd.f32 1.0, %v5169_v46  ;;  %v5168_v42 = vsel %vm5136_vm11, %v5120_v7, %v5152_v14  ;;  %v5106_v20 = vmul.f32 %v7766_v0, %v5026_v52  ;;  %v4839_v58 = vmul.f32 0.3275911, %v4823_v32 }
 0x449   :  { %v5184_v31 = vadd.f32 1.0, %v5168_v42  ;;  %v5123_v1 = vsub.f32 1.0, %v5107_v23  ;;  %v5029_v9 = vmul.f32 %v10048_v47, %v5013_v27  ;;  %v10107_v62 = vmul.f32 0.5, %v10067_v33 }
 0x44a   :  { %v5201_v22 = vmul.f32 %v5185_v30, %v9978_v59  ;;  %v5166_v3 = vsel %vm5134_vm6, %v5118_v39, %v5150_v38  ;;  %v5122_v53 = vsub.f32 1.0, %v5106_v20  ;;  %v4980_v7 = vadd.f32 -0.28449672, %v4964_v10 }
 0x44b   :  { %v5200_v48 = vmul.f32 %v5184_v31, %v9984_v18  ;;  %v4855_v59 = vadd.f32 1.0, %v4839_v58  ;;  %v5229_v0 = vsel %vm3519_vm7, %v5199_v34, 0  ;;  %v5155_v19 = vsub.f32 0.0, %v5123_v1 }
 0x44c   :  { %v5235_v26 = vsel %vm3519_vm7, %v5201_v22, 0  ;;  %v5109_v50 = vmul.f32 %v7768_v60, %v5029_v9  ;;  %v5154_v35 = vsub.f32 0.0, %v5122_v53  ;;  %v4996_v47 = vmul.f32 %v10055_v57, %v4980_v7  ;;  %v7770_v60 = vpop.eup %7769 }
 0x44d   :  { %v5232_v18 = vsel %vm3519_vm7, %v5200_v48, 0  ;;  %7771 = vrcp.f32 %v4855_v59  ;;  %v5182_v44 = vadd.f32 1.0, %v5166_v3  ;;  %v5171_v51 = vsel %vm5139_vm4, %v5123_v1, %v5155_v19 }
 0x44e   :  { %v5125_v39 = vsub.f32 1.0, %v5109_v50  ;;  %v5047_v14 = vmul.f32 %v4823_v32, %v4823_v32  ;;  %v10117_v55 = vand.u32 4294901760, %v5229_v0  ;;  %v5187_v11 = vadd.f32 1.0, %v5171_v51 }
 0x44f   :  { %v5170_v46 = vsel %vm5138_vm10, %v5122_v53, %v5154_v35  ;;  %v5012_v4 = vadd.f32 0.2548296, %v4996_v47  ;;  %v10121_v21 = vand.u32 4294901760, %v5235_v26  ;;  %v10123_v38 = vand.u32 4294901760, %v5232_v18 }
 0x450   :  { %v5186_v30 = vadd.f32 1.0, %v5170_v46  ;;  %v5157_v42 = vsub.f32 0.0, %v5125_v39  ;;  %v5203_v8 = vmul.f32 %v5187_v11, %v10003_v56  ;;  %v10129_v52 = vmul.f32 0.70710677, %v10067_v33 }
 0x451   :  { %v5028_v32 = vmul.f32 %v10055_v57, %v5012_v4  ;;  %v5063_v23 = vsub.f32 0.0, %v5047_v14  ;;  %v10137_v27 = vmul.f32 0.70710677, %v10078_v28  ;;  %v10142_v57 = vadd.f32 %v10005_v49, %v9935_v40 }
 0x452   :  { %v5202_v34 = vmul.f32 %v5186_v30, %v10015_v45  ;;  %v5173_v31 = vsel %vm5141_vm14, %v5125_v39, %v5157_v42  ;;  %v4822_v56 = vand.u32 2147483647, %v10129_v52  ;;  %v10145_v33 = vsub.f32 %v5229_v0, %v10117_v55 }
 0x453   :  { %v5189_v22 = vadd.f32 1.0, %v5173_v31  ;;  %v5108_v20 = vmul.f32 %v7770_v60, %v5028_v32  ;;  %v10148_v37 = vmul.f32 %v5182_v44, %v9976_v24  ;;  %v10151_v12 = vsub.f32 %v5235_v26, %v10121_v21 }
 0x454   :  { %v10154_v45 = vsub.f32 %v5232_v18, %v10123_v38  ;;  %v5241_v10 = vsel %vm3519_vm7, %v5203_v8, 0  ;;  %v4838_v1 = vmul.f32 0.3275911, %v4822_v56  ;;  %v5238_v49 = vsel %vm3519_vm7, %v5202_v34, 0 }
 0x455   :  { %v5205_v58 = vmul.f32 %v5189_v22, %v10023_v54  ;;  %v5124_v48 = vsub.f32 1.0, %v5108_v20  ;;  %v5088_v9 = vmul.f32 1.442695, %v5063_v23  ;;  %v5046_v3 = vmul.f32 %v4822_v56, %v4822_v56 }
 0x456   :  { %v4825_v53 = vand.u32 2147483647, %v10137_v27  ;;  %v4854_v0 = vadd.f32 1.0, %v4838_v1  ;;  %v10164_v26 = vmul.f32 0.5, %v10078_v28  ;;  %v10166_v19 = vand.u32 4294901760, %v5241_v10 }
 0x457   :  { %v10160_v24 = vpop.eup %7771  ;;  %v5247_v7 = vsel %vm3519_vm7, %v5205_v58, 0  ;;  %v5156_v59 = vsub.f32 0.0, %v5124_v48  ;;  %v5062_v50 = vsub.f32 0.0, %v5046_v3  ;;  %v10169_v35 = vand.u32 4294901760, %v5238_v49 }
 0x458   :  { %v4903_v54 = vmul.f32 1.0614054, %v10160_v24  ;;  %v4841_v18 = vmul.f32 0.3275911, %v4825_v53  ;;  %7773 = vrcp.f32 %v4854_v0  ;;  %v5049_v44 = vmul.f32 %v4825_v53, %v4825_v53 }
 0x459   :  { %v5172_v47 = vsel %vm5140_vm1, %v5124_v48, %v5156_v59  ;;  %v10173_v51 = vand.u32 4294901760, %v5247_v7  ;;  %7775 = vpow2.f32 %v5088_v9  ;;  %v5086_v28 = vmul.f32 1.442695, %v5062_v50 }
 0x45a   :  { %v5188_v39 = vadd.f32 1.0, %v5172_v47  ;;  %v4919_v14 = vadd.f32 -1.4531521, %v4903_v54  ;;  %v4857_v11 = vadd.f32 1.0, %v4841_v18  ;;  %v5065_v46 = vsub.f32 0.0, %v5049_v44 }
 0x45b   :  { %v10175_v4 = vmul.f32 0.70710677, %v7417_v43  ;;  %v10178_v60 = vsub.f32 %v5241_v10, %v10166_v19  ;;  %v10183_v42 = vmul.f32 0.70710677, %v10142_v57  ;;  %v10186_v8 = vsub.f32 %v5238_v49, %v10169_v35 }
 0x45c   :  { %v5204_v30 = vmul.f32 %v5188_v39, %v10030_v25  ;;  %v4935_v29 = vmul.f32 %v10160_v24, %v4919_v14  ;;  %7777 = vrcp.f32 %v4857_v11  ;;  %v5092_v32 = vmul.f32 1.442695, %v5065_v46 }
 0x45d   :  { %v4824_v34 = vand.u32 2147483647, %v10175_v4  ;;  %v10190_v22 = vmul.f32 0.5, %v7417_v43  ;;  %v4827_v20 = vand.u32 2147483647, %v10183_v42  ;;  %v10194_v25 = vsub.f32 %v5247_v7, %v10173_v51 }
 0x45e   :  { %v5244_v31 = vsel %vm3519_vm7, %v5204_v30, 0  ;;  %v4951_v23 = vadd.f32 1.4214138, %v4935_v29  ;;  %7779 = vpow2.f32 %v5086_v28  ;;  %v7419_v49 = vadd.f32 %v9935_v40, %v10009_v15 }
 0x45f   :  { %v4840_v56 = vmul.f32 0.3275911, %v4824_v34  ;;  %v5048_v10 = vmul.f32 %v4824_v34, %v4824_v34  ;;  %v4843_v48 = vmul.f32 0.3275911, %v4827_v20  ;;  %v5051_v1 = vmul.f32 %v4827_v20, %v4827_v20 }
 0x460   :  { %v4967_v58 = vmul.f32 %v10160_v24, %v4951_v23  ;;  %v10199_v9 = vand.u32 4294901760, %v5244_v31  ;;  %v7420_v53 = vadd.f32 %v10019_v5, %v9935_v40  ;;  %7781 = vpow2.f32 %v5092_v32 }
 0x461   :  { %v4856_v3 = vadd.f32 1.0, %v4840_v56  ;;  %v5064_v43 = vsub.f32 0.0, %v5048_v10  ;;  %v4859_v7 = vadd.f32 1.0, %v4843_v48  ;;  %v5067_v0 = vsub.f32 0.0, %v5051_v1 }
 0x462   :  { %v4983_v59 = vadd.f32 -0.28449672, %v4967_v58  ;;  %v10203_v54 = vpop.eup %7773  ;;  %v10206_v18 = vmul.f32 0.5, %v10142_v57  ;;  %v10208_v47 = vmul.f32 0.70710677, %v7419_v49  ;;  %v10213_v14 = vsub.f32 %v5244_v31, %v10199_v9 }
 0x463   :  { %7783 = vrcp.f32 %v4856_v3  ;;  %v5090_v50 = vmul.f32 1.442695, %v5064_v43  ;;  %v7776_v15 = vpop.eup %7775  ;;  %v4902_v39 = vmul.f32 1.0614054, %v10203_v54  ;;  %v5096_v5 = vmul.f32 1.442695, %v5067_v0 }
 0x464   :  { %v4999_v44 = vmul.f32 %v10160_v24, %v4983_v59  ;;  %7785 = vrcp.f32 %v4859_v7  ;;  %v10215_v28 = vmul.f32 0.5, %v7419_v49  ;;  %v4826_v11 = vand.u32 2147483647, %v10208_v47 }
 0x465   :  { %v10218_v46 = vmul.f32 0.70710677, %v7420_v53  ;;  %v4918_v30 = vadd.f32 -1.4531521, %v4902_v39  ;;  %v10220_v29 = vmul.f32 0.5, %v7420_v53  ;;  %v7421_v32 = vadd.f32 %v9935_v40, %v10025_v36 }
 0x466   :  { %v5015_v57 = vadd.f32 0.2548296, %v4999_v44  ;;  %v10224_v34 = vpop.eup %7777  ;;  %7787 = vpow2.f32 %v5090_v50  ;;  %v4842_v31 = vmul.f32 0.3275911, %v4826_v11  ;;  %v5050_v23 = vmul.f32 %v4826_v11, %v4826_v11 }
 0x467   :  { %v4829_v20 = vand.u32 2147483647, %v10218_v46  ;;  %v4934_v10 = vmul.f32 %v10203_v54, %v4918_v30  ;;  %v4905_v58 = vmul.f32 1.0614054, %v10224_v34  ;;  %7789 = vpow2.f32 %v5096_v5 }
 0x468   :  { %v5031_v56 = vmul.f32 %v10160_v24, %v5015_v57  ;;  %v7780_v48 = vpop.eup %7779  ;;  %v4858_v1 = vadd.f32 1.0, %v4842_v31  ;;  %v5066_v49 = vsub.f32 0.0, %v5050_v23  ;;  %v10231_v59 = vmul.f32 0.70710677, %v7421_v32 }
 0x469   :  { %v4845_v40 = vmul.f32 0.3275911, %v4829_v20  ;;  %v5053_v36 = vmul.f32 %v4829_v20, %v4829_v20  ;;  %v4950_v43 = vadd.f32 1.4214138, %v4934_v10  ;;  %v4921_v53 = vadd.f32 -1.4531521, %v4905_v58 }
 0x46a   :  { %v5111_v3 = vmul.f32 %v7776_v15, %v5031_v56  ;;  %7791 = vrcp.f32 %v4858_v1  ;;  %v5094_v7 = vmul.f32 1.442695, %v5066_v49  ;;  %v10233_v24 = vpop.eup %7781  ;;  %v4828_v11 = vand.u32 2147483647, %v10231_v59 }
 0x46b   :  { %v4861_v0 = vadd.f32 1.0, %v4845_v40  ;;  %v5069_v50 = vsub.f32 0.0, %v5053_v36  ;;  %v4966_v39 = vmul.f32 %v10203_v54, %v4950_v43  ;;  %v4937_v5 = vmul.f32 %v10224_v34, %v4921_v53 }
 0x46c   :  { %v5127_v44 = vsub.f32 1.0, %v5111_v3  ;;  %7793 = vpow2.f32 %v5094_v7  ;;  %v10240_v30 = vmul.f32 0.5, %v7421_v32  ;;  %v5226_v31 = vsel %vm3519_vm7, %v10148_v37, 0 }
 0x46d   :  { %v10238_v57 = vpop.eup %7783  ;;  %v5100_v15 = vmul.f32 1.442695, %v5069_v50  ;;  %v4982_v56 = vadd.f32 -0.28449672, %v4966_v39  ;;  %v4953_v10 = vadd.f32 1.4214138, %v4937_v5  ;;  %7795 = vrcp.f32 %v4861_v0 }
 0x46e   :  { %v10244_v23 = vpop.eup %7785  ;;  %v5159_v20 = vsub.f32 0.0, %v5127_v44  ;;  %v4904_v58 = vmul.f32 1.0614054, %v10238_v57  ;;  %v4844_v49 = vmul.f32 0.3275911, %v4828_v11  ;;  %v5052_v37 = vmul.f32 %v4828_v11, %v4828_v11 }
 0x46f   :  { %v4907_v1 = vmul.f32 1.0614054, %v10244_v23  ;;  %7797 = vpow2.f32 %v5100_v15  ;;  %v4998_v32 = vmul.f32 %v10203_v54, %v4982_v56  ;;  %v4969_v36 = vmul.f32 %v10224_v34, %v4953_v10 }
 0x470   :  { %v5175_v40 = vsel %vm5143_vm5, %v5127_v44, %v5159_v20  ;;  %v10252_v3 = vpop.eup %7787  ;;  %v4920_v53 = vadd.f32 -1.4531521, %v4904_v58  ;;  %v4860_v0 = vadd.f32 1.0, %v4844_v49  ;;  %v5068_v15 = vsub.f32 0.0, %v5052_v37 }
 0x471   :  { %v5191_v43 = vadd.f32 1.0, %v5175_v40  ;;  %v4923_v7 = vadd.f32 -1.4531521, %v4907_v1  ;;  %v10254_v50 = vpop.eup %7789  ;;  %v5014_v39 = vadd.f32 0.2548296, %v4998_v32  ;;  %v10256_v61 = vand.u32 4294901760, %v5226_v31 }
 0x472   :  { %v4985_v5 = vadd.f32 -0.28449672, %v4969_v36  ;;  %vm5142_vm3 = vcmp.ge.f32.partialorder %v10129_v52, 0.0  ;;  %v4936_v44 = vmul.f32 %v10238_v57, %v4920_v53  ;;  %7799 = vrcp.f32 %v4860_v0 }
 0x473   :  { %v5207_v63 = vmul.f32 %v5191_v43, %v10089_v16  ;;  %v4939_v11 = vmul.f32 %v10244_v23, %v4923_v7  ;;  %v5030_v20 = vmul.f32 %v10203_v54, %v5014_v39  ;;  %v5098_v10 = vmul.f32 1.442695, %v5068_v15 }
 0x474   :  { %v5001_v56 = vmul.f32 %v10224_v34, %v4985_v5  ;;  %v10265_v58 = vsub.f32 %v5226_v31, %v10256_v61  ;;  %v10267_v1 = vpop.eup %7791  ;;  %v4952_v16 = vadd.f32 1.4214138, %v4936_v44  ;;  %v10827_v32 = vand.u32 4294901760, %v9904_v6 }
 0x475   :  { %v5253_v49 = vsel %vm3519_vm7, %v5207_v63, 0  ;;  %v4955_v40 = vadd.f32 1.4214138, %v4939_v11  ;;  %v5110_v54 = vmul.f32 %v7780_v48, %v5030_v20  ;;  %v4906_v53 = vmul.f32 1.0614054, %v10267_v1 }
 0x476   :  { %10826 = vst [vmem:[#allocation8_spill] sm:$0xff] %v10265_v58  ;;  %v10273_v36 = vsub.f32 %v9904_v6, %v10827_v32  ;;  %v10275_v37 = vand.u32 4294901760, %v5253_v49  ;;  %v5017_v43 = vadd.f32 0.2548296, %v5001_v56  ;;  %v10278_v7 = vpop.eup %7793  ;;  %vm5145_vm15 = vcmp.ge.f32.partialorder %v10137_v27, 0.0 }
 0x477   :  { %v4968_v31 = vmul.f32 %v10238_v57, %v4952_v16  ;;  %v4971_v0 = vmul.f32 %v10244_v23, %v4955_v40  ;;  %7801 = vpow2.f32 %v5098_v10  ;;  %v10696_v39 = vand.u32 4294901760, %v10265_v58  ;;  %v10284_v5 = vpop.eup %7795 }
 0x478   :  { %10828 = vst [vmem:[#allocation13_spill] sm:$0xff] %v10275_v37  ;;  %v10287_v6 = vsub.f32 %v5253_v49, %v10275_v37  ;;  %v5126_v48 = vsub.f32 1.0, %v5110_v54  ;;  %v5033_v15 = vmul.f32 %v10224_v34, %v5017_v43  ;;  %v4922_v63 = vadd.f32 -1.4531521, %v4906_v53 }
 0x479   :  { %v10290_v44 = vpop.eup %7797  ;;  %v4984_v11 = vadd.f32 -0.28449672, %v4968_v31  ;;  %v4987_v20 = vadd.f32 -0.28449672, %v4971_v0  ;;  %v4909_v56 = vmul.f32 1.0614054, %v10284_v5  ;;  %v5345_v10 = vsub.f32 %v10265_v58, %v10696_v39 }
 0x47a   :  { %v5158_v16 = vsub.f32 0.0, %v5126_v48  ;;  %v5113_v40 = vmul.f32 %v10233_v24, %v5033_v15  ;;  %v4938_v49 = vmul.f32 %v10267_v1, %v4922_v63  ;;  %v5505_v32 = vand.u32 4294901760, %v10273_v36 }
 0x47b   :  { %v5000_v34 = vmul.f32 %v10238_v57, %v4984_v11  ;;  %v5003_v54 = vmul.f32 %v10244_v23, %v4987_v20  ;;  %v4925_v43 = vadd.f32 -1.4531521, %v4909_v56  ;;  %v5346_v53 = vand.u32 4294901760, %v5345_v10 }
 0x47c   :  { %v5174_v31 = vsel %vm5142_vm3, %v5126_v48, %v5158_v16  ;;  %v5129_v0 = vsub.f32 1.0, %v5113_v40  ;;  %v4954_v37 = vadd.f32 1.4214138, %v4938_v49  ;;  %v5506_v39 = vsub.f32 %v10273_v36, %v5505_v32  ;;  %v10306_v24 = vpop.eup %7799 }
 0x47d   :  { %v5190_v15 = vadd.f32 1.0, %v5174_v31  ;;  %v5016_v63 = vadd.f32 0.2548296, %v5000_v34  ;;  %v5019_v58 = vadd.f32 0.2548296, %v5003_v54  ;;  %v4941_v11 = vmul.f32 %v10284_v5, %v4925_v43  ;;  %7078 = vmatprep.mubr.f32.mxu1 %v5346_v53 }
 0x47e   :  { %v5161_v20 = vsub.f32 0.0, %v5129_v0  ;;  %vm5144_vm2 = vcmp.ge.f32.partialorder %v10175_v4, 0.0  ;;  %vm5147_vm0 = vcmp.ge.f32.partialorder %v10183_v42, 0.0  ;;  %v4970_v52 = vmul.f32 %v10267_v1, %v4954_v37 }
 0x47f   :  { %v4908_v48 = vmul.f32 1.0614054, %v10306_v24  ;;  %v5507_v56 = vand.u32 4294901760, %v5506_v39  ;;  %v5206_v10 = vmul.f32 %v5190_v15, %v10107_v62  ;;  %v5032_v16 = vmul.f32 %v10238_v57, %v5016_v63 }
 0x480   :  { %v5035_v40 = vmul.f32 %v10244_v23, %v5019_v58  ;;  %v4957_v49 = vadd.f32 1.4214138, %v4941_v11  ;;  %v5177_v34 = vsel %vm5145_vm15, %v5129_v0, %v5161_v20  ;;  %v4986_v54 = vadd.f32 -0.28449672, %v4970_v52 }
 0x481   :  { %v4924_v43 = vadd.f32 -1.4531521, %v4908_v48  ;;  %v10829_v53 = vand.u32 4294901760, %v9909_v41  ;;  %v10323_v37 = vpop.eup %7801  ;;  %v5250_v39 = vsel %vm3519_vm7, %v5206_v10, 0  ;;  %v5193_v62 = vadd.f32 1.0, %v5177_v34 }
 0x482   :  { %v5112_v57 = vmul.f32 %v10252_v3, %v5032_v16  ;;  %v5115_v23 = vmul.f32 %v10254_v50, %v5035_v40  ;;  %v10328_v58 = vand.u32 4294901760, %v5250_v39  ;;  %v5002_v27 = vmul.f32 %v10267_v1, %v4986_v54 }
 0x483   :  { %v10321_v31 = vsub.f32 %v9909_v41, %v10829_v53  ;;  %v4973_v0 = vmul.f32 %v10284_v5, %v4957_v49  ;;  %v4940_v15 = vmul.f32 %v10306_v24, %v4924_v43  ;;  %v5209_v41 = vmul.f32 %v5193_v62, %v10164_v26 }
 0x484   :  { %v5128_v63 = vsub.f32 1.0, %v5112_v57  ;;  %v5131_v11 = vsub.f32 1.0, %v5115_v23  ;;  %v10336_v52 = vsub.f32 %v5250_v39, %v10328_v58  ;;  %v5018_v3 = vadd.f32 0.2548296, %v5002_v27 }
 0x485   :  { %v5512_v20 = vand.u32 4294901760, %v10321_v31  ;;  %v4989_v48 = vadd.f32 -0.28449672, %v4973_v0  ;;  %v4956_v50 = vadd.f32 1.4214138, %v4940_v15  ;;  %v5259_v10 = vsel %vm3519_vm7, %v5209_v41, 0 }
 0x486   :  { %v5160_v16 = vsub.f32 0.0, %v5128_v63  ;;  %v5163_v40 = vsub.f32 0.0, %v5131_v11  ;;  %vm5146_vm12 = vcmp.ge.f32.partialorder %v10208_v47, 0.0  ;;  %v10343_v49 = vand.u32 4294901760, %v5259_v10 }
 0x487   :  { %v5513_v26 = vsub.f32 %v10321_v31, %v5512_v20  ;;  %v5034_v34 = vmul.f32 %v10267_v1, %v5018_v3  ;;  %v5005_v54 = vmul.f32 %v10284_v5, %v4989_v48  ;;  %v4972_v43 = vmul.f32 %v10306_v24, %v4956_v50 }
 0x488   :  { %v5176_v53 = vsel %vm5144_vm2, %v5128_v63, %v5160_v16  ;;  %v5179_v39 = vsel %vm5147_vm0, %v5131_v11, %v5163_v40  ;;  %v5354_v57 = vand.u32 4294901760, %v10145_v33  ;;  %v10354_v23 = vsub.f32 %v5259_v10, %v10343_v49 }
 0x489   :  { %v5514_v62 = vand.u32 4294901760, %v5513_v26  ;;  %v5192_v27 = vadd.f32 1.0, %v5176_v53  ;;  %v5195_v0 = vadd.f32 1.0, %v5179_v39  ;;  %v5114_v1 = vmul.f32 %v10278_v7, %v5034_v34 }
 0x48a   :  { %v5021_v15 = vadd.f32 0.2548296, %v5005_v54  ;;  %v4988_v41 = vadd.f32 -0.28449672, %v4972_v43  ;;  %v5355_v4 = vsub.f32 %v10145_v33, %v5354_v57  ;;  %vm5149_vm13 = vcmp.ge.f32.partialorder %v10218_v46, 0.0 }
 0x48b   :  { %v7366_v3 = vpack.c.bf16 %v5514_v62, %v5507_v56  ;;  %v5208_v42 = vmul.f32 %v5192_v27, %v10190_v22  ;;  %v5211_v63 = vmul.f32 %v5195_v0, %v10206_v18  ;;  %v5130_v11 = vsub.f32 1.0, %v5114_v1 }
 0x48c   :  { %v5364_v48 = vand.u32 4294901760, %v10154_v45  ;;  %v5037_v50 = vmul.f32 %v10284_v5, %v5021_v15  ;;  %v5004_v7 = vmul.f32 %v10306_v24, %v4988_v41  ;;  %v5356_v10 = vand.u32 4294901760, %v5355_v4 }
 0x48d   :  { %7367 = vmatprep.subr.bf16.mxu1 %v7366_v3  ;;  %v5374_v56 = vand.u32 4294901760, %v10151_v12  ;;  %v5256_v16 = vsel %vm3519_vm7, %v5208_v42, 0  ;;  %v5265_v40 = vsel %vm3519_vm7, %v5211_v63, 0  ;;  %v5162_v22 = vsub.f32 0.0, %v5130_v11 }
 0x48e   :  { %v5365_v18 = vsub.f32 %v10154_v45, %v5364_v48  ;;  %v10372_v26 = vand.u32 4294901760, %v5256_v16  ;;  %v10374_v34 = vand.u32 4294901760, %v5265_v40  ;;  %v5117_v5 = vmul.f32 %v10290_v44, %v5037_v50  ;;  %7079 = vmatmul.mubr.f32.vlgmr.msra.gmra.mrb[0].mxu1 %v5356_v10 }
 0x48f   :  { %v5020_v54 = vadd.f32 0.2548296, %v5004_v7  ;;  %v5178_v43 = vsel %vm5146_vm12, %v5130_v11, %v5162_v22  ;;  %7369 = vmatpush3.bf16.msra.mxu1 %v7366_v3  ;;  %v5375_v39 = vsub.f32 %v10151_v12, %v5374_v56  ;;  %v5384_v62 = vand.u32 4294901760, %v10186_v8 }
 0x490   :  { %v5366_v53 = vand.u32 4294901760, %v5365_v18  ;;  %v10384_v27 = vsub.f32 %v5256_v16, %v10372_v26  ;;  %v10387_v0 = vsub.f32 %v5265_v40, %v10374_v34  ;;  %v5194_v44 = vadd.f32 1.0, %v5178_v43 }
 0x491   :  { %v5133_v1 = vsub.f32 1.0, %v5117_v5  ;;  %vm5148_vm8 = vcmp.ge.f32.partialorder %v10231_v59, 0.0  ;;  %v5036_v47 = vmul.f32 %v10306_v24, %v5020_v54  ;;  %v5376_v15 = vand.u32 4294901760, %v5375_v39  ;;  %v7805_v39 = vld [vmem:[%s10607_s4 + $0x10] sm:$0xff] }
 0x492   :  { %7081 = vmatprep.mubr.f32.mxu1 %v5366_v53  ;;  %v5385_v41 = vsub.f32 %v10186_v8, %v5384_v62  ;;  %v5394_v3 = vand.u32 4294901760, %v10178_v60  ;;  %v5210_v4 = vmul.f32 %v5194_v44, %v10215_v28  ;;  %v5404_v63 = vand.u32 4294901760, %v10213_v14 }
 0x493   :  { %v5165_v42 = vsub.f32 0.0, %v5133_v1  ;;  %v5414_v11 = vand.u32 4294901760, %v10194_v25  ;;  %v5116_v50 = vmul.f32 %v10323_v37, %v5036_v47  ;;  %7082 = vmatmul.mubr.f32.gmra.mrb[2].mxu1 %v5376_v15  ;;  %v5424_v10 = vand.u32 4294901760, %v10336_v52 }
 0x494   :  { %v5386_v7 = vand.u32 4294901760, %v5385_v41  ;;  %v5395_v24 = vsub.f32 %v10178_v60, %v5394_v3  ;;  %v5262_v16 = vsel %vm3519_vm7, %v5210_v4, 0  ;;  %v5405_v40 = vsub.f32 %v10213_v14, %v5404_v63  ;;  %v7806_v4 = vld [vmem:[%s10607_s4 + $0x18] sm:$0xff] }
 0x495   :  { %v5181_v28 = vsel %vm5149_vm13, %v5133_v1, %v5165_v42  ;;  %v5415_v37 = vsub.f32 %v10194_v25, %v5414_v11  ;;  %v10412_v22 = vand.u32 4294901760, %v5262_v16  ;;  %v5132_v5 = vsub.f32 1.0, %v5116_v50 }
 0x496   :  { %v5197_v18 = vadd.f32 1.0, %v5181_v28  ;;  %7084 = vmatprep.mubr.f32.mxu1 %v5386_v7  ;;  %v5396_v54 = vand.u32 4294901760, %v5395_v24  ;;  %v5406_v43 = vand.u32 4294901760, %v5405_v40  ;;  %v5425_v46 = vsub.f32 %v10336_v52, %v5424_v10 }
 0x497   :  { %v5416_v53 = vand.u32 4294901760, %v5415_v37  ;;  %v10830_v44 = vand.u32 4294901760, %v9922_v17  ;;  %v10423_v47 = vsub.f32 %v5262_v16, %v10412_v22  ;;  %v5164_v41 = vsub.f32 0.0, %v5132_v5 }
 0x498   :  { %v5213_v15 = vmul.f32 %v5197_v18, %v10220_v29  ;;  %7085 = vmatmul.mubr.f32.gmra.mrb[4].mxu1 %v5396_v54  ;;  %v10831_v42 = vand.u32 4294901760, %v9927_v2  ;;  %v5426_v7 = vand.u32 4294901760, %v5425_v46  ;;  %v10700_v17 = vand.u32 4294901760, %v10287_v6 }
 0x499   :  { %v5518_v1 = vsub.f32 %v7805_v39, %v10830_v44  ;;  %7087 = vmatprep.mubr.f32.mxu1 %v5406_v43  ;;  %v10699_v28 = vand.u32 4294901760, %v10384_v27  ;;  %v5180_v29 = vsel %vm5148_vm8, %v5132_v5, %v5164_v41  ;;  %v5454_v37 = vand.u32 4294901760, %v10354_v23 }
 0x49a   :  { %v5525_v50 = vsub.f32 %v7806_v4, %v10831_v42  ;;  %v5271_v16 = vsel %vm3519_vm7, %v5213_v15, 0  ;;  %v5196_v54 = vadd.f32 1.0, %v5180_v29  ;;  %v5435_v43 = vsub.f32 %v10287_v6, %v10700_v17 }
 0x49b   :  { %v5519_v24 = vand.u32 4294901760, %v5518_v1  ;;  %v10437_v18 = vand.u32 4294901760, %v5271_v16  ;;  %v5445_v39 = vsub.f32 %v10384_v27, %v10699_v28  ;;  %v5464_v59 = vand.u32 4294901760, %v10423_v47 }
 0x49c   :  { %v5526_v40 = vand.u32 4294901760, %v5525_v50  ;;  %7088 = vmatmul.mubr.f32.gmra.mrb[6].mxu1 %v5416_v53  ;;  %v5212_v44 = vmul.f32 %v5196_v54, %v10240_v30  ;;  %v5455_v41 = vsub.f32 %v10354_v23, %v5454_v37  ;;  %v5436_v53 = vand.u32 4294901760, %v5435_v43 }
 0x49d   :  { %v5520_v2 = vsub.f32 %v5518_v1, %v5519_v24  ;;  %v10447_v5 = vsub.f32 %v5271_v16, %v10437_v18  ;;  %7090 = vmatprep.mubr.f32.mxu1 %v5426_v7  ;;  %v5446_v42 = vand.u32 4294901760, %v5445_v39  ;;  %v5465_v29 = vsub.f32 %v10423_v47, %v5464_v59 }
 0x49e   :  { %v5527_v46 = vsub.f32 %v5525_v50, %v5526_v40  ;;  %v5268_v28 = vsel %vm3519_vm7, %v5212_v44, 0  ;;  %v5474_v16 = vand.u32 4294901760, %v10387_v0  ;;  %v7374_v7 = vpack.c.bf16 %v10321_v31, %v10273_v36 }
 0x49f   :  { %v5521_v15 = vand.u32 4294901760, %v5520_v2  ;;  %v10458_v17 = vand.u32 4294901760, %v5268_v28  ;;  %v5466_v54 = vand.u32 4294901760, %v5465_v29  ;;  %v7390_v2 = vpack.c.bf16 %v5512_v20, %v5505_v32 }
 0x4a0   :  { %v5528_v4 = vand.u32 4294901760, %v5527_v46  ;;  %7091 = vmatmul.mubr.f32.gmra.mrb[8].mxu1 %v5436_v53  ;;  %v10466_v43 = vpack.c.bf16 %v5526_v40, %v5519_v24  ;;  %v5456_v39 = vand.u32 4294901760, %v5455_v41  ;;  %v5475_v44 = vsub.f32 %v10387_v0, %v5474_v16  ;;  %v10834_v41 = vld [vmem:[#allocation9_spill] sm:$0xff] }
 0x4a1   :  { %7093 = vmatprep.mubr.f32.mxu1 %v5446_v42  ;;  %v10469_v46 = vsub.f32 %v5268_v28, %v10458_v17  ;;  %v7378_v40 = vpack.c.bf16 %v5525_v50, %v5518_v1  ;;  %v10832_v1 = vld [vmem:[#allocation13_spill] sm:$0xff]  ;;  %v10833_v50 = vld [vmem:[#allocation8_spill] sm:$0xff] }
 0x4a2   :  { %v7370_v30 = vpack.c.bf16 %v5528_v4, %v5521_v15  ;;  %v5494_v15 = vand.u32 4294901760, %v10447_v5  ;;  %v5476_v32 = vand.u32 4294901760, %v5475_v44  ;;  %v10835_v4 = vand.u32 4294901760, %v10833_v50 }
 0x4a3   :  { %v5484_v36 = vand.u32 4294901760, %v10469_v46 }
 0x4a4   :  { %7371 = vmatprep.subr.bf16.mxu1 %v7370_v30  ;;  %7094 = vmatmul.mubr.f32.gmra.mrb[10].mxu1 %v5456_v39  ;;  %v5495_v20 = vsub.f32 %v10447_v5, %v5494_v15 }
 0x4a5   :  { %7373 = vmatpush3.bf16.msra.mxu1 %v7370_v30  ;;  %7096 = vmatprep.mubr.f32.mxu1 %v5466_v54  ;;  %v5485_v31 = vsub.f32 %v10469_v46, %v5484_v36 }
 0x4a6   :  { %7375 = vmatprep.subr.bf16.mxu1 %v7374_v7  ;;  %v5496_v28 = vand.u32 4294901760, %v5495_v20 }
 0x4a7   :  { %v5486_v24 = vand.u32 4294901760, %v5485_v31 }
 0x4a8   :  { %7097 = vmatmul.mubr.f32.gmra.mrb[12].mxu1 %v5476_v32 }
 0x4a9   :  { %7099 = vmatprep.mubr.f32.mxu1 %v5486_v24 }
 0x4ac   :  { %7100 = vmatmul.mubr.f32.gmra.mrb[14].mxu1 %v5496_v28 }
 0x4ad   :  { %7110 = vmatprep.mubr.f32.mxu1 %v10256_v61 }
 0x4b0   :  { %7111 = vmatmul.mubr.f32.vlgmr.msra.gmra.mrb[0].mxu1 %v10117_v55 }
 0x4b1   :  { %7377 = vmatpush3.bf16.msra.mxu1 %v7374_v7  ;;  %7113 = vmatprep.mubr.f32.mxu1 %v10123_v38 }
 0x4b2   :  { %7379 = vmatprep.subr.bf16.mxu1 %v7378_v40 }
 0x4b4   :  { %7114 = vmatmul.mubr.f32.gmra.mrb[2].mxu1 %v10121_v21 }
 0x4b5   :  { %7116 = vmatprep.mubr.f32.mxu1 %v10169_v35  ;;  %7381 = vmatpush3.bf16.msra.mxu1 %v7378_v40 }
 0x4b6   :  { %7383 = vmatprep.subr.bf16.mxu1 %v9917_v13 }
 0x4b8   :  { %7117 = vmatmul.mubr.f32.gmra.mrb[4].mxu1 %v10166_v19 }
 0x4b9   :  { %7119 = vmatprep.mubr.f32.mxu1 %v10199_v9 }
 0x4bc   :  { %7120 = vmatmul.mubr.f32.gmra.mrb[6].mxu1 %v10173_v51 }
 0x4bd   :  { %7122 = vmatprep.mubr.f32.mxu1 %v10328_v58 }
 0x4c0   :  { %7123 = vmatmul.mubr.f32.gmra.mrb[8].mxu1 %v10832_v1 }
 0x4c1   :  { %7125 = vmatprep.mubr.f32.mxu1 %v10372_v26 }
 0x4c4   :  { %7126 = vmatmul.mubr.f32.gmra.mrb[10].mxu1 %v10343_v49 }
 0x4c5   :  { %7128 = vmatprep.mubr.f32.mxu1 %v10412_v22 }
 0x4c8   :  { %7129 = vmatmul.mubr.f32.gmra.mrb[12].mxu1 %v10374_v34 }
 0x4c9   :  { %7131 = vmatprep.mubr.f32.mxu1 %v10458_v17 }
 0x4cc   :  { %7132 = vmatmul.mubr.f32.gmra.mrb[14].mxu1 %v10437_v18 }
 0x4cd   :  { %7142 = vmatprep.mubr.f32.mxu1 %v10833_v50 }
 0x4d0   :  { %7143 = vmatmul.mubr.f32.vlgmr.msra.gmra.mrb[0].mxu1 %v10145_v33  ;;  %v10836_v33 = vand.u32 4294901760, %v10287_v6 }
 0x4d1   :  { %7385 = vmatpush3.bf16.msra.mxu1 %v9917_v13  ;;  %7145 = vmatprep.mubr.f32.mxu1 %v10154_v45 }
 0x4d2   :  { %7387 = vmatprep.subr.bf16.mxu1 %v10834_v41 }
 0x4d4   :  { %7146 = vmatmul.mubr.f32.gmra.mrb[2].mxu1 %v10151_v12  ;;  %v10837_v12 = vand.u32 4294901760, %v10384_v27 }
 0x4d5   :  { %7148 = vmatprep.mubr.f32.mxu1 %v10186_v8  ;;  %7389 = vmatpush3.bf16.msra.mxu1 %v10834_v41 }
 0x4d6   :  { %7391 = vmatprep.subr.bf16.mxu1 %v7390_v2 }
 0x4d8   :  { %7149 = vmatmul.mubr.f32.gmra.mrb[4].mxu1 %v10178_v60 }
 0x4d9   :  { %7151 = vmatprep.mubr.f32.mxu1 %v10213_v14 }
 0x4dc   :  { %7152 = vmatmul.mubr.f32.gmra.mrb[6].mxu1 %v10194_v25 }
 0x4dd   :  { %7154 = vmatprep.mubr.f32.mxu1 %v10336_v52 }
 0x4e0   :  { %7155 = vmatmul.mubr.f32.gmra.mrb[8].mxu1 %v10287_v6 }
 0x4e1   :  { %7157 = vmatprep.mubr.f32.mxu1 %v10384_v27 }
 0x4e4   :  { %7158 = vmatmul.mubr.f32.gmra.mrb[10].mxu1 %v10354_v23 }
 0x4e5   :  { %7160 = vmatprep.mubr.f32.mxu1 %v10423_v47 }
 0x4e8   :  { %7161 = vmatmul.mubr.f32.gmra.mrb[12].mxu1 %v10387_v0 }
 0x4e9   :  { %7163 = vmatprep.mubr.f32.mxu1 %v10469_v46 }
 0x4ec   :  { %7164 = vmatmul.mubr.f32.gmra.mrb[14].mxu1 %v10447_v5 }
 0x4ed   :  { %7174 = vmatprep.mubr.f32.mxu1 %v10835_v4 }
 0x4f0   :  { %7175 = vmatmul.mubr.f32.vlgmr.msra.gmra.mrb[0].mxu1 %v5354_v57 }
 0x4f1   :  { %7393 = vmatpush3.bf16.msra.mxu1 %v7390_v2  ;;  %7177 = vmatprep.mubr.f32.mxu1 %v5364_v48 }
 0x4f2   :  { %7395 = vmatprep.subr.bf16.mxu1 %v10466_v43 }
 0x4f4   :  { %7178 = vmatmul.mubr.f32.gmra.mrb[2].mxu1 %v5374_v56 }
 0x4f5   :  { %7180 = vmatprep.mubr.f32.mxu1 %v5384_v62  ;;  %7397 = vmatpush3.bf16.msra.mxu1 %v10466_v43 }
 0x4f6   :  { %7399 = vmatprep.subr.bf16.mxu1 %v9917_v13 }
 0x4f8   :  { %7181 = vmatmul.mubr.f32.gmra.mrb[4].mxu1 %v5394_v3 }
 0x4f9   :  { %7183 = vmatprep.mubr.f32.mxu1 %v5404_v63 }
 0x4fc   :  { %7184 = vmatmul.mubr.f32.gmra.mrb[6].mxu1 %v5414_v11 }
 0x4fd   :  { %7186 = vmatprep.mubr.f32.mxu1 %v5424_v10 }
 0x500   :  { %7187 = vmatmul.mubr.f32.gmra.mrb[8].mxu1 %v10836_v33 }
 0x501   :  { %7189 = vmatprep.mubr.f32.mxu1 %v10837_v12 }
 0x504   :  { %7190 = vmatmul.mubr.f32.gmra.mrb[10].mxu1 %v5454_v37 }
 0x505   :  { %7192 = vmatprep.mubr.f32.mxu1 %v5464_v59 }
 0x508   :  { %7193 = vmatmul.mubr.f32.gmra.mrb[12].mxu1 %v5474_v16 }
 0x509   :  { %7195 = vmatprep.mubr.f32.mxu1 %v5484_v36 }
 0x50c   :  { %7196 = vmatmul.mubr.f32.gmra.mrb[14].mxu1 %v5494_v15 }
 0x50d   :  { %7206 = vmatprep.mubr.f32.mxu1 %v10256_v61 }
 0x510   :  { %7207 = vmatmul.mubr.f32.vlgmr.msra.gmra.mrb[0].mxu1 %v10117_v55 }
 0x511   :  { %7401 = vmatpush3.bf16.msra.mxu1 %v9917_v13  ;;  %7209 = vmatprep.mubr.f32.mxu1 %v10123_v38  ;;  %v6565_v13 = vld [vmem:[%s10608_s5] ss:$0 sm:$0xff]  ;;  %s7839_s5 = smov [#allocation2]  }
 0x512   :  { %7403 = vmatprep.subr.bf16.mxu1 %v10834_v41  ;;  %s6424_s13 = sshll.u32 %s7839_s5, 4  ;;  %s6425_s13 = int_to_ptr.vmem [resolvable:$true] %s6424_s13 }
 0x513   :  { %s7807_s14 = scalar_lea.vmem %s6425_s13, 2048  ;;  %p7812_p1 = scmp.lt.s32.totalorder %s6425_s13, %s6425_s13 }
 0x514   :  { %7210 = vmatmul.mubr.f32.gmra.mrb[2].mxu1 %v10121_v21  ;;  %p7808_p0 = scmp.ne.s32.totalorder %s6425_s13, %s7807_s14  ;;  %p7813_p2 = scmp.lt.s32.totalorder %s7807_s14, %s7807_s14 }
 0x515   :  { %7212 = vmatprep.mubr.f32.mxu1 %v10169_v35  ;;  %7405 = vmatpush3.bf16.msra.mxu1 %v10834_v41 }
 0x516   :  { %p7814_p3 = por %p7813_p2, %p7812_p1 }
 0x518   :  { %7213 = vmatmul.mubr.f32.gmra.mrb[4].mxu1 %v10166_v19  ;;  %p7815_p4 = pnand %p7814_p3, %p7808_p0 }
 0x519   :  { %7215 = vmatprep.mubr.f32.mxu1 %v10199_v9 }
 0x51c   :  { %7216 = vmatmul.mubr.f32.gmra.mrb[6].mxu1 %v10173_v51 }
 0x51d   :  { %7218 = vmatprep.mubr.f32.mxu1 %v10328_v58 }
 0x520   :  { %7219 = vmatmul.mubr.f32.gmra.mrb[8].mxu1 %v10832_v1 }
 0x521   :  { %7221 = vmatprep.mubr.f32.mxu1 %v10372_v26 }
 0x524   :  { %7222 = vmatmul.mubr.f32.gmra.mrb[10].mxu1 %v10343_v49 }
 0x525   :  { %7224 = vmatprep.mubr.f32.mxu1 %v10412_v22 }
 0x528   :  { %7225 = vmatmul.mubr.f32.gmra.mrb[12].mxu1 %v10374_v34 }
 0x529   :  { %7227 = vmatprep.mubr.f32.mxu1 %v10458_v17 }
 0x52c   :  { %7228 = vmatmul.mubr.f32.gmra.mrb[14].mxu1 %v10437_v18 }
 0x52d   :  { %7238 = vmatprep.mubr.f32.mxu1 %v10256_v61 }
 0x530   :  { %7239 = vmatmul.mubr.f32.vlgmr.msra.gmra.mrb[0].mxu1 %v10117_v55 }
 0x531   :  { %7241 = vmatprep.mubr.f32.mxu1 %v10123_v38 }
 0x534   :  { %7242 = vmatmul.mubr.f32.gmra.mrb[2].mxu1 %v10121_v21 }
 0x535   :  { %7244 = vmatprep.mubr.f32.mxu1 %v10169_v35 }
 0x538   :  { %7245 = vmatmul.mubr.f32.gmra.mrb[4].mxu1 %v10166_v19 }
 0x539   :  { %7247 = vmatprep.mubr.f32.mxu1 %v10199_v9 }
 0x53c   :  { %7248 = vmatmul.mubr.f32.gmra.mrb[6].mxu1 %v10173_v51 }
 0x53d   :  { %7250 = vmatprep.mubr.f32.mxu1 %v10328_v58 }
 0x540   :  { %7251 = vmatmul.mubr.f32.gmra.mrb[8].mxu1 %v10832_v1 }
 0x541   :  { %7253 = vmatprep.mubr.f32.mxu1 %v10372_v26 }
 0x544   :  { %7254 = vmatmul.mubr.f32.gmra.mrb[10].mxu1 %v10343_v49 }
 0x545   :  { %7256 = vmatprep.mubr.f32.mxu1 %v10412_v22 }
 0x548   :  { %7257 = vmatmul.mubr.f32.gmra.mrb[12].mxu1 %v10374_v34 }
 0x549   :  { %7259 = vmatprep.mubr.f32.mxu1 %v10458_v17 }
 0x54c   :  { %7260 = vmatmul.mubr.f32.gmra.mrb[14].mxu1 %v10437_v18 }
 0x603   :  { %v7240_v61 = vpop.f32.mrb[0].mxu1 }
 0x604   :  { %v7422_v55 = vadd.f32 %v7240_v61, %v6565_v13  ;;  %v6309_v21 = vpop.f32.mrb[1].mxu1 }
 0x605   :  { %v7423_v38 = vadd.f32 %v6565_v13, %v6309_v21 }
 0x606   :  { %6404 = vst [vmem:[#allocation2 + $0x8] sm:$0xff] %v7422_v55 }
 0x607   :  { %6403 = vst [vmem:[#allocation2] sm:$0xff] %v7423_v38  ;;  %v7243_v45 = vpop.f32.mrb[2].mxu1 }
 0x608   :  { %v7424_v19 = vadd.f32 %v7243_v45, %v6565_v13  ;;  %v6321_v35 = vpop.f32.mrb[3].mxu1 }
 0x609   :  { %v7425_v51 = vadd.f32 %v6565_v13, %v6321_v35 }
 0x60a   :  { %6406 = vst [vmem:[#allocation2 + $0x18] sm:$0xff] %v7424_v19 }
 0x60b   :  { %6405 = vst [vmem:[#allocation2 + $0x10] sm:$0xff] %v7425_v51  ;;  %v7246_v60 = vpop.f32.mrb[4].mxu1 }
 0x60c   :  { %v7426_v8 = vadd.f32 %v7246_v60, %v6565_v13  ;;  %v6333_v25 = vpop.f32.mrb[5].mxu1 }
 0x60d   :  { %v7427_v9 = vadd.f32 %v6565_v13, %v6333_v25 }
 0x60e   :  { %6408 = vst [vmem:[#allocation2 + $0x28] sm:$0xff] %v7426_v8 }
 0x60f   :  { %6407 = vst [vmem:[#allocation2 + $0x20] sm:$0xff] %v7427_v9  ;;  %v7249_v14 = vpop.f32.mrb[6].mxu1 }
 0x610   :  { %v7428_v6 = vadd.f32 %v7249_v14, %v6565_v13  ;;  %v6345_v58 = vpop.f32.mrb[7].mxu1 }
 0x611   :  { %v7429_v52 = vadd.f32 %v6565_v13, %v6345_v58 }
 0x612   :  { %6410 = vst [vmem:[#allocation2 + $0x38] sm:$0xff] %v7428_v6 }
 0x613   :  { %6409 = vst [vmem:[#allocation2 + $0x30] sm:$0xff] %v7429_v52  ;;  %v7252_v49 = vpop.f32.mrb[8].mxu1 }
 0x614   :  { %v7430_v57 = vadd.f32 %v7252_v49, %v6565_v13  ;;  %v6357_v23 = vpop.f32.mrb[9].mxu1 }
 0x615   :  { %v7431_v48 = vadd.f32 %v6565_v13, %v6357_v23 }
 0x616   :  { %6412 = vst [vmem:[#allocation2 + $0x48] sm:$0xff] %v7430_v57 }
 0x617   :  { %6411 = vst [vmem:[#allocation2 + $0x40] sm:$0xff] %v7431_v48  ;;  %v7255_v56 = vpop.f32.mrb[10].mxu1 }
 0x618   :  { %v7432_v26 = vadd.f32 %v7255_v56, %v6565_v13  ;;  %v6369_v34 = vpop.f32.mrb[11].mxu1 }
 0x619   :  { %v7433_v62 = vadd.f32 %v6565_v13, %v6369_v34 }
 0x61a   :  { %6414 = vst [vmem:[#allocation2 + $0x58] sm:$0xff] %v7432_v26 }
 0x61b   :  { %6413 = vst [vmem:[#allocation2 + $0x50] sm:$0xff] %v7433_v62  ;;  %v7258_v27 = vpop.f32.mrb[12].mxu1 }
 0x61c   :  { %v7434_v0 = vadd.f32 %v7258_v27, %v6565_v13  ;;  %v6381_v3 = vpop.f32.mrb[13].mxu1 }
 0x61d   :  { %v7435_v63 = vadd.f32 %v6565_v13, %v6381_v3 }
 0x61e   :  { %6416 = vst [vmem:[#allocation2 + $0x68] sm:$0xff] %v7434_v0 }
 0x61f   :  { %6415 = vst [vmem:[#allocation2 + $0x60] sm:$0xff] %v7435_v63  ;;  %v7261_v11 = vpop.f32.mrb[14].mxu1 }
 0x620   :  { %v7436_v10 = vadd.f32 %v7261_v11, %v6565_v13  ;;  %v6393_v22 = vpop.f32.mrb[15].mxu1 }
 0x621   :  { %v7437_v47 = vadd.f32 %v6565_v13, %v6393_v22 }
 0x622   :  { %6418 = vst [vmem:[#allocation2 + $0x78] sm:$0xff] %v7436_v10 }
 0x623   :  { %6417 = vst [vmem:[#allocation2 + $0x70] sm:$0xff] %v7437_v47 }
 0x624   :  { %7818 = shalt.err (!%p7815_p4)
}
 0x625   :  { %s7819_s17 = scalar_lea.hbm %s10609_s6, 2048 }
 0x626   :  { %p7820_p5 = scmp.ne.s32.totalorder %s10609_s6, %s7819_s17  ;;  %p7823_p6 = scmp.lt.u32.totalorder %s7819_s17, %s10609_s6 }
 0x628   :  { %p7825_p7 = pnand %p7823_p6, %p7820_p5 }
 0x62a   :  { %7828 = shalt.err (!%p7825_p7)
}
 0x62b   :  { %s7840_s22 = smov 128   ;;  %s7841_s23 = smov 8  }
 0x62c   :  { %6430 = dma.vmem_to_hbm [thread:$0]  %s6425_s13, 2048, %s10609_s6, [#allocation3], %s7840_s22, %s7840_s22, %s7841_s23  }
 0x62d   :  { %7829 = dma.done.wait [#allocation3], 2048  }
 0x62e   :  { %7830 = vsyncadd [#allocation3], 4294965248 }
 0x62f   :  { %6434 = vsyncpa [#allocation3], 1 }

</bundles_post_ra>
